<compile_context>
chip_gen: v7x
topology: tpu7x:2x2x1
jax: 0.10.0
libtpu: 0.0.40
codegen_flags: <defaults>
</compile_context>

<pallas_src>
import jax
import jax.numpy as jnp
from jax.experimental import pallas as pl
from jax.experimental.pallas import tpu as pltpu


# ---------------------------------------------------------------------------
# Kernel
# ---------------------------------------------------------------------------
def _pe_add_kernel(x_ref, pe_ref, o_ref):
    """x_ref/o_ref: (ts, B, td); pe_ref: (ts, td) or (ts, 1, td).

    pe is cast in-kernel (mem-bound kernel -> the cast is free filler) and
    broadcast across the batch (sublane) axis.  One VPU add per vreg;
    unmasked lane-dense stores because td % 128 == 0 and blocks divide evenly.
    """
    pe = pe_ref[...].astype(x_ref.dtype)
    if pe.ndim == 2:                      # (ts, td) -> add unit batch axis
        pe = pe[:, None, :]
    o_ref[...] = x_ref[...] + pe


# ---------------------------------------------------------------------------
# pe table (matches the PyTorch __init__, minus the unit batch dim)
# ---------------------------------------------------------------------------
def make_positional_encoding_table(d_model: int, max_len: int = 100,
                                   dtype=jnp.float32) -> jnp.ndarray:
    """Deterministic pe buffer, shape (max_len, d_model).

    The unit batch dim of the PyTorch buffer is handled by broadcasting in the
    forward.  Pass dtype=jnp.bfloat16 to pre-cast at init (recommended for
    bf16 models on v5e, which has no bf16 VPU)."""
    position = jnp.arange(0, max_len, dtype=jnp.float32)[:, None]           # (L, 1)
    div_term = jnp.exp(
        jnp.arange(0, d_model, 2, dtype=jnp.float32)
        * (-jnp.log(jnp.float32(10000.0)) / d_model)
    )                                                                        # (ceil(D/2),)
    angles = position * div_term                                             # (L, ceil(D/2))
    pe = jnp.zeros((max_len, d_model), dtype=jnp.float32)
    pe = pe.at[:, 0::2].set(jnp.sin(angles))
    # Guard odd d_model (the PyTorch original would error here).
    pe = pe.at[:, 1::2].set(jnp.cos(angles)[:, : d_model // 2])
    return pe.astype(dtype)


# ---------------------------------------------------------------------------
# Wrapper
# ---------------------------------------------------------------------------
_MIN_PALLAS_ELEMENTS = 64 * 1024      # below this, fused XLA add wins
_TARGET_BLOCK_BYTES = 4 << 20         # ~4 MiB x-block per grid step
_VMEM_LIMIT_BYTES = 28 << 20          # double-buffered footprint ~4.25x block;
                                      # 28 MiB covers v5e's 16 MiB scoped default
                                      # and stays under v7x's 64 MiB physical VMEM


def _pick_seq_tile(S: int, ts_target: int):
    """Largest divisor of S <= ts_target.  Prefer multiples of 8 (so the 2-D pe
    BlockSpec satisfies the (8,128) rule) unless that more than doubles the
    number of grid steps.  Returns (ts, ts_is_mult_of_8)."""
    best_any = None
    best_mult8 = None
    for d in range(max(1, min(S, ts_target)), 0, -1):
        if S % d == 0:
            if best_any is None:
                best_any = d
            if d % 8 == 0:
                best_mult8 = d
                break
    if best_mult8 is not None and 2 * best_mult8 >= best_any:
        return best_mult8, True
    return best_any, (best_any % 8 == 0)


def positional_encoding_forward(x: jnp.ndarray, pe: jnp.ndarray,
                                *, donate_x: bool = False) -> jnp.ndarray:
    """x: (S, B, D); pe: (max_len, D) table.  Returns x + pe[:S] broadcast over B.

    donate_x=True aliases the output onto x; only safe if the caller actually
    donates x (jit donate_argnums) and never reads it afterwards."""
    S, B, D = x.shape
    max_len, d_model = pe.shape
    if d_model != D:
        raise ValueError(f"d_model mismatch: x has {D}, pe table has {d_model}")
    if S > max_len:
        raise ValueError(f"seq_len {S} exceeds pe max_len {max_len}")

    # Tiny or lane-ragged shapes (like the module's natural 8x2x32): a plain
    # broadcast add that XLA fuses into neighbours beats a standalone kernel.
    if x.size < _MIN_PALLAS_ELEMENTS or D % 128 != 0:
        return x + pe[:S].astype(x.dtype)[:, None, :]

    itemsize = x.dtype.itemsize

    # Lane tile: keep D whole unless one (1, B, D) row already exceeds the block
    # budget; then tile D in multiples of 128 that divide D (lane-dense stores).
    td = D
    if B * D * itemsize > _TARGET_BLOCK_BYTES:
        max_td = max(128, ((_TARGET_BLOCK_BYTES // (B * itemsize)) // 128) * 128)
        td = 128
        for cand in range(min(max_td, D), 127, -128):
            if D % cand == 0:
                td = cand
                break
    # TODO(synk): tile B as well for extreme batch sizes (B*128*itemsize >> budget).
    # TODO(synk): bf16/int8 sublane packing (fold S into B to fill [16,128]/[32,128]
    #             packed vregs) would halve vst count for small-B low-precision x.

    # Sequence tile: ~_TARGET_BLOCK_BYTES per x block, always a divisor of S
    # (no ragged blocks), capped at S//2 so there are >=2 grid steps for
    # pipelining and for v7x's two TensorCores.
    row_bytes = B * td * itemsize
    ts_target = max(1, min(max(1, S // 2), _TARGET_BLOCK_BYTES // row_bytes))
    ts, ts_mult8 = _pick_seq_tile(S, ts_target)

    grid = (S // ts, D // td)

    # pe spec: 2-D (ts, td) avoids the per-block cross-sublane replicate of a
    # (ts, 1, td) layout, but its leading block dim must satisfy the (8,128)
    # rule; otherwise use the always-legal unit-batch-axis form.
    if ts_mult8 or ts == max_len:
        pe_arg = pe                                        # full table, untouched
        pe_spec = pl.BlockSpec((ts, td), lambda i, j: (i, j))
    else:
        pe_arg = pe[:, None, :]                            # metadata-only expand
        pe_spec = pl.BlockSpec((ts, 1, td), lambda i, j: (i, 0, j))

    cost = pl.CostEstimate(
        flops=S * B * D,
        transcendentals=0,
        bytes_accessed=2 * S * B * D * itemsize + S * D * pe.dtype.itemsize,
    )

    return pl.pallas_call(
        _pe_add_kernel,
        out_shape=jax.ShapeDtypeStruct((S, B, D), x.dtype),
        grid=grid,
        in_specs=[
            pl.BlockSpec((ts, B, td), lambda i, j: (i, 0, j)),
            pe_spec,
        ],
        out_specs=pl.BlockSpec((ts, B, td), lambda i, j: (i, 0, j)),
        compiler_params=pltpu.CompilerParams(
            # No reduction axes; "parallel" lets v7x shard the grid across its
            # two TensorCores (no-op on single-TC v5e/v6e).
            dimension_semantics=("parallel", "parallel"),
            vmem_limit_bytes=_VMEM_LIMIT_BYTES,
        ),
        cost_estimate=cost,
        input_output_aliases={0: 0} if donate_x else {},
    )(x, pe_arg)


# ---------------------------------------------------------------------------
# Self-test
# ---------------------------------------------------------------------------
if __name__ == "__main__":
    key = jax.random.PRNGKey(0)
    k1, k2, k3 = jax.random.split(key, 3)

    # --- Case 1: module's natural tiny shape (seq=8, batch=2, d_model=32) ---
    # Takes the fused-XLA fast path (512 elements; kernel overhead dominates).
    d_model, max_len, seq, batch = 32, 100, 8, 2
    pe_small = make_positional_encoding_table(d_model, max_len)
    x_small = jax.random.normal(k1, (seq, batch, d_model), dtype=jnp.float32)
    out_small = jax.block_until_ready(positional_encoding_forward(x_small, pe_small))
    ref_small = x_small + pe_small[:seq][:, None, :]
    assert out_small.shape == x_small.shape and out_small.dtype == x_small.dtype
    assert jnp.allclose(out_small, ref_small, atol=1e-6, rtol=1e-6)

    # --- Case 2: lane-dense f32 -> tiled Pallas path (2-D pe BlockSpec) -----
    # (S, B, D) = (1024, 8, 128): ts=512 (2 MiB blocks), grid (2, 1).
    d2, L2, S2, B2 = 128, 1024, 1024, 8
    pe_big = make_positional_encoding_table(d2, L2)
    x_big = jax.random.normal(k2, (S2, B2, d2), dtype=jnp.float32)
    out_big = jax.block_until_ready(positional_encoding_forward(x_big, pe_big))
    ref_big = x_big + pe_big[:S2][:, None, :]
    assert out_big.shape == x_big.shape and out_big.dtype == x_big.dtype
    assert jnp.allclose(out_big, ref_big, atol=1e-6, rtol=1e-6)

    # --- Case 3: bf16 x + f32 pe table, S=900 (no mult-of-8 divisor) --------
    # Exercises the in-kernel cast and the (ts, 1, td) pe fallback spec.
    d3, L3, S3, B3 = 128, 900, 900, 8
    pe_mid = make_positional_encoding_table(d3, L3)                # f32 table
    x_bf = jax.random.normal(k3, (S3, B3, d3), dtype=jnp.float32).astype(jnp.bfloat16)
    out_bf = jax.block_until_ready(positional_encoding_forward(x_bf, pe_mid))
    ref_bf = x_bf + pe_mid[:S3].astype(jnp.bfloat16)[:, None, :]
    assert out_bf.shape == x_bf.shape and out_bf.dtype == jnp.bfloat16
    assert jnp.allclose(out_bf.astype(jnp.float32), ref_bf.astype(jnp.float32),
                        atol=2e-2, rtol=2e-2)

    print("KERNEL_OK")
</pallas_src>

<mosaic_0001>
module attributes {stable_mosaic.version = 11 : i64} {
  func.func @_pe_add_kernel(%arg0: i32, %arg1: i32, %arg2: memref<512x8x128xf32, #tpu.memory_space<vmem>>, %arg3: memref<512x128xf32, #tpu.memory_space<vmem>>, %arg4: memref<512x8x128xf32, #tpu.memory_space<vmem>>) attributes {dimension_semantics = [#tpu.dimension_semantics<parallel>, #tpu.dimension_semantics<parallel>], iteration_bounds = array<i64: 2, 1>, scalar_prefetch = 0 : i64, scratch_operands = 0 : i64, tpu.core_type = #tpu.core_type<tc>, window_params = [{transform_indices = @transform_0, window_bounds = array<i64: 512, 8, 128>}, {transform_indices = @transform_1, window_bounds = array<i64: 512, 128>}, {transform_indices = @transform_2, window_bounds = array<i64: 512, 8, 128>}]} {
    %c0 = arith.constant 0 : index
    %c0_0 = arith.constant 0 : index
    %0 = vector.load %arg3[%c0, %c0_0] : memref<512x128xf32, #tpu.memory_space<vmem>>, vector<512x128xf32>
    %1 = vector.shape_cast %0 : vector<512x128xf32> to vector<512x1x128xf32>
    %c0_1 = arith.constant 0 : index
    %c0_2 = arith.constant 0 : index
    %c0_3 = arith.constant 0 : index
    %2 = vector.load %arg2[%c0_1, %c0_2, %c0_3] : memref<512x8x128xf32, #tpu.memory_space<vmem>>, vector<512x8x128xf32>
    %3 = vector.broadcast %1 : vector<512x1x128xf32> to vector<512x8x128xf32>
    %4 = arith.addf %2, %3 : vector<512x8x128xf32>
    %c0_4 = arith.constant 0 : index
    %c0_5 = arith.constant 0 : index
    %c0_6 = arith.constant 0 : index
    %5 = vector.load %arg4[%c0_4, %c0_5, %c0_6] : memref<512x8x128xf32, #tpu.memory_space<vmem>>, vector<512x8x128xf32>
    tpu.vector_store %arg4[%c0_4, %c0_5, %c0_6], %4 {strides = array<i32>} : memref<512x8x128xf32, #tpu.memory_space<vmem>>, vector<512x8x128xf32>,
    return
  }
  func.func @transform_0(%arg0: i32, %arg1: i32) -> (i32, i32, i32) {
    %c0_i32 = arith.constant 0 : i32
    %c0_i32_0 = arith.constant 0 : i32
    return %arg0, %c0_i32, %arg1 : i32, i32, i32
  }
  func.func @transform_1(%arg0: i32, %arg1: i32) -> (i32, i32) {
    %c0_i32 = arith.constant 0 : i32
    return %arg0, %arg1 : i32, i32
  }
  func.func @transform_2(%arg0: i32, %arg1: i32) -> (i32, i32, i32) {
    %c0_i32 = arith.constant 0 : i32
    %c0_i32_0 = arith.constant 0 : i32
    return %arg0, %c0_i32, %arg1 : i32, i32, i32
  }
}

</mosaic_0001>

<bundles_post_ra>
// kernel: tpu_custom_call.1
= control target key start
LH: loop header
LB: loop body
LE: loop exit
PB: predicated region body
PF: predicated region fallthrough
CT: control target
= control target key end

     0   :  { %7 = vsyncpa [#allocation3], 0  ;;  %s10547_s0 = inlined_call_operand.hbm [shape: f32[1024,8,128], index: 0, kind: input, shape index: {}]   ;;  %s10548_s1 = inlined_call_operand.hbm [shape: f32[1024,128], index: 1, kind: input, shape index: {}]   ;;  %s10549_s2 = inlined_call_operand.hbm [shape: f32[1024,8,128], index: 2, kind: output, shape index: {}]  }
   0x1   :  { %9 = vsyncpa [#allocation3 + $0x1], 0 }
   0x2   :  { %10 = vsyncpa [#allocation6], 0 }
   0x3   :  { %12 = vsyncpa [#allocation6 + $0x1], 0 }
   0x4   :  { %13 = vsyncpa [#allocation4], 0 }
   0x5   :  { %15 = vsyncpa [#allocation4 + $0x1], 0  ;;  %s8039_s9 = smov 0   ;;  %s8041_s10 = smov 0  }
   0x6   :  { %s8043_s11 = smov 0   ;;  %s8045_s12 = smov 0  }
   0x7   :  { %s8047_s13 = smov 0   ;;  %s8049_s14 = smov 0  }
   0x8 LB: > { %s7710_s15 = sadd.s32 4294967295, %s8014_s14   ;;  %s7711_s16 = sadd.s32 4294967294, %s8014_s14   ;;  %s8014_s14 = sphi %s8049_s14, %s21_s14   ;;  %s8010_s13 = sphi %s8047_s13, %s10567_s13   ;;  %s8006_s12 = sphi %s8045_s12, %s10566_s12   ;;  %s8002_s11 = sphi %s8043_s11, %s10565_s11   ;;  %s7998_s10 = sphi %s8041_s10, %s10564_s10   ;;  %s7994_s9 = sphi %s8039_s9, %s10563_s9  }
   0x9   : > { %s33_s17 = sadd.s32 1, %s8010_s13  ;;  %s42_s18 = sadd.s32 1, %s8002_s11 }
   0xa   : > { %p35_p0 = scmp.ge.s32.totalorder %s33_s17, 2  ;;  %p49_p1 = scmp.ne.s32.totalorder %s8002_s11, %s7998_s10 }
   0xb   : > { %p50_p2 = scmp.eq.s32.totalorder %s8014_s14, 0  ;;  %p55_p3 = scmp.ne.s32.totalorder %s7998_s10, %s7994_s9 }
   0xc   : > { %s10569_s17 = smov (%p35_p0, %s33_s17), 0  ;;  %p56_p5 = scmp.eq.s32.totalorder %s7710_s15, 0 }
   0xd   : > { %p8080_p4 = por %p50_p2, %p49_p1  ;;  %s37_s20 = ssub.s32 %s8010_s13, %s10569_s17 }
   0xe   : > { %p109_p6 = scmp.eq.s32.totalorder %s7710_s15, 1  ;;  %p40_p7 = scmp.eq.s32.totalorder %s37_s20, 0 }
   0xf   : > { %p8086_p8 = por %p56_p5, %p55_p3  ;;  %p115_p10 = scmp.eq.s32.totalorder %s7711_s16, 1 }
  0x10   : > { %p8090_p9 = por %p109_p6, %p49_p1  ;;  %p7749_p13 = scmp.lt.s32.totalorder %s8014_s14, 2 }
  0x11   : > { %s10553_s21 = scalar_select %p8086_p8, 1, 0 }
  0x12   : > { %s10554_s22 = scalar_select %p8090_p9, 1, 0 }
  0x13   : > { %s8095_s23 = scalar_select %p40_p7, %s8002_s11, %s42_s18  }
  0x14   : > { %p8097_p11 = por %p115_p10, %p55_p3  ;;  %s8104_s25 = sand.u32 1, %s8002_s11  }
  0x15   : > { %s7714_s26 = sshll.u32 %s8104_s25, 12  ;;  %s7729_s27 = sshll.u32 %s8010_s13, 16 }
  0x16   : > { %s10555_s24 = scalar_select %p8097_p11, 1, 0 }
  0x17   : > { %s8111_s30 = scalar_lea.hbm %s10547_s0, %s7729_s27  ;;  %s139_s3 = scalar_lea.vmem [#allocation2], %s7714_s26 }
  0x18   : > { %s147_s4 = sshll.u32 %s139_s3, 4  ;;  %p8117_p0 = pnand %p7749_p13, %p8080_p4  ;;  %s8113_s4 = int_to_ptr.vmem [resolvable:$true] %s147_s4 }
  0x19   : > { %s136_s6 = scalar_lea.sflag [#allocation3], %s8104_s25  ;;  %s7868_s7 = scalar_lea.hbm %s8111_s30, 65536 }
  0x1a   : > { %p7869_p2 = scmp.ne.s32.totalorder %s8111_s30, %s7868_s7  ;;  %p7870_p3 = pneg %p8117_p0 }
  0x1b   : > { %s7873_s16 = scalar_lea.hbm %s10547_s0, 131072  ;;  %p7874_p4 = scmp.lt.u32.totalorder %s8111_s30, %s10547_s0 }
  0x1c   : > { %p7871_p5 = pnand %p7870_p3, %p7869_p2  ;;  %p7875_p7 = scmp.lt.u32.totalorder %s7873_s16, %s7868_s7 }
  0x1d   : > { %p7877_p13 = scmp.lt.u32.totalorder %s7868_s7, %s8111_s30 }
  0x1e   : > { %p7872_p6 = pneg %p7871_p5  ;;  %p7876_p10 = por %p7875_p7, %p7874_p4 }
  0x20   : > { %p7878_p12 = por %p7877_p13, %p7876_p10 }
  0x22   : > { %p7879_p1 = pnand %p7878_p12, %p7872_p6 }
  0x24   : > { %7882 = shalt.err (!%p7879_p1)
}
  0x25   : > { %s7883_s20 = scalar_lea.vmem %s8113_s4, 65536  ;;  %s8016_s26 = smov [#allocation2]  }
  0x26   : > { %p7884_p2 = scmp.ne.s32.totalorder %s8113_s4, %s7883_s20  ;;  %s7888_s27 = sshll.u32 %s8016_s26, 4  ;;  %s7889_s27 = int_to_ptr.vmem [resolvable:$false] %s7888_s27 }
  0x27   : > { %s7890_s28 = scalar_lea.vmem %s7889_s27, 131072  ;;  %p7891_p9 = scmp.lt.s32.totalorder %s8113_s4, %s7889_s27 }
  0x28   : > { %p7886_p5 = pnand %p7884_p2, %p7870_p3  ;;  %p7892_p4 = scmp.lt.s32.totalorder %s7890_s28, %s7883_s20 }
  0x2a   : > { %p7887_p11 = pneg %p7886_p5  ;;  %p7893_p7 = por %p7892_p4, %p7891_p9 }
  0x2c   : > { %p7894_p10 = pnand %p7893_p7, %p7887_p11 }
  0x2e   : > { %7897 = shalt.err (!%p7894_p10)
}
  0x2f   : > { %s8017_s29 = smov 128   ;;  %s8018_s3 = smov 8  }
  0x30   : > { %7741 = dma.hbm_to_vmem [thread:$0]  (!%p8117_p0), %s8111_s30, 65536, %s8113_s4, %s136_s6, %s8017_s29, %s8017_s29, %s8018_s3  }
  0x31   : > { %p177_p9 = scmp.lt.s32.totalorder %s8014_s14, 3  ;;  %s7717_s7 = sshll.u32 %s8104_s25, 9 }
  0x32   : > { %s7730_s8 = sshll.u32 %s8010_s13, 13  ;;  %p10557_p11 = scmp.ge.s32.totalorder %s8014_s14, 1 }
  0x33   : > { %s8165_s19 = scalar_lea.hbm %s10548_s1, %s7730_s8  ;;  %s161_s20 = scalar_lea.vmem [#allocation5], %s7717_s7 }
  0x34   : > { %p8158_p12 = pnand %p10557_p11, %p177_p9  ;;  %s169_s26 = sshll.u32 %s161_s20, 4  ;;  %s8167_s26 = int_to_ptr.vmem [resolvable:$true] %s169_s26 }
  0x35   : > { %s158_s30 = scalar_lea.sflag [#allocation6], %s8104_s25  ;;  %s7898_s4 = scalar_lea.hbm %s8165_s19, 8192 }
  0x36   : > { %p7899_p1 = scmp.ne.s32.totalorder %s8165_s19, %s7898_s4  ;;  %s7903_s28 = scalar_lea.hbm %s10548_s1, 16384 }
  0x37   : > { %p7904_p2 = scmp.lt.u32.totalorder %s8165_s19, %s10548_s1  ;;  %p7905_p5 = scmp.lt.u32.totalorder %s7903_s28, %s7898_s4 }
  0x38   : > { %p7901_p6 = pnand %p7899_p1, %p7870_p3  ;;  %p7907_p7 = scmp.lt.u32.totalorder %s7898_s4, %s8165_s19 }
  0x39   : > { %p7906_p4 = por %p7905_p5, %p7904_p2 }
  0x3a   : > { %p7902_p13 = pneg %p7901_p6 }
  0x3b   : > { %p7908_p10 = por %p7907_p7, %p7906_p4 }
  0x3d   : > { %p7909_p9 = pnand %p7908_p10, %p7902_p13 }
  0x3f   : > { %7912 = shalt.err (!%p7909_p9)
}
  0x40   : > { %s7913_s7 = scalar_lea.vmem %s8167_s26, 8192  ;;  %s8019_s18 = smov [#allocation5]  }
  0x41   : > { %p7914_p11 = scmp.ne.s32.totalorder %s8167_s26, %s7913_s7  ;;  %s7918_s20 = sshll.u32 %s8019_s18, 4  ;;  %s7919_s20 = int_to_ptr.vmem [resolvable:$false] %s7918_s20 }
  0x42   : > { %s7920_s6 = scalar_lea.vmem %s7919_s20, 16384  ;;  %p7921_p8 = scmp.lt.s32.totalorder %s8167_s26, %s7919_s20 }
  0x43   : > { %p7916_p1 = pnand %p7914_p11, %p7870_p3  ;;  %p7922_p2 = scmp.lt.s32.totalorder %s7920_s6, %s7913_s7 }
  0x45   : > { %p7917_p6 = pneg %p7916_p1  ;;  %p7923_p5 = por %p7922_p2, %p7921_p8 }
  0x47   : > { %p7924_p4 = pnand %p7923_p5, %p7917_p6 }
  0x49   : > { %7927 = shalt.err (!%p7924_p4)
}
  0x4a   : > { %7744 = dma.hbm_to_vmem [thread:$0]  (!%p8117_p0), %s8165_s19, 8192, %s8167_s26, %s158_s30, %s8017_s29, %s8017_s29, %s8018_s3  }
  0x4b   : > { %181 = sbr.rel (%p8158_p12) target bundleno = 607 (0x25f), region = 28  ;;  %s8201_s4 = sand.u32 (!%p8158_p12), 1, %s7998_s10  }
  0x4c   : > { %s7721_s27 = sshll.u32 (!%p8158_p12), %s8201_s4, 12  ;;  %s184_s5 = scalar_lea.sflag (!%p8158_p12), [#allocation3], %s8201_s4 }
  0x4d   : > { %s8207_s28 = scalar_lea.vmem (!%p8158_p12), [#allocation2], %s7721_s27  ;;  %p10559_p8 = scmp.ne.s32.totalorder (!%p8158_p12), %s10553_s21, 0 }
  0x52   : > { %7981 = dma.done.wait (%p10559_p8), %s184_s5, 65536  }
  0x53   : > { %7983 = vsyncadd (%p10559_p8), %s184_s5, 4294901760  ;;  %s7722_s25 = sshll.u32 %s8201_s4, 9  ;;  %s193_s29 = scalar_lea.sflag [#allocation6], %s8201_s4 }
  0x54   : > { %s8215_s3 = scalar_lea.vmem [#allocation5], %s7722_s25 }
  0x55   : > { %7985 = dma.done.wait (%p10559_p8), %s193_s29, 8192  }
  0x56   : > { %7987 = vsyncadd (%p10559_p8), %s193_s29, 4294959104  ;;  %v357_v0 = vlaneseq  ;;  %v8020_v1 = vmov 1966171168   ;;  %v225_v6 = vld [vmem:[%s8215_s3] sm:$0xff]  ;;  %v226_v13 = vld [vmem:[%s8215_s3 + $0x8] sm:$0xff]  ;;  %s8249_s21 = scalar_lea.vmem [#allocation7], %s7721_s27 }
  0x57   : > { %v355_v2 = vunpack.c.l.s4 %v8020_v1  ;;  %v353_v9 = vcombine.high %v225_v6, %v225_v6  ;;  %v3489_v14 = vld [vmem:[%s8207_s28] sm:$0xff]  ;;  %v402_v16 = vcombine.high %v226_v13, %v226_v13  ;;  %v3490_v21 = vld [vmem:[%s8207_s28 + $0x8] sm:$0xff]  ;;  %v3491_v22 = vld [vmem:[%s8207_s28 + $0x10] sm:$0xff]  ;;  %s7731_s15 = sshll.u32 %s8006_s12, 16  ;;  %s7600_s19 = sshll.u32 %s8249_s21, 4  ;;  %s10495_s19 = int_to_ptr.vmem [resolvable:$true] %s7600_s19 }
  0x58   : > { %v358_v3 = vshrl.u32 %v357_v0, 7  ;;  %v3493_v31 = vld [vmem:[%s8207_s28 + $0x20] sm:$0xff]  ;;  %v3492_v32 = vld [vmem:[%s8207_s28 + $0x18] sm:$0xff]  ;;  %v3494_v41 = vld [vmem:[%s8207_s28 + $0x28] sm:$0xff]  ;;  %s10493_s8 = scalar_lea.hbm %s10549_s2, %s7731_s15  ;;  %s7586_s12 = scalar_lea.sflag [#allocation4], %s8201_s4 }
  0x59   : > { %v356_v4 = vunpack.c.0.s8 %v355_v2  ;;  %v3497_v36 = vld [vmem:[%s8207_s28 + $0x40] sm:$0xff]  ;;  %v3495_v42 = vld [vmem:[%s8207_s28 + $0x30] sm:$0xff]  ;;  %v3498_v48 = vld [vmem:[%s8207_s28 + $0x48] sm:$0xff]  ;;  %s7928_s16 = scalar_lea.vmem %s10495_s19, 65536  ;;  %p10560_p3 = scmp.ne.s32.totalorder %s10554_s22, 0 }
  0x5a   : > { %v8225_v8 = vsub.s32 0, %v358_v3  ;;  %v3496_v50 = vld [vmem:[%s8207_s28 + $0x38] sm:$0xff]  ;;  %v227_v54 = vld [vmem:[%s8215_s3 + $0x10] sm:$0xff]  ;;  %p7929_p0 = scmp.ne.s32.totalorder %s10495_s19, %s7928_s16  ;;  %s8021_s7 = smov [#allocation7]  }
  0x5b   : > { %v8221_v5 = vsub.s32 %v356_v4, %v358_v3  ;;  %v3499_v58 = vld [vmem:[%s8207_s28 + $0x50] sm:$0xff]  ;;  %v3500_v62 = vld [vmem:[%s8207_s28 + $0x58] sm:$0xff]  ;;  %v3501_v3 = vld [vmem:[%s8207_s28 + $0x60] sm:$0xff]  ;;  %s7932_s18 = sshll.u32 %s8021_s7, 4  ;;  %s7933_s18 = int_to_ptr.vmem [resolvable:$false] %s7932_s18 }
  0x5c   : > { %p7930_p12 = pnand %p7929_p0, %p10560_p3  ;;  %s7934_s20 = scalar_lea.vmem %s7933_s18, 131072 }
  0x5d   : > { %v360_v7 = vrot.slane %v225_v6, %v8221_v5  ;;  %v367_v12 = vrot.slane %v353_v9, %v8221_v5  ;;  %v409_v15 = vrot.slane %v226_v13, %v8221_v5  ;;  %v416_v26 = vrot.slane %v402_v16, %v8221_v5  ;;  %v3502_v13 = vld [vmem:[%s8207_s28 + $0x68] sm:$0xff]  ;;  %p7935_p7 = scmp.lt.s32.totalorder %s10495_s19, %s7933_s18  ;;  %p7936_p10 = scmp.lt.s32.totalorder %s7934_s20, %s7928_s16 }
  0x5e   : > { %v458_v4 = vrot.slane %v227_v54, %v8221_v5  ;;  %v451_v6 = vcombine.high %v227_v54, %v227_v54  ;;  %p7931_p13 = pneg %p7930_p12 }
  0x5f   : > { %v376_v10 = vrot.slane %v360_v7, %v8221_v5  ;;  %v368_v11 = vcombine.high %v360_v7, %v360_v7  ;;  %v383_v20 = vrot.slane %v367_v12, %v8221_v5  ;;  %v369_v23 = vcombine.high %v367_v12, %v367_v12  ;;  %p7937_p9 = por %p7936_p10, %p7935_p7 }
  0x60   : > { %v425_v24 = vrot.slane %v409_v15, %v8221_v5  ;;  %v417_v25 = vcombine.high %v409_v15, %v409_v15  ;;  %v432_v63 = vrot.slane %v416_v26, %v8221_v5  ;;  %v418_v0 = vcombine.high %v416_v26, %v416_v26 }
  0x61   : > { %v4004_v17 = vrot.slane %v376_v10, %v8225_v8  ;;  %v390_v18 = vrot.slane %v368_v11, %v8221_v5  ;;  %v398_v19 = vcombine.high %v376_v10, %v376_v10  ;;  %v4020_v33 = vrot.slane %v383_v20, %v8225_v8  ;;  %p7938_p11 = pnand %p7937_p9, %p7931_p13 }
  0x62   : > { %v397_v34 = vrot.slane %v369_v23, %v8221_v5  ;;  %v399_v35 = vcombine.high %v383_v20, %v383_v20  ;;  %v4036_v37 = vrot.slane %v425_v24, %v8225_v8  ;;  %v439_v43 = vrot.slane %v417_v25, %v8221_v5  ;;  %v3504_v23 = vld [vmem:[%s8207_s28 + $0x78] sm:$0xff] }
  0x63   : > { %v6561_v27 = vadd.f32 %v4004_v17, %v3489_v14  ;;  %v4008_v28 = vrot.slane %v390_v18, %v8225_v8  ;;  %v4012_v29 = vrot.slane %v398_v19, %v8225_v8  ;;  %v400_v30 = vcombine.high %v390_v18, %v390_v18  ;;  %v3503_v14 = vld [vmem:[%s8207_s28 + $0x70] sm:$0xff] }
  0x64   : > { %v6565_v44 = vadd.f32 %v4020_v33, %v3493_v31  ;;  %v4024_v45 = vrot.slane %v397_v34, %v8225_v8  ;;  %v4028_v46 = vrot.slane %v399_v35, %v8225_v8  ;;  %v401_v47 = vcombine.high %v397_v34, %v397_v34  ;;  %v3506_v31 = vld [vmem:[%s8207_s28 + $0x88] sm:$0xff] }
  0x65   : > { %7073 = vst [vmem:[%s8249_s21] sm:$0xff] %v6561_v27  ;;  %v6562_v38 = vadd.f32 %v4008_v28, %v3490_v21  ;;  %v6563_v39 = vadd.f32 %v4012_v29, %v3491_v22  ;;  %v4016_v40 = vrot.slane %v400_v30, %v8225_v8  ;;  %v6569_v51 = vadd.f32 %v4036_v37, %v3497_v36  ;;  %v3505_v22 = vld [vmem:[%s8207_s28 + $0x80] sm:$0xff] }
  0x66   : > { %v4040_v52 = vrot.slane %v439_v43, %v8225_v8  ;;  %v447_v53 = vcombine.high %v425_v24, %v425_v24  ;;  %7077 = vst [vmem:[%s8249_s21 + $0x20] sm:$0xff] %v6565_v44  ;;  %v6566_v55 = vadd.f32 %v4024_v45, %v3494_v41  ;;  %v6567_v56 = vadd.f32 %v4028_v46, %v3495_v42  ;;  %v228_v44 = vld [vmem:[%s8215_s3 + $0x18] sm:$0xff] }
  0x67   : > { %7074 = vst [vmem:[%s8249_s21 + $0x8] sm:$0xff] %v6562_v38  ;;  %7075 = vst [vmem:[%s8249_s21 + $0x10] sm:$0xff] %v6563_v39  ;;  %v6564_v49 = vadd.f32 %v4016_v40, %v3492_v32  ;;  %v4032_v57 = vrot.slane %v401_v47, %v8225_v8  ;;  %v449_v59 = vcombine.high %v439_v43, %v439_v43  ;;  %v3507_v32 = vld [vmem:[%s8207_s28 + $0x90] sm:$0xff]  ;;  %v3509_v38 = vld [vmem:[%s8207_s28 + $0xa0] sm:$0xff] }
  0x68   : > { %7081 = vst [vmem:[%s8249_s21 + $0x40] sm:$0xff] %v6569_v51  ;;  %v6570_v60 = vadd.f32 %v4040_v52, %v3498_v48  ;;  %v4044_v61 = vrot.slane %v447_v53, %v8225_v8  ;;  %7078 = vst [vmem:[%s8249_s21 + $0x28] sm:$0xff] %v6566_v55  ;;  %v4052_v9 = vrot.slane %v432_v63, %v8225_v8  ;;  %v3508_v40 = vld [vmem:[%s8207_s28 + $0x98] sm:$0xff]  ;;  %v3510_v48 = vld [vmem:[%s8207_s28 + $0xa8] sm:$0xff] }
  0x69   : > { %7076 = vst [vmem:[%s8249_s21 + $0x18] sm:$0xff] %v6564_v49  ;;  %7079 = vst [vmem:[%s8249_s21 + $0x30] sm:$0xff] %v6567_v56  ;;  %v6568_v1 = vadd.f32 %v4032_v57, %v3496_v50  ;;  %v4048_v2 = vrot.slane %v449_v59, %v8225_v8  ;;  %v446_v10 = vrot.slane %v418_v0, %v8221_v5  ;;  %v3511_v49 = vld [vmem:[%s8207_s28 + $0xb0] sm:$0xff]  ;;  %v3512_v56 = vld [vmem:[%s8207_s28 + $0xb8] sm:$0xff] }
  0x6a   : > { %7082 = vst [vmem:[%s8249_s21 + $0x48] sm:$0xff] %v6570_v60  ;;  %v6571_v7 = vadd.f32 %v4044_v61, %v3499_v58  ;;  %v448_v11 = vcombine.high %v432_v63, %v432_v63  ;;  %v474_v15 = vrot.slane %v458_v4, %v8221_v5  ;;  %v466_v16 = vcombine.high %v458_v4, %v458_v4  ;;  %v8320_v60 = vld [vmem:[%s8215_s3 + $0x20] sm:$0xff] }
  0x6b   : > { %7080 = vst [vmem:[%s8249_s21 + $0x38] sm:$0xff] %v6568_v1  ;;  %v6572_v12 = vadd.f32 %v4048_v2, %v3500_v62  ;;  %v465_v17 = vrot.slane %v451_v6, %v8221_v5  ;;  %v6573_v18 = vadd.f32 %v4052_v9, %v3501_v3  ;;  %v4056_v19 = vrot.slane %v446_v10, %v8225_v8  ;;  %v3513_v0 = vld [vmem:[%s8207_s28 + $0xc0] sm:$0xff]  ;;  %v3514_v9 = vld [vmem:[%s8207_s28 + $0xc8] sm:$0xff] }
  0x6c   : > { %7083 = vst [vmem:[%s8249_s21 + $0x50] sm:$0xff] %v6571_v7  ;;  %v4060_v20 = vrot.slane %v448_v11, %v8225_v8  ;;  %v450_v21 = vcombine.high %v446_v10, %v446_v10  ;;  %v4068_v24 = vrot.slane %v474_v15, %v8225_v8  ;;  %v488_v25 = vrot.slane %v466_v16, %v8221_v5  ;;  %v3515_v10 = vld [vmem:[%s8207_s28 + $0xd0] sm:$0xff] }
  0x6d   : > { %7084 = vst [vmem:[%s8249_s21 + $0x58] sm:$0xff] %v6572_v12  ;;  %v496_v26 = vcombine.high %v474_v15, %v474_v15  ;;  %v481_v27 = vrot.slane %v465_v17, %v8221_v5  ;;  %7085 = vst [vmem:[%s8249_s21 + $0x60] sm:$0xff] %v6573_v18  ;;  %v6574_v28 = vadd.f32 %v4056_v19, %v3502_v13  ;;  %v3521_v18 = vld [vmem:[%s8207_s28 + $0x100] sm:$0xff]  ;;  %v3516_v19 = vld [vmem:[%s8207_s28 + $0xd8] sm:$0xff] }
  0x6e   : > { %v6575_v29 = vadd.f32 %v4060_v20, %v3503_v14  ;;  %v4064_v30 = vrot.slane %v450_v21, %v8225_v8  ;;  %v467_v33 = vcombine.high %v465_v17, %v465_v17  ;;  %v6577_v34 = vadd.f32 %v4068_v24, %v3505_v22 }
  0x6f   : > { %v4072_v35 = vrot.slane %v488_v25, %v8225_v8  ;;  %v4076_v36 = vrot.slane %v496_v26, %v8225_v8  ;;  %v498_v37 = vcombine.high %v488_v25, %v488_v25  ;;  %7086 = vst [vmem:[%s8249_s21 + $0x68] sm:$0xff] %v6574_v28  ;;  %v4084_v41 = vrot.slane %v481_v27, %v8225_v8 }
  0x70   : > { %7087 = vst [vmem:[%s8249_s21 + $0x70] sm:$0xff] %v6575_v29  ;;  %v6576_v39 = vadd.f32 %v4064_v30, %v3504_v23  ;;  %v495_v42 = vrot.slane %v467_v33, %v8221_v5  ;;  %v497_v43 = vcombine.high %v481_v27, %v481_v27  ;;  %7089 = vst [vmem:[%s8249_s21 + $0x80] sm:$0xff] %v6577_v34  ;;  %v3517_v27 = vld [vmem:[%s8207_s28 + $0xe0] sm:$0xff]  ;;  %v3522_v33 = vld [vmem:[%s8207_s28 + $0x108] sm:$0xff] }
  0x71   : > { %v6578_v45 = vadd.f32 %v4072_v35, %v3506_v31  ;;  %v6579_v46 = vadd.f32 %v4076_v36, %v3507_v32  ;;  %v4080_v47 = vrot.slane %v498_v37, %v8225_v8  ;;  %v507_v50 = vrot.slane %v228_v44, %v8221_v5  ;;  %v3523_v34 = vld [vmem:[%s8207_s28 + $0x110] sm:$0xff]  ;;  %v3518_v36 = vld [vmem:[%s8207_s28 + $0xe8] sm:$0xff] }
  0x72   : > { %7088 = vst [vmem:[%s8249_s21 + $0x78] sm:$0xff] %v6576_v39  ;;  %v6581_v51 = vadd.f32 %v4084_v41, %v3509_v38  ;;  %v4088_v52 = vrot.slane %v495_v42, %v8225_v8  ;;  %v4092_v53 = vrot.slane %v497_v43, %v8225_v8  ;;  %v499_v54 = vcombine.high %v495_v42, %v495_v42  ;;  %v3519_v37 = vld [vmem:[%s8207_s28 + $0xf0] sm:$0xff] }
  0x73   : > { %7090 = vst [vmem:[%s8249_s21 + $0x88] sm:$0xff] %v6578_v45  ;;  %7091 = vst [vmem:[%s8249_s21 + $0x90] sm:$0xff] %v6579_v46  ;;  %v6580_v55 = vadd.f32 %v4080_v47, %v3508_v40  ;;  %v523_v57 = vrot.slane %v507_v50, %v8221_v5  ;;  %v515_v58 = vcombine.high %v507_v50, %v507_v50  ;;  %v3524_v45 = vld [vmem:[%s8207_s28 + $0x118] sm:$0xff]  ;;  %v230_v46 = vld [vmem:[%s8215_s3 + $0x28] sm:$0xff] }
  0x74   : > { %v500_v59 = vcombine.high %v228_v44, %v228_v44  ;;  %7093 = vst [vmem:[%s8249_s21 + $0xa0] sm:$0xff] %v6581_v51  ;;  %v6582_v61 = vadd.f32 %v4088_v52, %v3510_v48  ;;  %v6583_v62 = vadd.f32 %v4092_v53, %v3511_v49  ;;  %v4096_v63 = vrot.slane %v499_v54, %v8225_v8  ;;  %v3520_v47 = vld [vmem:[%s8207_s28 + $0xf8] sm:$0xff] }
  0x75   : > { %v556_v1 = vrot.slane %v8320_v60, %v8221_v5  ;;  %7092 = vst [vmem:[%s8249_s21 + $0x98] sm:$0xff] %v6580_v55  ;;  %v4100_v2 = vrot.slane %v523_v57, %v8225_v8  ;;  %v537_v3 = vrot.slane %v515_v58, %v8221_v5  ;;  %v545_v4 = vcombine.high %v523_v57, %v523_v57 }
  0x76   : > { %v514_v6 = vrot.slane %v500_v59, %v8221_v5  ;;  %7094 = vst [vmem:[%s8249_s21 + $0xa8] sm:$0xff] %v6582_v61  ;;  %7095 = vst [vmem:[%s8249_s21 + $0xb0] sm:$0xff] %v6583_v62  ;;  %v6584_v7 = vadd.f32 %v4096_v63, %v3512_v56  ;;  %v549_v13 = vcombine.high %v8320_v60, %v8320_v60  ;;  %v8375_v60 = vld [vmem:[%s8215_s3 + $0x30] sm:$0xff]  ;;  %v3525_v62 = vld [vmem:[%s8207_s28 + $0x120] sm:$0xff] }
  0x77   : > { %v572_v11 = vrot.slane %v556_v1, %v8221_v5  ;;  %v564_v12 = vcombine.high %v556_v1, %v556_v1  ;;  %v6585_v14 = vadd.f32 %v4100_v2, %v3513_v0  ;;  %v4104_v15 = vrot.slane %v537_v3, %v8225_v8 }
  0x78   : > { %v4108_v16 = vrot.slane %v545_v4, %v8225_v8  ;;  %v547_v17 = vcombine.high %v537_v3, %v537_v3  ;;  %7096 = vst [vmem:[%s8249_s21 + $0xb8] sm:$0xff] %v6584_v7  ;;  %v530_v20 = vrot.slane %v514_v6, %v8221_v5  ;;  %v516_v21 = vcombine.high %v514_v6, %v514_v6  ;;  %v3529_v6 = vld [vmem:[%s8207_s28 + $0x140] sm:$0xff] }
  0x79   : > { %v4132_v22 = vrot.slane %v572_v11, %v8225_v8  ;;  %v586_v23 = vrot.slane %v564_v12, %v8221_v5  ;;  %7097 = vst [vmem:[%s8249_s21 + $0xc0] sm:$0xff] %v6585_v14  ;;  %v6586_v24 = vadd.f32 %v4104_v15, %v3514_v9  ;;  %v594_v28 = vcombine.high %v572_v11, %v572_v11  ;;  %v3526_v9 = vld [vmem:[%s8207_s28 + $0x128] sm:$0xff] }
  0x7a   : > { %v6587_v25 = vadd.f32 %v4108_v16, %v3515_v10  ;;  %v4112_v26 = vrot.slane %v547_v17, %v8225_v8  ;;  %v4116_v29 = vrot.slane %v530_v20, %v8225_v8  ;;  %v544_v30 = vrot.slane %v516_v21, %v8221_v5  ;;  %v3527_v10 = vld [vmem:[%s8207_s28 + $0x130] sm:$0xff]  ;;  %v3528_v21 = vld [vmem:[%s8207_s28 + $0x138] sm:$0xff] }
  0x7b   : > { %v546_v31 = vcombine.high %v530_v20, %v530_v20  ;;  %v6593_v32 = vadd.f32 %v4132_v22, %v3521_v18  ;;  %7098 = vst [vmem:[%s8249_s21 + $0xc8] sm:$0xff] %v6586_v24  ;;  %v4136_v38 = vrot.slane %v586_v23, %v8225_v8  ;;  %v4140_v39 = vrot.slane %v594_v28, %v8225_v8  ;;  %v3531_v20 = vld [vmem:[%s8207_s28 + $0x150] sm:$0xff] }
  0x7c   : > { %7099 = vst [vmem:[%s8249_s21 + $0xd0] sm:$0xff] %v6587_v25  ;;  %v6588_v35 = vadd.f32 %v4112_v26, %v3516_v19  ;;  %v596_v40 = vcombine.high %v586_v23, %v586_v23  ;;  %v6589_v41 = vadd.f32 %v4116_v29, %v3517_v27  ;;  %v4120_v42 = vrot.slane %v544_v30, %v8225_v8  ;;  %v3530_v19 = vld [vmem:[%s8207_s28 + $0x148] sm:$0xff]  ;;  %v3532_v29 = vld [vmem:[%s8207_s28 + $0x158] sm:$0xff] }
  0x7d   : > { %v4124_v43 = vrot.slane %v546_v31, %v8225_v8  ;;  %v548_v44 = vcombine.high %v544_v30, %v544_v30  ;;  %7105 = vst [vmem:[%s8249_s21 + $0x100] sm:$0xff] %v6593_v32  ;;  %v6594_v48 = vadd.f32 %v4136_v38, %v3522_v33  ;;  %v6595_v49 = vadd.f32 %v4140_v39, %v3523_v34  ;;  %v3533_v34 = vld [vmem:[%s8207_s28 + $0x160] sm:$0xff] }
  0x7e   : > { %7100 = vst [vmem:[%s8249_s21 + $0xd8] sm:$0xff] %v6588_v35  ;;  %v4144_v50 = vrot.slane %v596_v40, %v8225_v8  ;;  %v563_v51 = vrot.slane %v549_v13, %v8221_v5  ;;  %7101 = vst [vmem:[%s8249_s21 + $0xe0] sm:$0xff] %v6589_v41  ;;  %v6590_v52 = vadd.f32 %v4120_v42, %v3518_v36  ;;  %v3537_v36 = vld [vmem:[%s8207_s28 + $0x180] sm:$0xff] }
  0x7f   : > { %v6591_v53 = vadd.f32 %v4124_v43, %v3519_v37  ;;  %v4128_v54 = vrot.slane %v548_v44, %v8225_v8  ;;  %v605_v55 = vrot.slane %v230_v46, %v8221_v5  ;;  %7106 = vst [vmem:[%s8249_s21 + $0x108] sm:$0xff] %v6594_v48  ;;  %7107 = vst [vmem:[%s8249_s21 + $0x110] sm:$0xff] %v6595_v49  ;;  %v3535_v43 = vld [vmem:[%s8207_s28 + $0x170] sm:$0xff]  ;;  %v3534_v48 = vld [vmem:[%s8207_s28 + $0x168] sm:$0xff] }
  0x80   : > { %v6596_v56 = vadd.f32 %v4144_v50, %v3524_v45  ;;  %v579_v57 = vrot.slane %v563_v51, %v8221_v5  ;;  %v565_v58 = vcombine.high %v563_v51, %v563_v51  ;;  %v598_v59 = vcombine.high %v230_v46, %v230_v46  ;;  %7102 = vst [vmem:[%s8249_s21 + $0xe8] sm:$0xff] %v6590_v52  ;;  %v232_v46 = vld [vmem:[%s8215_s3 + $0x38] sm:$0xff]  ;;  %v3539_v51 = vld [vmem:[%s8207_s28 + $0x190] sm:$0xff] }
  0x81   : > { %7103 = vst [vmem:[%s8249_s21 + $0xf0] sm:$0xff] %v6591_v53  ;;  %v6592_v61 = vadd.f32 %v4128_v54, %v3520_v47  ;;  %v621_v63 = vrot.slane %v605_v55, %v8221_v5  ;;  %v613_v0 = vcombine.high %v605_v55, %v605_v55  ;;  %v8383_v1 = vrot.slane %v8375_v60, %v8221_v5 }
  0x82   : > { %7108 = vst [vmem:[%s8249_s21 + $0x118] sm:$0xff] %v6596_v56  ;;  %v4148_v2 = vrot.slane %v579_v57, %v8225_v8  ;;  %v593_v3 = vrot.slane %v565_v58, %v8221_v5  ;;  %v595_v4 = vcombine.high %v579_v57, %v579_v57  ;;  %v612_v7 = vrot.slane %v598_v59, %v8221_v5  ;;  %v3536_v58 = vld [vmem:[%s8207_s28 + $0x178] sm:$0xff]  ;;  %v3538_v59 = vld [vmem:[%s8207_s28 + $0x188] sm:$0xff] }
  0x83   : > { %7104 = vst [vmem:[%s8249_s21 + $0xf8] sm:$0xff] %v6592_v61  ;;  %v4164_v11 = vrot.slane %v621_v63, %v8225_v8  ;;  %v635_v12 = vrot.slane %v613_v0, %v8221_v5  ;;  %v643_v13 = vcombine.high %v621_v63, %v621_v63  ;;  %v670_v14 = vrot.slane %v8383_v1, %v8221_v5 }
  0x84   : > { %v6597_v15 = vadd.f32 %v4148_v2, %v3525_v62  ;;  %v4152_v16 = vrot.slane %v593_v3, %v8225_v8  ;;  %v4156_v17 = vrot.slane %v595_v4, %v8225_v8  ;;  %v597_v18 = vcombine.high %v593_v3, %v593_v3 }
  0x85   : > { %v6601_v22 = vadd.f32 %v4164_v11, %v3529_v6  ;;  %v4168_v23 = vrot.slane %v635_v12, %v8225_v8  ;;  %v4172_v24 = vrot.slane %v643_v13, %v8225_v8  ;;  %v645_v25 = vcombine.high %v635_v12, %v635_v12  ;;  %v3540_v11 = vld [vmem:[%s8207_s28 + $0x198] sm:$0xff]  ;;  %v3541_v12 = vld [vmem:[%s8207_s28 + $0x1a0] sm:$0xff] }
  0x86   : > { %7109 = vst [vmem:[%s8249_s21 + $0x120] sm:$0xff] %v6597_v15  ;;  %v6598_v26 = vadd.f32 %v4152_v16, %v3526_v9  ;;  %v6599_v27 = vadd.f32 %v4156_v17, %v3527_v10  ;;  %v4160_v28 = vrot.slane %v597_v18, %v8225_v8  ;;  %v628_v30 = vrot.slane %v612_v7, %v8221_v5 }
  0x87   : > { %7113 = vst [vmem:[%s8249_s21 + $0x140] sm:$0xff] %v6601_v22  ;;  %v6602_v31 = vadd.f32 %v4168_v23, %v3530_v19  ;;  %v6603_v32 = vadd.f32 %v4172_v24, %v3531_v20  ;;  %v4176_v33 = vrot.slane %v645_v25, %v8225_v8  ;;  %v614_v35 = vcombine.high %v612_v7, %v612_v7  ;;  %v3545_v19 = vld [vmem:[%s8207_s28 + $0x1c0] sm:$0xff]  ;;  %v3542_v20 = vld [vmem:[%s8207_s28 + $0x1a8] sm:$0xff] }
  0x88   : > { %7110 = vst [vmem:[%s8249_s21 + $0x128] sm:$0xff] %v6598_v26  ;;  %7111 = vst [vmem:[%s8249_s21 + $0x130] sm:$0xff] %v6599_v27  ;;  %v6600_v37 = vadd.f32 %v4160_v28, %v3528_v21  ;;  %v4180_v38 = vrot.slane %v628_v30, %v8225_v8  ;;  %v644_v39 = vcombine.high %v628_v30, %v628_v30  ;;  %v3543_v21 = vld [vmem:[%s8207_s28 + $0x1b0] sm:$0xff]  ;;  %v3546_v30 = vld [vmem:[%s8207_s28 + $0x1c8] sm:$0xff] }
  0x89   : > { %v4196_v40 = vrot.slane %v670_v14, %v8225_v8  ;;  %7114 = vst [vmem:[%s8249_s21 + $0x148] sm:$0xff] %v6602_v31  ;;  %7115 = vst [vmem:[%s8249_s21 + $0x150] sm:$0xff] %v6603_v32  ;;  %v6604_v41 = vadd.f32 %v4176_v33, %v3532_v29  ;;  %v642_v42 = vrot.slane %v614_v35, %v8221_v5  ;;  %v3547_v31 = vld [vmem:[%s8207_s28 + $0x1d0] sm:$0xff] }
  0x8a   : > { %v662_v44 = vcombine.high %v8383_v1, %v8383_v1  ;;  %v692_v45 = vcombine.high %v670_v14, %v670_v14  ;;  %7112 = vst [vmem:[%s8249_s21 + $0x138] sm:$0xff] %v6600_v37  ;;  %v6605_v47 = vadd.f32 %v4180_v38, %v3533_v34  ;;  %v4188_v49 = vrot.slane %v644_v39, %v8225_v8  ;;  %v3544_v39 = vld [vmem:[%s8207_s28 + $0x1b8] sm:$0xff] }
  0x8b   : > { %v6609_v50 = vadd.f32 %v4196_v40, %v3537_v36  ;;  %v647_v52 = vcombine.high %v8375_v60, %v8375_v60  ;;  %7116 = vst [vmem:[%s8249_s21 + $0x158] sm:$0xff] %v6604_v41  ;;  %v4184_v53 = vrot.slane %v642_v42, %v8225_v8  ;;  %v646_v54 = vcombine.high %v642_v42, %v642_v42  ;;  %v3549_v36 = vld [vmem:[%s8207_s28 + $0x1e0] sm:$0xff] }
  0x8c   : > { %v684_v55 = vrot.slane %v662_v44, %v8221_v5  ;;  %v4204_v56 = vrot.slane %v692_v45, %v8225_v8  ;;  %7117 = vst [vmem:[%s8249_s21 + $0x160] sm:$0xff] %v6605_v47  ;;  %v6607_v57 = vadd.f32 %v4188_v49, %v3535_v43  ;;  %v703_v60 = vrot.slane %v232_v46, %v8221_v5  ;;  %v233_v42 = vld [vmem:[%s8215_s3 + $0x40] sm:$0xff] }
  0x8d   : > { %7121 = vst [vmem:[%s8249_s21 + $0x180] sm:$0xff] %v6609_v50  ;;  %v661_v61 = vrot.slane %v647_v52, %v8221_v5  ;;  %v696_v62 = vcombine.high %v232_v46, %v232_v46  ;;  %v6606_v63 = vadd.f32 %v4184_v53, %v3534_v48  ;;  %v4192_v0 = vrot.slane %v646_v54, %v8225_v8  ;;  %v3548_v46 = vld [vmem:[%s8207_s28 + $0x1d8] sm:$0xff]  ;;  %v8480_v52 = vld [vmem:[%s8215_s3 + $0x48] sm:$0xff] }
  0x8e   : > { %v4200_v1 = vrot.slane %v684_v55, %v8225_v8  ;;  %v6611_v2 = vadd.f32 %v4204_v56, %v3539_v51  ;;  %7119 = vst [vmem:[%s8249_s21 + $0x170] sm:$0xff] %v6607_v57  ;;  %v694_v3 = vcombine.high %v684_v55, %v684_v55  ;;  %v719_v7 = vrot.slane %v703_v60, %v8221_v5  ;;  %v3551_v55 = vld [vmem:[%s8207_s28 + $0x1f0] sm:$0xff] }
  0x8f   : > { %v677_v4 = vrot.slane %v661_v61, %v8221_v5  ;;  %v663_v6 = vcombine.high %v661_v61, %v661_v61  ;;  %7118 = vst [vmem:[%s8249_s21 + $0x168] sm:$0xff] %v6606_v63  ;;  %v6608_v9 = vadd.f32 %v4192_v0, %v3536_v58  ;;  %v711_v13 = vcombine.high %v703_v60, %v703_v60 }
  0x90   : > { %v6610_v10 = vadd.f32 %v4200_v1, %v3538_v59  ;;  %7123 = vst [vmem:[%s8249_s21 + $0x190] sm:$0xff] %v6611_v2  ;;  %v710_v14 = vrot.slane %v696_v62, %v8221_v5  ;;  %v4208_v15 = vrot.slane %v694_v3, %v8225_v8  ;;  %v4228_v22 = vrot.slane %v719_v7, %v8225_v8  ;;  %v3550_v59 = vld [vmem:[%s8207_s28 + $0x1e8] sm:$0xff]  ;;  %v3553_v1 = vld [vmem:[%s8207_s28 + $0x200] sm:$0xff] }
  0x91   : > { %v4212_v16 = vrot.slane %v677_v4, %v8225_v8  ;;  %v691_v17 = vrot.slane %v663_v6, %v8221_v5  ;;  %v693_v18 = vcombine.high %v677_v4, %v677_v4  ;;  %7120 = vst [vmem:[%s8249_s21 + $0x178] sm:$0xff] %v6608_v9  ;;  %v733_v23 = vrot.slane %v711_v13, %v8221_v5  ;;  %v3552_v6 = vld [vmem:[%s8207_s28 + $0x1f8] sm:$0xff]  ;;  %v3554_v13 = vld [vmem:[%s8207_s28 + $0x208] sm:$0xff] }
  0x92   : > { %7122 = vst [vmem:[%s8249_s21 + $0x188] sm:$0xff] %v6610_v10  ;;  %v741_v24 = vcombine.high %v719_v7, %v719_v7  ;;  %v726_v25 = vrot.slane %v710_v14, %v8221_v5  ;;  %v6612_v26 = vadd.f32 %v4208_v15, %v3540_v11  ;;  %v6617_v33 = vadd.f32 %v4228_v22, %v3545_v19 }
  0x93   : > { %v6613_v27 = vadd.f32 %v4212_v16, %v3541_v12  ;;  %v4216_v28 = vrot.slane %v691_v17, %v8225_v8  ;;  %v4220_v29 = vrot.slane %v693_v18, %v8225_v8  ;;  %v695_v32 = vcombine.high %v691_v17, %v691_v17 }
  0x94   : > { %v4232_v34 = vrot.slane %v733_v23, %v8225_v8  ;;  %v4236_v35 = vrot.slane %v741_v24, %v8225_v8  ;;  %7124 = vst [vmem:[%s8249_s21 + $0x198] sm:$0xff] %v6612_v26  ;;  %v743_v40 = vcombine.high %v733_v23, %v733_v23  ;;  %v4244_v41 = vrot.slane %v726_v25, %v8225_v8  ;;  %v3556_v23 = vld [vmem:[%s8207_s28 + $0x218] sm:$0xff] }
  0x95   : > { %7125 = vst [vmem:[%s8249_s21 + $0x1a0] sm:$0xff] %v6613_v27  ;;  %v6614_v37 = vadd.f32 %v4216_v28, %v3542_v20  ;;  %v6615_v38 = vadd.f32 %v4220_v29, %v3543_v21  ;;  %v4224_v43 = vrot.slane %v695_v32, %v8225_v8  ;;  %7129 = vst [vmem:[%s8249_s21 + $0x1c0] sm:$0xff] %v6617_v33  ;;  %v3557_v21 = vld [vmem:[%s8207_s28 + $0x220] sm:$0xff]  ;;  %v3559_v32 = vld [vmem:[%s8207_s28 + $0x230] sm:$0xff] }
  0x96   : > { %v6618_v44 = vadd.f32 %v4232_v34, %v3546_v30  ;;  %v6619_v45 = vadd.f32 %v4236_v35, %v3547_v31  ;;  %v712_v47 = vcombine.high %v710_v14, %v710_v14  ;;  %v4240_v48 = vrot.slane %v743_v40, %v8225_v8  ;;  %v3555_v14 = vld [vmem:[%s8207_s28 + $0x210] sm:$0xff]  ;;  %v3561_v27 = vld [vmem:[%s8207_s28 + $0x240] sm:$0xff]  ;;  %v3558_v31 = vld [vmem:[%s8207_s28 + $0x228] sm:$0xff] }
  0x97   : > { %7126 = vst [vmem:[%s8249_s21 + $0x1a8] sm:$0xff] %v6614_v37  ;;  %7127 = vst [vmem:[%s8249_s21 + $0x1b0] sm:$0xff] %v6615_v38  ;;  %v6621_v49 = vadd.f32 %v4244_v41, %v3549_v36  ;;  %v742_v50 = vcombine.high %v726_v25, %v726_v25  ;;  %v752_v51 = vrot.slane %v233_v42, %v8221_v5  ;;  %v235_v38 = vld [vmem:[%s8215_s3 + $0x50] sm:$0xff]  ;;  %v3560_v40 = vld [vmem:[%s8207_s28 + $0x238] sm:$0xff] }
  0x98   : > { %v6616_v53 = vadd.f32 %v4224_v43, %v3544_v39  ;;  %7130 = vst [vmem:[%s8249_s21 + $0x1c8] sm:$0xff] %v6618_v44  ;;  %7131 = vst [vmem:[%s8249_s21 + $0x1d0] sm:$0xff] %v6619_v45  ;;  %v740_v54 = vrot.slane %v712_v47, %v8221_v5  ;;  %v745_v56 = vcombine.high %v233_v42, %v233_v42  ;;  %v8532_v44 = vld [vmem:[%s8215_s3 + $0x58] sm:$0xff] }
  0x99   : > { %v8488_v57 = vrot.slane %v8480_v52, %v8221_v5  ;;  %v6620_v58 = vadd.f32 %v4240_v48, %v3548_v46  ;;  %7133 = vst [vmem:[%s8249_s21 + $0x1e0] sm:$0xff] %v6621_v49  ;;  %v4252_v61 = vrot.slane %v742_v50, %v8225_v8  ;;  %v768_v60 = vrot.slane %v752_v51, %v8221_v5  ;;  %v3563_v48 = vld [vmem:[%s8207_s28 + $0x250] sm:$0xff] }
  0x9a   : > { %v760_v62 = vcombine.high %v752_v51, %v752_v51  ;;  %7128 = vst [vmem:[%s8249_s21 + $0x1b8] sm:$0xff] %v6616_v53  ;;  %v4248_v63 = vrot.slane %v740_v54, %v8225_v8  ;;  %v744_v0 = vcombine.high %v740_v54, %v740_v54  ;;  %v759_v2 = vrot.slane %v745_v56, %v8221_v5  ;;  %v3562_v56 = vld [vmem:[%s8207_s28 + $0x248] sm:$0xff] }
  0x9b   : > { %v817_v3 = vrot.slane %v8488_v57, %v8221_v5  ;;  %7132 = vst [vmem:[%s8249_s21 + $0x1d8] sm:$0xff] %v6620_v58  ;;  %v6623_v4 = vadd.f32 %v4252_v61, %v3551_v55  ;;  %v4260_v7 = vrot.slane %v768_v60, %v8225_v8  ;;  %v790_v10 = vcombine.high %v768_v60, %v768_v60 }
  0x9c   : > { %v782_v9 = vrot.slane %v760_v62, %v8221_v5  ;;  %v6622_v11 = vadd.f32 %v4248_v63, %v3550_v59  ;;  %v4256_v12 = vrot.slane %v744_v0, %v8225_v8  ;;  %v775_v15 = vrot.slane %v759_v2, %v8221_v5  ;;  %v3564_v63 = vld [vmem:[%s8207_s28 + $0x258] sm:$0xff] }
  0x9d   : > { %v761_v16 = vcombine.high %v759_v2, %v759_v2  ;;  %7135 = vst [vmem:[%s8249_s21 + $0x1f0] sm:$0xff] %v6623_v4  ;;  %v6625_v17 = vadd.f32 %v4260_v7, %v3553_v1  ;;  %v4268_v19 = vrot.slane %v790_v10, %v8225_v8  ;;  %v4292_v33 = vrot.slane %v817_v3, %v8225_v8  ;;  %v3569_v2 = vld [vmem:[%s8207_s28 + $0x280] sm:$0xff] }
  0x9e   : > { %v4264_v18 = vrot.slane %v782_v9, %v8225_v8  ;;  %v792_v20 = vcombine.high %v782_v9, %v782_v9  ;;  %7134 = vst [vmem:[%s8249_s21 + $0x1e8] sm:$0xff] %v6622_v11  ;;  %v6624_v22 = vadd.f32 %v4256_v12, %v3552_v6  ;;  %v4276_v24 = vrot.slane %v775_v15, %v8225_v8  ;;  %v3565_v9 = vld [vmem:[%s8207_s28 + $0x260] sm:$0xff] }
  0x9f   : > { %v789_v25 = vrot.slane %v761_v16, %v8221_v5  ;;  %v791_v26 = vcombine.high %v775_v15, %v775_v15  ;;  %7137 = vst [vmem:[%s8249_s21 + $0x200] sm:$0xff] %v6625_v17  ;;  %v6627_v29 = vadd.f32 %v4268_v19, %v3555_v14  ;;  %v6633_v41 = vadd.f32 %v4292_v33, %v3561_v27  ;;  %v3571_v16 = vld [vmem:[%s8207_s28 + $0x290] sm:$0xff]  ;;  %v3570_v27 = vld [vmem:[%s8207_s28 + $0x288] sm:$0xff] }
  0xa0   : > { %v6626_v28 = vadd.f32 %v4264_v18, %v3554_v13  ;;  %v4272_v30 = vrot.slane %v792_v20, %v8225_v8  ;;  %7136 = vst [vmem:[%s8249_s21 + $0x1f8] sm:$0xff] %v6624_v22  ;;  %v6629_v34 = vadd.f32 %v4276_v24, %v3557_v21  ;;  %v809_v42 = vcombine.high %v8488_v57, %v8488_v57  ;;  %v3566_v18 = vld [vmem:[%s8207_s28 + $0x268] sm:$0xff]  ;;  %v3567_v19 = vld [vmem:[%s8207_s28 + $0x270] sm:$0xff] }
  0xa1   : > { %v4280_v35 = vrot.slane %v789_v25, %v8225_v8  ;;  %v4284_v36 = vrot.slane %v791_v26, %v8225_v8  ;;  %v793_v37 = vcombine.high %v789_v25, %v789_v25  ;;  %7139 = vst [vmem:[%s8249_s21 + $0x210] sm:$0xff] %v6627_v29  ;;  %v839_v43 = vcombine.high %v817_v3, %v817_v3  ;;  %v3568_v29 = vld [vmem:[%s8207_s28 + $0x278] sm:$0xff] }
  0xa2   : > { %7138 = vst [vmem:[%s8249_s21 + $0x208] sm:$0xff] %v6626_v28  ;;  %v6628_v39 = vadd.f32 %v4272_v30, %v3556_v23  ;;  %7141 = vst [vmem:[%s8249_s21 + $0x220] sm:$0xff] %v6629_v34  ;;  %v794_v49 = vcombine.high %v8480_v52, %v8480_v52  ;;  %v831_v50 = vrot.slane %v809_v42, %v8221_v5  ;;  %v3573_v28 = vld [vmem:[%s8207_s28 + $0x2a0] sm:$0xff] }
  0xa3   : > { %v6630_v45 = vadd.f32 %v4280_v35, %v3558_v31  ;;  %v6631_v46 = vadd.f32 %v4284_v36, %v3559_v32  ;;  %v4288_v47 = vrot.slane %v793_v37, %v8225_v8  ;;  %7145 = vst [vmem:[%s8249_s21 + $0x240] sm:$0xff] %v6633_v41  ;;  %v4300_v51 = vrot.slane %v839_v43, %v8225_v8  ;;  %v3572_v37 = vld [vmem:[%s8207_s28 + $0x298] sm:$0xff] }
  0xa4   : > { %7140 = vst [vmem:[%s8249_s21 + $0x218] sm:$0xff] %v6628_v39  ;;  %v850_v53 = vrot.slane %v235_v38, %v8221_v5  ;;  %v843_v54 = vcombine.high %v235_v38, %v235_v38  ;;  %v808_v57 = vrot.slane %v794_v49, %v8221_v5  ;;  %v8550_v52 = vrot.slane %v8532_v44, %v8221_v5  ;;  %v8597_v49 = vld [vmem:[%s8215_s3 + $0x60] sm:$0xff] }
  0xa5   : > { %7142 = vst [vmem:[%s8249_s21 + $0x228] sm:$0xff] %v6630_v45  ;;  %7143 = vst [vmem:[%s8249_s21 + $0x230] sm:$0xff] %v6631_v46  ;;  %v6632_v55 = vadd.f32 %v4288_v47, %v3560_v40  ;;  %v892_v58 = vcombine.high %v8532_v44, %v8532_v44  ;;  %v4296_v59 = vrot.slane %v831_v50, %v8225_v8  ;;  %v3575_v46 = vld [vmem:[%s8207_s28 + $0x2b0] sm:$0xff]  ;;  %v3578_v44 = vld [vmem:[%s8207_s28 + $0x2c8] sm:$0xff] }
  0xa6   : > { %v6635_v61 = vadd.f32 %v4300_v51, %v3563_v48  ;;  %v841_v60 = vcombine.high %v831_v50, %v831_v50  ;;  %v866_v62 = vrot.slane %v850_v53, %v8221_v5  ;;  %v824_v0 = vrot.slane %v808_v57, %v8221_v5  ;;  %v3574_v51 = vld [vmem:[%s8207_s28 + $0x2a8] sm:$0xff] }
  0xa7   : > { %7144 = vst [vmem:[%s8249_s21 + $0x238] sm:$0xff] %v6632_v55  ;;  %v810_v1 = vcombine.high %v808_v57, %v808_v57  ;;  %v858_v3 = vcombine.high %v850_v53, %v850_v53  ;;  %v857_v4 = vrot.slane %v843_v54, %v8221_v5  ;;  %v6634_v6 = vadd.f32 %v4296_v59, %v3562_v56  ;;  %v3577_v54 = vld [vmem:[%s8207_s28 + $0x2c0] sm:$0xff] }
  0xa8   : > { %7147 = vst [vmem:[%s8249_s21 + $0x250] sm:$0xff] %v6635_v61  ;;  %v4304_v7 = vrot.slane %v841_v60, %v8225_v8  ;;  %v4324_v10 = vrot.slane %v866_v62, %v8225_v8  ;;  %v888_v11 = vcombine.high %v866_v62, %v866_v62  ;;  %v4308_v12 = vrot.slane %v824_v0, %v8225_v8  ;;  %v3576_v62 = vld [vmem:[%s8207_s28 + $0x2b8] sm:$0xff] }
  0xa9   : > { %v838_v13 = vrot.slane %v810_v1, %v8221_v5  ;;  %v840_v14 = vcombine.high %v824_v0, %v824_v0  ;;  %v880_v15 = vrot.slane %v858_v3, %v8221_v5  ;;  %7146 = vst [vmem:[%s8249_s21 + $0x248] sm:$0xff] %v6634_v6  ;;  %v873_v22 = vrot.slane %v857_v4, %v8221_v5  ;;  %v3579_v6 = vld [vmem:[%s8207_s28 + $0x2d0] sm:$0xff] }
  0xaa   : > { %v6636_v17 = vadd.f32 %v4304_v7, %v3564_v63  ;;  %v6641_v20 = vadd.f32 %v4324_v10, %v3569_v2  ;;  %v4332_v21 = vrot.slane %v888_v11, %v8225_v8  ;;  %v6637_v23 = vadd.f32 %v4308_v12, %v3565_v9  ;;  %v3581_v7 = vld [vmem:[%s8207_s28 + $0x2e0] sm:$0xff] }
  0xab   : > { %v4312_v24 = vrot.slane %v838_v13, %v8225_v8  ;;  %v4316_v25 = vrot.slane %v840_v14, %v8225_v8  ;;  %v842_v26 = vcombine.high %v838_v13, %v838_v13  ;;  %v4328_v30 = vrot.slane %v880_v15, %v8225_v8 }
  0xac   : > { %7148 = vst [vmem:[%s8249_s21 + $0x258] sm:$0xff] %v6636_v17  ;;  %7153 = vst [vmem:[%s8249_s21 + $0x280] sm:$0xff] %v6641_v20  ;;  %v6643_v31 = vadd.f32 %v4332_v21, %v3571_v16  ;;  %v890_v32 = vcombine.high %v880_v15, %v880_v15  ;;  %v4340_v33 = vrot.slane %v873_v22, %v8225_v8  ;;  %v3580_v15 = vld [vmem:[%s8207_s28 + $0x2d8] sm:$0xff]  ;;  %v3582_v16 = vld [vmem:[%s8207_s28 + $0x2e8] sm:$0xff] }
  0xad   : > { %7149 = vst [vmem:[%s8249_s21 + $0x260] sm:$0xff] %v6637_v23  ;;  %v6638_v34 = vadd.f32 %v4312_v24, %v3566_v18  ;;  %v6639_v35 = vadd.f32 %v4316_v25, %v3567_v19  ;;  %v4320_v36 = vrot.slane %v842_v26, %v8225_v8  ;;  %v859_v38 = vcombine.high %v857_v4, %v857_v4  ;;  %v3583_v23 = vld [vmem:[%s8207_s28 + $0x2f0] sm:$0xff]  ;;  %v3585_v24 = vld [vmem:[%s8207_s28 + $0x300] sm:$0xff] }
  0xae   : > { %v6642_v39 = vadd.f32 %v4328_v30, %v3570_v27  ;;  %7155 = vst [vmem:[%s8249_s21 + $0x290] sm:$0xff] %v6643_v31  ;;  %v4336_v40 = vrot.slane %v890_v32, %v8225_v8  ;;  %v6645_v41 = vadd.f32 %v4340_v33, %v3573_v28  ;;  %v889_v42 = vcombine.high %v873_v22, %v873_v22  ;;  %v3584_v32 = vld [vmem:[%s8207_s28 + $0x2f8] sm:$0xff] }
  0xaf   : > { %7150 = vst [vmem:[%s8249_s21 + $0x268] sm:$0xff] %v6638_v34  ;;  %7151 = vst [vmem:[%s8249_s21 + $0x270] sm:$0xff] %v6639_v35  ;;  %v6640_v43 = vadd.f32 %v4320_v36, %v3568_v29  ;;  %v887_v45 = vrot.slane %v859_v38, %v8221_v5  ;;  %v915_v47 = vrot.slane %v8550_v52, %v8221_v5  ;;  %v238_v29 = vld [vmem:[%s8215_s3 + $0x68] sm:$0xff] }
  0xb0   : > { %v907_v48 = vcombine.high %v8550_v52, %v8550_v52  ;;  %7154 = vst [vmem:[%s8249_s21 + $0x288] sm:$0xff] %v6642_v39  ;;  %v6644_v50 = vadd.f32 %v4336_v40, %v3572_v37  ;;  %7157 = vst [vmem:[%s8249_s21 + $0x2a0] sm:$0xff] %v6645_v41  ;;  %v4348_v53 = vrot.slane %v889_v42, %v8225_v8  ;;  %v3587_v39 = vld [vmem:[%s8207_s28 + $0x310] sm:$0xff]  ;;  %v3586_v40 = vld [vmem:[%s8207_s28 + $0x308] sm:$0xff] }
  0xb1   : > { %v906_v55 = vrot.slane %v892_v58, %v8221_v5  ;;  %v948_v56 = vrot.slane %v8597_v49, %v8221_v5  ;;  %7152 = vst [vmem:[%s8249_s21 + $0x278] sm:$0xff] %v6640_v43  ;;  %v4344_v57 = vrot.slane %v887_v45, %v8225_v8  ;;  %v891_v52 = vcombine.high %v887_v45, %v887_v45 }
  0xb2   : > { %v4356_v59 = vrot.slane %v915_v47, %v8225_v8  ;;  %v929_v61 = vrot.slane %v907_v48, %v8221_v5  ;;  %7156 = vst [vmem:[%s8249_s21 + $0x298] sm:$0xff] %v6644_v50  ;;  %v6647_v60 = vadd.f32 %v4348_v53, %v3575_v46  ;;  %v937_v58 = vcombine.high %v915_v47, %v915_v47  ;;  %v8655_v46 = vld [vmem:[%s8215_s3 + $0x70] sm:$0xff]  ;;  %v3588_v53 = vld [vmem:[%s8207_s28 + $0x318] sm:$0xff] }
  0xb3   : > { %v922_v63 = vrot.slane %v906_v55, %v8221_v5  ;;  %v908_v0 = vcombine.high %v906_v55, %v906_v55  ;;  %v6646_v1 = vadd.f32 %v4344_v57, %v3574_v51  ;;  %v4352_v2 = vrot.slane %v891_v52, %v8225_v8 }
  0xb4   : > { %v6649_v3 = vadd.f32 %v4356_v59, %v3577_v54  ;;  %v4360_v4 = vrot.slane %v929_v61, %v8225_v8  ;;  %7159 = vst [vmem:[%s8249_s21 + $0x2b0] sm:$0xff] %v6647_v60  ;;  %v4364_v9 = vrot.slane %v937_v58, %v8225_v8  ;;  %v939_v10 = vcombine.high %v929_v61, %v929_v61  ;;  %v3589_v59 = vld [vmem:[%s8207_s28 + $0x320] sm:$0xff] }
  0xb5   : > { %v4372_v11 = vrot.slane %v922_v63, %v8225_v8  ;;  %v936_v12 = vrot.slane %v908_v0, %v8221_v5  ;;  %7158 = vst [vmem:[%s8249_s21 + $0x2a8] sm:$0xff] %v6646_v1  ;;  %v6648_v13 = vadd.f32 %v4352_v2, %v3576_v62  ;;  %v938_v17 = vcombine.high %v922_v63, %v922_v63  ;;  %v3593_v63 = vld [vmem:[%s8207_s28 + $0x340] sm:$0xff]  ;;  %v3590_v2 = vld [vmem:[%s8207_s28 + $0x328] sm:$0xff] }
  0xb6   : > { %7161 = vst [vmem:[%s8249_s21 + $0x2c0] sm:$0xff] %v6649_v3  ;;  %v6650_v14 = vadd.f32 %v4360_v4, %v3578_v44  ;;  %v964_v18 = vrot.slane %v948_v56, %v8221_v5  ;;  %v6651_v19 = vadd.f32 %v4364_v9, %v3579_v6  ;;  %v4368_v20 = vrot.slane %v939_v10, %v8225_v8  ;;  %v3591_v3 = vld [vmem:[%s8207_s28 + $0x330] sm:$0xff] }
  0xb7   : > { %v6653_v21 = vadd.f32 %v4372_v11, %v3581_v7  ;;  %v4376_v22 = vrot.slane %v936_v12, %v8225_v8  ;;  %7160 = vst [vmem:[%s8249_s21 + $0x2b8] sm:$0xff] %v6648_v13  ;;  %v4380_v25 = vrot.slane %v938_v17, %v8225_v8  ;;  %v940_v26 = vcombine.high %v936_v12, %v936_v12  ;;  %v3594_v13 = vld [vmem:[%s8207_s28 + $0x348] sm:$0xff] }
  0xb8   : > { %7162 = vst [vmem:[%s8249_s21 + $0x2c8] sm:$0xff] %v6650_v14  ;;  %v4388_v27 = vrot.slane %v964_v18, %v8225_v8  ;;  %v956_v28 = vcombine.high %v948_v56, %v948_v56  ;;  %7163 = vst [vmem:[%s8249_s21 + $0x2d0] sm:$0xff] %v6651_v19  ;;  %v6652_v30 = vadd.f32 %v4368_v20, %v3580_v15  ;;  %v3595_v14 = vld [vmem:[%s8207_s28 + $0x350] sm:$0xff]  ;;  %v3592_v15 = vld [vmem:[%s8207_s28 + $0x338] sm:$0xff] }
  0xb9   : > { %7165 = vst [vmem:[%s8249_s21 + $0x2e0] sm:$0xff] %v6653_v21  ;;  %v6654_v31 = vadd.f32 %v4376_v22, %v3582_v16  ;;  %v986_v33 = vcombine.high %v964_v18, %v964_v18  ;;  %v941_v34 = vcombine.high %v8597_v49, %v8597_v49  ;;  %v6655_v35 = vadd.f32 %v4380_v25, %v3583_v23  ;;  %v3597_v20 = vld [vmem:[%s8207_s28 + $0x360] sm:$0xff] }
  0xba   : > { %v4384_v36 = vrot.slane %v940_v26, %v8225_v8  ;;  %v6657_v37 = vadd.f32 %v4388_v27, %v3585_v24  ;;  %v978_v38 = vrot.slane %v956_v28, %v8221_v5  ;;  %7164 = vst [vmem:[%s8249_s21 + $0x2d8] sm:$0xff] %v6652_v30  ;;  %v997_v43 = vrot.slane %v238_v29, %v8221_v5  ;;  %v3596_v24 = vld [vmem:[%s8207_s28 + $0x358] sm:$0xff] }
  0xbb   : > { %7166 = vst [vmem:[%s8249_s21 + $0x2e8] sm:$0xff] %v6654_v31  ;;  %v4396_v41 = vrot.slane %v986_v33, %v8225_v8  ;;  %v955_v42 = vrot.slane %v941_v34, %v8221_v5  ;;  %v990_v45 = vcombine.high %v238_v29, %v238_v29  ;;  %7167 = vst [vmem:[%s8249_s21 + $0x2f0] sm:$0xff] %v6655_v35 }
  0xbc   : > { %v6656_v47 = vadd.f32 %v4384_v36, %v3584_v32  ;;  %7169 = vst [vmem:[%s8249_s21 + $0x300] sm:$0xff] %v6657_v37  ;;  %v4392_v48 = vrot.slane %v978_v38, %v8225_v8  ;;  %v988_v49 = vcombine.high %v978_v38, %v978_v38  ;;  %v8662_v50 = vrot.slane %v8655_v46, %v8221_v5  ;;  %v3599_v36 = vld [vmem:[%s8207_s28 + $0x370] sm:$0xff]  ;;  %v3601_v37 = vld [vmem:[%s8207_s28 + $0x380] sm:$0xff] }
  0xbd   : > { %v6659_v51 = vadd.f32 %v4396_v41, %v3587_v39  ;;  %v971_v54 = vrot.slane %v955_v42, %v8221_v5  ;;  %v957_v55 = vcombine.high %v955_v42, %v955_v42  ;;  %v1013_v56 = vrot.slane %v997_v43, %v8221_v5  ;;  %v3598_v41 = vld [vmem:[%s8207_s28 + $0x368] sm:$0xff] }
  0xbe   : > { %7168 = vst [vmem:[%s8249_s21 + $0x2f8] sm:$0xff] %v6656_v47  ;;  %v6658_v57 = vadd.f32 %v4392_v48, %v3586_v40  ;;  %v4400_v52 = vrot.slane %v988_v49, %v8225_v8  ;;  %v1005_v61 = vcombine.high %v997_v43, %v997_v43  ;;  %v1004_v60 = vrot.slane %v990_v45, %v8221_v5  ;;  %v8710_v40 = vld [vmem:[%s8215_s3 + $0x78] sm:$0xff] }
  0xbf   : > { %7171 = vst [vmem:[%s8249_s21 + $0x310] sm:$0xff] %v6659_v51  ;;  %v4404_v62 = vrot.slane %v971_v54, %v8225_v8  ;;  %v985_v44 = vrot.slane %v957_v55, %v8221_v5  ;;  %v987_v58 = vcombine.high %v971_v54, %v971_v54  ;;  %v4420_v0 = vrot.slane %v1013_v56, %v8225_v8  ;;  %v3600_v54 = vld [vmem:[%s8207_s28 + $0x378] sm:$0xff] }
  0xc0   : > { %7170 = vst [vmem:[%s8249_s21 + $0x308] sm:$0xff] %v6658_v57  ;;  %v6660_v1 = vadd.f32 %v4400_v52, %v3588_v53  ;;  %v1027_v4 = vrot.slane %v1005_v61, %v8221_v5  ;;  %v1035_v6 = vcombine.high %v1013_v56, %v1013_v56  ;;  %v1020_v7 = vrot.slane %v1004_v60, %v8221_v5  ;;  %v3602_v56 = vld [vmem:[%s8207_s28 + $0x388] sm:$0xff] }
  0xc1   : > { %v6661_v9 = vadd.f32 %v4404_v62, %v3589_v59  ;;  %v4408_v10 = vrot.slane %v985_v44, %v8225_v8  ;;  %v4412_v11 = vrot.slane %v987_v58, %v8225_v8  ;;  %v989_v12 = vcombine.high %v985_v44, %v985_v44  ;;  %v3609_v44 = vld [vmem:[%s8207_s28 + $0x3c0] sm:$0xff] }
  0xc2   : > { %7172 = vst [vmem:[%s8249_s21 + $0x318] sm:$0xff] %v6660_v1  ;;  %v6665_v16 = vadd.f32 %v4420_v0, %v3593_v63  ;;  %v4424_v17 = vrot.slane %v1027_v4, %v8225_v8  ;;  %v4428_v18 = vrot.slane %v1035_v6, %v8225_v8  ;;  %v1037_v19 = vcombine.high %v1027_v4, %v1027_v4  ;;  %v3604_v63 = vld [vmem:[%s8207_s28 + $0x398] sm:$0xff] }
  0xc3   : > { %7173 = vst [vmem:[%s8249_s21 + $0x320] sm:$0xff] %v6661_v9  ;;  %v6662_v21 = vadd.f32 %v4408_v10, %v3590_v2  ;;  %v6663_v22 = vadd.f32 %v4412_v11, %v3591_v3  ;;  %v4416_v23 = vrot.slane %v989_v12, %v8225_v8  ;;  %v4436_v25 = vrot.slane %v1020_v7, %v8225_v8 }
  0xc4   : > { %7177 = vst [vmem:[%s8249_s21 + $0x340] sm:$0xff] %v6665_v16  ;;  %v6666_v26 = vadd.f32 %v4424_v17, %v3594_v13  ;;  %v6667_v27 = vadd.f32 %v4428_v18, %v3595_v14  ;;  %v4432_v28 = vrot.slane %v1037_v19, %v8225_v8  ;;  %v1006_v29 = vcombine.high %v1004_v60, %v1004_v60  ;;  %v3607_v16 = vld [vmem:[%s8207_s28 + $0x3b0] sm:$0xff] }
  0xc5   : > { %7174 = vst [vmem:[%s8249_s21 + $0x328] sm:$0xff] %v6662_v21  ;;  %7175 = vst [vmem:[%s8249_s21 + $0x330] sm:$0xff] %v6663_v22  ;;  %v6664_v30 = vadd.f32 %v4416_v23, %v3592_v15  ;;  %v6669_v31 = vadd.f32 %v4436_v25, %v3597_v20  ;;  %v1036_v32 = vcombine.high %v1020_v7, %v1020_v7  ;;  %v3605_v7 = vld [vmem:[%s8207_s28 + $0x3a0] sm:$0xff]  ;;  %v3606_v15 = vld [vmem:[%s8207_s28 + $0x3a8] sm:$0xff] }
  0xc6   : > { %v1062_v33 = vrot.slane %v8662_v50, %v8221_v5  ;;  %7178 = vst [vmem:[%s8249_s21 + $0x348] sm:$0xff] %v6666_v26  ;;  %7179 = vst [vmem:[%s8249_s21 + $0x350] sm:$0xff] %v6667_v27  ;;  %v6668_v34 = vadd.f32 %v4432_v28, %v3596_v24  ;;  %v1034_v35 = vrot.slane %v1006_v29, %v8221_v5  ;;  %v3610_v24 = vld [vmem:[%s8207_s28 + $0x3c8] sm:$0xff]  ;;  %v3611_v25 = vld [vmem:[%s8207_s28 + $0x3d0] sm:$0xff] }
  0xc7   : > { %v1054_v38 = vcombine.high %v8662_v50, %v8662_v50  ;;  %v1039_v39 = vcombine.high %v8655_v46, %v8655_v46  ;;  %7176 = vst [vmem:[%s8249_s21 + $0x338] sm:$0xff] %v6664_v30  ;;  %7181 = vst [vmem:[%s8249_s21 + $0x360] sm:$0xff] %v6669_v31  ;;  %v4444_v42 = vrot.slane %v1036_v32, %v8225_v8  ;;  %v3603_v50 = vld [vmem:[%s8207_s28 + $0x390] sm:$0xff]  ;;  %v3608_v26 = vld [vmem:[%s8207_s28 + $0x3b8] sm:$0xff] }
  0xc8   : > { %v4452_v43 = vrot.slane %v1062_v33, %v8225_v8  ;;  %v1084_v45 = vcombine.high %v1062_v33, %v1062_v33  ;;  %v1095_v47 = vrot.slane %v8710_v40, %v8221_v5  ;;  %7180 = vst [vmem:[%s8249_s21 + $0x358] sm:$0xff] %v6668_v34  ;;  %v4440_v48 = vrot.slane %v1034_v35, %v8225_v8  ;;  %v241_v31 = vld [vmem:[%s8215_s3 + $0x80] sm:$0xff] }
  0xc9   : > { %v1038_v46 = vcombine.high %v1034_v35, %v1034_v35  ;;  %v1076_v49 = vrot.slane %v1054_v38, %v8221_v5  ;;  %v1053_v51 = vrot.slane %v1039_v39, %v8221_v5  ;;  %v6671_v53 = vadd.f32 %v4444_v42, %v3599_v36  ;;  %v3612_v35 = vld [vmem:[%s8207_s28 + $0x3d8] sm:$0xff]  ;;  %v3613_v42 = vld [vmem:[%s8207_s28 + $0x3e0] sm:$0xff] }
  0xca   : > { %v6673_v55 = vadd.f32 %v4452_v43, %v3601_v37  ;;  %v4460_v57 = vrot.slane %v1084_v45, %v8225_v8  ;;  %v1111_v52 = vrot.slane %v1095_v47, %v8221_v5  ;;  %v6670_v59 = vadd.f32 %v4440_v48, %v3598_v41 }
  0xcb   : > { %v4448_v61 = vrot.slane %v1038_v46, %v8225_v8  ;;  %v4456_v60 = vrot.slane %v1076_v49, %v8225_v8  ;;  %v1086_v62 = vcombine.high %v1076_v49, %v1076_v49  ;;  %7183 = vst [vmem:[%s8249_s21 + $0x370] sm:$0xff] %v6671_v53  ;;  %v1069_v0 = vrot.slane %v1053_v51, %v8221_v5 }
  0xcc   : > { %7185 = vst [vmem:[%s8249_s21 + $0x380] sm:$0xff] %v6673_v55  ;;  %v6675_v58 = vadd.f32 %v4460_v57, %v3603_v50  ;;  %v1055_v1 = vcombine.high %v1053_v51, %v1053_v51  ;;  %v4484_v2 = vrot.slane %v1111_v52, %v8225_v8  ;;  %7182 = vst [vmem:[%s8249_s21 + $0x368] sm:$0xff] %v6670_v59  ;;  %v3617_v50 = vld [vmem:[%s8207_s28 + $0x400] sm:$0xff] }
  0xcd   : > { %v6672_v3 = vadd.f32 %v4448_v61, %v3600_v54  ;;  %v6674_v4 = vadd.f32 %v4456_v60, %v3602_v56  ;;  %v4464_v6 = vrot.slane %v1086_v62, %v8225_v8  ;;  %v1103_v9 = vcombine.high %v1095_v47, %v1095_v47  ;;  %v3615_v54 = vld [vmem:[%s8207_s28 + $0x3f0] sm:$0xff]  ;;  %v3614_v61 = vld [vmem:[%s8207_s28 + $0x3e8] sm:$0xff] }
  0xce   : > { %7187 = vst [vmem:[%s8249_s21 + $0x390] sm:$0xff] %v6675_v58  ;;  %v4468_v10 = vrot.slane %v1069_v0, %v8225_v8  ;;  %v1083_v11 = vrot.slane %v1055_v1, %v8221_v5  ;;  %v1085_v12 = vcombine.high %v1069_v0, %v1069_v0  ;;  %v6681_v13 = vadd.f32 %v4484_v2, %v3609_v44  ;;  %v3618_v62 = vld [vmem:[%s8207_s28 + $0x408] sm:$0xff] }
  0xcf   : > { %7184 = vst [vmem:[%s8249_s21 + $0x378] sm:$0xff] %v6672_v3  ;;  %7186 = vst [vmem:[%s8249_s21 + $0x388] sm:$0xff] %v6674_v4  ;;  %v6676_v14 = vadd.f32 %v4464_v6, %v3604_v63  ;;  %v1125_v17 = vrot.slane %v1103_v9, %v8221_v5  ;;  %v1133_v18 = vcombine.high %v1111_v52, %v1111_v52  ;;  %v242_v52 = vld [vmem:[%s8215_s3 + $0x88] sm:$0xff]  ;;  %v3619_v3 = vld [vmem:[%s8207_s28 + $0x410] sm:$0xff] }
  0xd0   : > { %v1088_v19 = vcombine.high %v8710_v40, %v8710_v40  ;;  %v6677_v20 = vadd.f32 %v4468_v10, %v3605_v7  ;;  %v4472_v21 = vrot.slane %v1083_v11, %v8225_v8  ;;  %v4476_v22 = vrot.slane %v1085_v12, %v8225_v8  ;;  %7193 = vst [vmem:[%s8249_s21 + $0x3c0] sm:$0xff] %v6681_v13  ;;  %v3616_v6 = vld [vmem:[%s8207_s28 + $0x3f8] sm:$0xff] }
  0xd1   : > { %v1087_v23 = vcombine.high %v1083_v11, %v1083_v11  ;;  %7188 = vst [vmem:[%s8249_s21 + $0x398] sm:$0xff] %v6676_v14  ;;  %v4488_v27 = vrot.slane %v1125_v17, %v8225_v8  ;;  %v4492_v28 = vrot.slane %v1133_v18, %v8225_v8  ;;  %v1135_v29 = vcombine.high %v1125_v17, %v1125_v17  ;;  %v3620_v14 = vld [vmem:[%s8207_s28 + $0x418] sm:$0xff] }
  0xd2   : > { %v1102_v30 = vrot.slane %v1088_v19, %v8221_v5  ;;  %7189 = vst [vmem:[%s8249_s21 + $0x3a0] sm:$0xff] %v6677_v20  ;;  %v6678_v32 = vadd.f32 %v4472_v21, %v3606_v15  ;;  %v6679_v33 = vadd.f32 %v4476_v22, %v3607_v16  ;;  %v1144_v36 = vrot.slane %v241_v31, %v8221_v5  ;;  %v3621_v15 = vld [vmem:[%s8207_s28 + $0x420] sm:$0xff] }
  0xd3   : > { %v4480_v34 = vrot.slane %v1087_v23, %v8225_v8  ;;  %v6682_v37 = vadd.f32 %v4488_v27, %v3610_v24  ;;  %v6683_v38 = vadd.f32 %v4492_v28, %v3611_v25  ;;  %v4496_v39 = vrot.slane %v1135_v29, %v8225_v8  ;;  %v3623_v23 = vld [vmem:[%s8207_s28 + $0x430] sm:$0xff]  ;;  %v3622_v28 = vld [vmem:[%s8207_s28 + $0x428] sm:$0xff] }
  0xd4   : > { %v1118_v40 = vrot.slane %v1102_v30, %v8221_v5  ;;  %7190 = vst [vmem:[%s8249_s21 + $0x3a8] sm:$0xff] %v6678_v32  ;;  %7191 = vst [vmem:[%s8249_s21 + $0x3b0] sm:$0xff] %v6679_v33  ;;  %v1104_v43 = vcombine.high %v1102_v30, %v1102_v30  ;;  %v1160_v45 = vrot.slane %v1144_v36, %v8221_v5  ;;  %v3625_v30 = vld [vmem:[%s8207_s28 + $0x440] sm:$0xff] }
  0xd5   : > { %v6680_v41 = vadd.f32 %v4480_v34, %v3608_v26  ;;  %v1152_v47 = vcombine.high %v1144_v36, %v1144_v36  ;;  %7194 = vst [vmem:[%s8249_s21 + $0x3c8] sm:$0xff] %v6682_v37  ;;  %7195 = vst [vmem:[%s8249_s21 + $0x3d0] sm:$0xff] %v6683_v38  ;;  %v6684_v48 = vadd.f32 %v4496_v39, %v3612_v35  ;;  %v8814_v36 = vld [vmem:[%s8215_s3 + $0x90] sm:$0xff]  ;;  %v3624_v38 = vld [vmem:[%s8207_s28 + $0x438] sm:$0xff] }
  0xd6   : > { %v4500_v46 = vrot.slane %v1118_v40, %v8225_v8  ;;  %v1134_v49 = vcombine.high %v1118_v40, %v1118_v40  ;;  %v1137_v51 = vcombine.high %v241_v31, %v241_v31  ;;  %v1132_v53 = vrot.slane %v1104_v43, %v8221_v5  ;;  %v3626_v39 = vld [vmem:[%s8207_s28 + $0x448] sm:$0xff] }
  0xd7   : > { %7192 = vst [vmem:[%s8249_s21 + $0x3b8] sm:$0xff] %v6680_v41  ;;  %v4516_v55 = vrot.slane %v1160_v45, %v8225_v8  ;;  %v1174_v56 = vrot.slane %v1152_v47, %v8221_v5  ;;  %v1182_v57 = vcombine.high %v1160_v45, %v1160_v45  ;;  %7196 = vst [vmem:[%s8249_s21 + $0x3d8] sm:$0xff] %v6684_v48 }
  0xd8   : > { %v6685_v59 = vadd.f32 %v4500_v46, %v3613_v42  ;;  %v4508_v60 = vrot.slane %v1134_v49, %v8225_v8  ;;  %v1151_v44 = vrot.slane %v1137_v51, %v8221_v5  ;;  %v1193_v58 = vrot.slane %v242_v52, %v8221_v5  ;;  %v3627_v46 = vld [vmem:[%s8207_s28 + $0x450] sm:$0xff] }
  0xd9   : > { %v4504_v63 = vrot.slane %v1132_v53, %v8225_v8  ;;  %v1136_v0 = vcombine.high %v1132_v53, %v1132_v53  ;;  %v6689_v1 = vadd.f32 %v4516_v55, %v3617_v50  ;;  %v4520_v2 = vrot.slane %v1174_v56, %v8225_v8 }
  0xda   : > { %7197 = vst [vmem:[%s8249_s21 + $0x3e0] sm:$0xff] %v6685_v59  ;;  %v6687_v4 = vadd.f32 %v4508_v60, %v3615_v54  ;;  %v4524_v7 = vrot.slane %v1182_v57, %v8225_v8  ;;  %v1184_v9 = vcombine.high %v1174_v56, %v1174_v56  ;;  %v1167_v10 = vrot.slane %v1151_v44, %v8221_v5  ;;  %v3628_v56 = vld [vmem:[%s8207_s28 + $0x458] sm:$0xff]  ;;  %v3629_v57 = vld [vmem:[%s8207_s28 + $0x460] sm:$0xff] }
  0xdb   : > { %v6686_v11 = vadd.f32 %v4504_v63, %v3614_v61  ;;  %v4512_v12 = vrot.slane %v1136_v0, %v8225_v8  ;;  %7201 = vst [vmem:[%s8249_s21 + $0x400] sm:$0xff] %v6689_v1  ;;  %v6690_v13 = vadd.f32 %v4520_v2, %v3618_v62  ;;  %v1153_v16 = vcombine.high %v1151_v44, %v1151_v44  ;;  %v3630_v63 = vld [vmem:[%s8207_s28 + $0x468] sm:$0xff] }
  0xdc   : > { %7199 = vst [vmem:[%s8249_s21 + $0x3f0] sm:$0xff] %v6687_v4  ;;  %v6691_v17 = vadd.f32 %v4524_v7, %v3619_v3  ;;  %v4528_v18 = vrot.slane %v1184_v9, %v8225_v8  ;;  %v4532_v19 = vrot.slane %v1167_v10, %v8225_v8  ;;  %v1183_v20 = vcombine.high %v1167_v10, %v1167_v10  ;;  %v3631_v9 = vld [vmem:[%s8207_s28 + $0x470] sm:$0xff] }
  0xdd   : > { %7198 = vst [vmem:[%s8249_s21 + $0x3e8] sm:$0xff] %v6686_v11  ;;  %v6688_v21 = vadd.f32 %v4512_v12, %v3616_v6  ;;  %7202 = vst [vmem:[%s8249_s21 + $0x408] sm:$0xff] %v6690_v13  ;;  %v1181_v22 = vrot.slane %v1153_v16, %v8221_v5  ;;  %v1209_v24 = vrot.slane %v1193_v58, %v8221_v5  ;;  %v3634_v11 = vld [vmem:[%s8207_s28 + $0x488] sm:$0xff]  ;;  %v3635_v12 = vld [vmem:[%s8207_s28 + $0x490] sm:$0xff] }
  0xde   : > { %v1201_v25 = vcombine.high %v1193_v58, %v1193_v58  ;;  %7203 = vst [vmem:[%s8249_s21 + $0x410] sm:$0xff] %v6691_v17  ;;  %v6692_v26 = vadd.f32 %v4528_v18, %v3620_v14  ;;  %v6693_v27 = vadd.f32 %v4532_v19, %v3621_v15  ;;  %v4540_v29 = vrot.slane %v1183_v20, %v8225_v8  ;;  %v3633_v58 = vld [vmem:[%s8207_s28 + $0x480] sm:$0xff]  ;;  %v3632_v14 = vld [vmem:[%s8207_s28 + $0x478] sm:$0xff] }
  0xdf   : > { %v1186_v31 = vcombine.high %v242_v52, %v242_v52  ;;  %7200 = vst [vmem:[%s8249_s21 + $0x3f8] sm:$0xff] %v6688_v21  ;;  %v4536_v32 = vrot.slane %v1181_v22, %v8225_v8  ;;  %v1185_v33 = vcombine.high %v1181_v22, %v1181_v22  ;;  %v4548_v34 = vrot.slane %v1209_v24, %v8225_v8  ;;  %v244_v18 = vld [vmem:[%s8215_s3 + $0x98] sm:$0xff] }
  0xe0   : > { %v1223_v35 = vrot.slane %v1201_v25, %v8221_v5  ;;  %7204 = vst [vmem:[%s8249_s21 + $0x418] sm:$0xff] %v6692_v26  ;;  %7205 = vst [vmem:[%s8249_s21 + $0x420] sm:$0xff] %v6693_v27  ;;  %v6695_v37 = vadd.f32 %v4540_v29, %v3623_v23  ;;  %v1231_v40 = vcombine.high %v1209_v24, %v1209_v24  ;;  %v8859_v23 = vld [vmem:[%s8215_s3 + $0xa0] sm:$0xff]  ;;  %v3636_v27 = vld [vmem:[%s8207_s28 + $0x498] sm:$0xff] }
  0xe1   : > { %v1200_v41 = vrot.slane %v1186_v31, %v8221_v5  ;;  %v1242_v42 = vrot.slane %v8814_v36, %v8221_v5  ;;  %v6694_v43 = vadd.f32 %v4536_v32, %v3622_v28  ;;  %v4544_v45 = vrot.slane %v1185_v33, %v8225_v8 }
  0xe2   : > { %v6697_v47 = vadd.f32 %v4548_v34, %v3625_v30  ;;  %v4552_v48 = vrot.slane %v1223_v35, %v8225_v8  ;;  %7207 = vst [vmem:[%s8249_s21 + $0x430] sm:$0xff] %v6695_v37  ;;  %v4556_v49 = vrot.slane %v1231_v40, %v8225_v8  ;;  %v1233_v50 = vcombine.high %v1223_v35, %v1223_v35  ;;  %v3641_v40 = vld [vmem:[%s8207_s28 + $0x4c0] sm:$0xff] }
  0xe3   : > { %v1216_v51 = vrot.slane %v1200_v41, %v8221_v5  ;;  %v1202_v53 = vcombine.high %v1200_v41, %v1200_v41  ;;  %7206 = vst [vmem:[%s8249_s21 + $0x428] sm:$0xff] %v6694_v43  ;;  %v6696_v54 = vadd.f32 %v4544_v45, %v3624_v38  ;;  %v1258_v52 = vrot.slane %v1242_v42, %v8221_v5 }
  0xe4   : > { %7209 = vst [vmem:[%s8249_s21 + $0x440] sm:$0xff] %v6697_v47  ;;  %v6698_v55 = vadd.f32 %v4552_v48, %v3626_v39  ;;  %v1250_v59 = vcombine.high %v1242_v42, %v1242_v42  ;;  %v6699_v61 = vadd.f32 %v4556_v49, %v3627_v46  ;;  %v4560_v60 = vrot.slane %v1233_v50, %v8225_v8  ;;  %v3637_v42 = vld [vmem:[%s8207_s28 + $0x4a0] sm:$0xff] }
  0xe5   : > { %v4564_v62 = vrot.slane %v1216_v51, %v8225_v8  ;;  %v1230_v44 = vrot.slane %v1202_v53, %v8221_v5  ;;  %7208 = vst [vmem:[%s8249_s21 + $0x438] sm:$0xff] %v6696_v54  ;;  %v1232_v0 = vcombine.high %v1216_v51, %v1216_v51  ;;  %v4580_v1 = vrot.slane %v1258_v52, %v8225_v8  ;;  %v3642_v51 = vld [vmem:[%s8207_s28 + $0x4c8] sm:$0xff]  ;;  %v3643_v53 = vld [vmem:[%s8207_s28 + $0x4d0] sm:$0xff] }
  0xe6   : > { %7210 = vst [vmem:[%s8249_s21 + $0x448] sm:$0xff] %v6698_v55  ;;  %v1272_v2 = vrot.slane %v1250_v59, %v8221_v5  ;;  %v1280_v3 = vcombine.high %v1258_v52, %v1258_v52  ;;  %7211 = vst [vmem:[%s8249_s21 + $0x450] sm:$0xff] %v6699_v61  ;;  %v6700_v4 = vadd.f32 %v4560_v60, %v3628_v56  ;;  %v3638_v55 = vld [vmem:[%s8207_s28 + $0x4a8] sm:$0xff]  ;;  %v3639_v56 = vld [vmem:[%s8207_s28 + $0x4b0] sm:$0xff] }
  0xe7   : > { %v6701_v6 = vadd.f32 %v4564_v62, %v3629_v57  ;;  %v4568_v7 = vrot.slane %v1230_v44, %v8225_v8  ;;  %v1234_v10 = vcombine.high %v1230_v44, %v1230_v44  ;;  %v4572_v13 = vrot.slane %v1232_v0, %v8225_v8  ;;  %v3645_v0 = vld [vmem:[%s8207_s28 + $0x4e0] sm:$0xff] }
  0xe8   : > { %v6705_v15 = vadd.f32 %v4580_v1, %v3633_v58  ;;  %v4584_v16 = vrot.slane %v1272_v2, %v8225_v8  ;;  %v4588_v17 = vrot.slane %v1280_v3, %v8225_v8  ;;  %7212 = vst [vmem:[%s8249_s21 + $0x458] sm:$0xff] %v6700_v4  ;;  %v1282_v21 = vcombine.high %v1272_v2, %v1272_v2  ;;  %v3640_v1 = vld [vmem:[%s8207_s28 + $0x4b8] sm:$0xff] }
  0xe9   : > { %7213 = vst [vmem:[%s8249_s21 + $0x460] sm:$0xff] %v6701_v6  ;;  %v6702_v19 = vadd.f32 %v4568_v7, %v3630_v63  ;;  %v4576_v20 = vrot.slane %v1234_v10, %v8225_v8  ;;  %v1235_v22 = vcombine.high %v8814_v36, %v8814_v36  ;;  %v6703_v24 = vadd.f32 %v4572_v13, %v3631_v9  ;;  %v3644_v63 = vld [vmem:[%s8207_s28 + $0x4d8] sm:$0xff] }
  0xea   : > { %7217 = vst [vmem:[%s8249_s21 + $0x480] sm:$0xff] %v6705_v15  ;;  %v6706_v25 = vadd.f32 %v4584_v16, %v3634_v11  ;;  %v6707_v26 = vadd.f32 %v4588_v17, %v3635_v12  ;;  %v1291_v28 = vrot.slane %v244_v18, %v8221_v5  ;;  %v4592_v30 = vrot.slane %v1282_v21, %v8225_v8  ;;  %v3649_v12 = vld [vmem:[%s8207_s28 + $0x500] sm:$0xff] }
  0xeb   : > { %7214 = vst [vmem:[%s8249_s21 + $0x468] sm:$0xff] %v6702_v19  ;;  %v6704_v29 = vadd.f32 %v4576_v20, %v3632_v14  ;;  %v1249_v31 = vrot.slane %v1235_v22, %v8221_v5  ;;  %v1284_v32 = vcombine.high %v244_v18, %v244_v18  ;;  %7215 = vst [vmem:[%s8249_s21 + $0x470] sm:$0xff] %v6703_v24  ;;  %v3647_v19 = vld [vmem:[%s8207_s28 + $0x4f0] sm:$0xff]  ;;  %v8917_v22 = vld [vmem:[%s8215_s3 + $0xa8] sm:$0xff] }
  0xec   : > { %7218 = vst [vmem:[%s8249_s21 + $0x488] sm:$0xff] %v6706_v25  ;;  %7219 = vst [vmem:[%s8249_s21 + $0x490] sm:$0xff] %v6707_v26  ;;  %v1307_v33 = vrot.slane %v1291_v28, %v8221_v5  ;;  %v1299_v34 = vcombine.high %v1291_v28, %v1291_v28  ;;  %v8873_v35 = vrot.slane %v8859_v23, %v8221_v5  ;;  %v3646_v24 = vld [vmem:[%s8207_s28 + $0x4e8] sm:$0xff] }
  0xed   : > { %v1333_v36 = vcombine.high %v8859_v23, %v8859_v23  ;;  %7216 = vst [vmem:[%s8249_s21 + $0x478] sm:$0xff] %v6704_v29  ;;  %v6708_v37 = vadd.f32 %v4592_v30, %v3636_v27  ;;  %v1265_v38 = vrot.slane %v1249_v31, %v8221_v5  ;;  %v1251_v39 = vcombine.high %v1249_v31, %v1249_v31  ;;  %v3651_v27 = vld [vmem:[%s8207_s28 + $0x510] sm:$0xff]  ;;  %v3650_v23 = vld [vmem:[%s8207_s28 + $0x508] sm:$0xff] }
  0xee   : > { %v1298_v41 = vrot.slane %v1284_v32, %v8221_v5  ;;  %v4612_v43 = vrot.slane %v1307_v33, %v8225_v8  ;;  %v1321_v45 = vrot.slane %v1299_v34, %v8221_v5  ;;  %v1329_v47 = vcombine.high %v1307_v33, %v1307_v33 }
  0xef   : > { %v1356_v48 = vrot.slane %v8873_v35, %v8221_v5  ;;  %7220 = vst [vmem:[%s8249_s21 + $0x498] sm:$0xff] %v6708_v37  ;;  %v4596_v46 = vrot.slane %v1265_v38, %v8225_v8  ;;  %v1279_v49 = vrot.slane %v1251_v39, %v8221_v5  ;;  %v1281_v50 = vcombine.high %v1265_v38, %v1265_v38 }
  0xf0   : > { %v1314_v54 = vrot.slane %v1298_v41, %v8221_v5  ;;  %v6713_v57 = vadd.f32 %v4612_v43, %v3641_v40  ;;  %v4616_v52 = vrot.slane %v1321_v45, %v8225_v8  ;;  %v4620_v59 = vrot.slane %v1329_v47, %v8225_v8  ;;  %v3653_v43 = vld [vmem:[%s8207_s28 + $0x520] sm:$0xff] }
  0xf1   : > { %v1331_v61 = vcombine.high %v1321_v45, %v1321_v45  ;;  %v6709_v60 = vadd.f32 %v4596_v46, %v3637_v42  ;;  %v4600_v62 = vrot.slane %v1279_v49, %v8225_v8  ;;  %v4604_v44 = vrot.slane %v1281_v50, %v8225_v8 }
  0xf2   : > { %v1283_v58 = vcombine.high %v1279_v49, %v1279_v49  ;;  %7225 = vst [vmem:[%s8249_s21 + $0x4c0] sm:$0xff] %v6713_v57  ;;  %v6714_v2 = vadd.f32 %v4616_v52, %v3642_v51  ;;  %v6715_v3 = vadd.f32 %v4620_v59, %v3643_v53  ;;  %v4628_v6 = vrot.slane %v1314_v54, %v8225_v8  ;;  %v3657_v49 = vld [vmem:[%s8207_s28 + $0x540] sm:$0xff]  ;;  %v3652_v53 = vld [vmem:[%s8207_s28 + $0x518] sm:$0xff] }
  0xf3   : > { %v4624_v4 = vrot.slane %v1331_v61, %v8225_v8  ;;  %7221 = vst [vmem:[%s8249_s21 + $0x4a0] sm:$0xff] %v6709_v60  ;;  %v6710_v7 = vadd.f32 %v4600_v62, %v3638_v55  ;;  %v6711_v9 = vadd.f32 %v4604_v44, %v3639_v56  ;;  %v1300_v11 = vcombine.high %v1298_v41, %v1298_v41  ;;  %v3655_v55 = vld [vmem:[%s8207_s28 + $0x530] sm:$0xff] }
  0xf4   : > { %v4608_v10 = vrot.slane %v1283_v58, %v8225_v8  ;;  %7226 = vst [vmem:[%s8249_s21 + $0x4c8] sm:$0xff] %v6714_v2  ;;  %7227 = vst [vmem:[%s8249_s21 + $0x4d0] sm:$0xff] %v6715_v3  ;;  %v6717_v14 = vadd.f32 %v4628_v6, %v3645_v0  ;;  %v1330_v15 = vcombine.high %v1314_v54, %v1314_v54  ;;  %v3654_v54 = vld [vmem:[%s8207_s28 + $0x528] sm:$0xff]  ;;  %v247_v0 = vld [vmem:[%s8215_s3 + $0xb0] sm:$0xff] }
  0xf5   : > { %v6716_v13 = vadd.f32 %v4624_v4, %v3644_v63  ;;  %v4644_v16 = vrot.slane %v1356_v48, %v8225_v8  ;;  %7222 = vst [vmem:[%s8249_s21 + $0x4a8] sm:$0xff] %v6710_v7  ;;  %7223 = vst [vmem:[%s8249_s21 + $0x4b0] sm:$0xff] %v6711_v9  ;;  %v1328_v18 = vrot.slane %v1300_v11, %v8221_v5  ;;  %v3656_v4 = vld [vmem:[%s8207_s28 + $0x538] sm:$0xff]  ;;  %v3658_v6 = vld [vmem:[%s8207_s28 + $0x548] sm:$0xff] }
  0xf6   : > { %v6712_v17 = vadd.f32 %v4608_v10, %v3640_v1  ;;  %v1348_v20 = vcombine.high %v8873_v35, %v8873_v35  ;;  %v1378_v21 = vcombine.high %v1356_v48, %v1356_v48  ;;  %7229 = vst [vmem:[%s8249_s21 + $0x4e0] sm:$0xff] %v6717_v14  ;;  %v4636_v25 = vrot.slane %v1330_v15, %v8225_v8  ;;  %v3648_v35 = vld [vmem:[%s8207_s28 + $0x4f8] sm:$0xff]  ;;  %v3659_v7 = vld [vmem:[%s8207_s28 + $0x550] sm:$0xff] }
  0xf7   : > { %7228 = vst [vmem:[%s8249_s21 + $0x4d8] sm:$0xff] %v6716_v13  ;;  %v6721_v26 = vadd.f32 %v4644_v16, %v3649_v12  ;;  %v1347_v28 = vrot.slane %v1333_v36, %v8221_v5  ;;  %v1389_v29 = vrot.slane %v8917_v22, %v8221_v5  ;;  %v4632_v30 = vrot.slane %v1328_v18, %v8225_v8  ;;  %v8970_v14 = vld [vmem:[%s8215_s3 + $0xb8] sm:$0xff] }
  0xf8   : > { %7224 = vst [vmem:[%s8249_s21 + $0x4b8] sm:$0xff] %v6712_v17  ;;  %v1332_v31 = vcombine.high %v1328_v18, %v1328_v18  ;;  %v1370_v32 = vrot.slane %v1348_v20, %v8221_v5  ;;  %v4652_v33 = vrot.slane %v1378_v21, %v8225_v8  ;;  %v6719_v34 = vadd.f32 %v4636_v25, %v3647_v19  ;;  %v3660_v15 = vld [vmem:[%s8207_s28 + $0x558] sm:$0xff] }
  0xf9   : > { %7233 = vst [vmem:[%s8249_s21 + $0x500] sm:$0xff] %v6721_v26  ;;  %v1363_v36 = vrot.slane %v1347_v28, %v8221_v5  ;;  %v1349_v37 = vcombine.high %v1347_v28, %v1347_v28  ;;  %v1405_v38 = vrot.slane %v1389_v29, %v8221_v5  ;;  %v6718_v39 = vadd.f32 %v4632_v30, %v3646_v24  ;;  %v3661_v30 = vld [vmem:[%s8207_s28 + $0x560] sm:$0xff] }
  0xfa   : > { %v4640_v40 = vrot.slane %v1332_v31, %v8225_v8  ;;  %v4648_v41 = vrot.slane %v1370_v32, %v8225_v8  ;;  %v6723_v42 = vadd.f32 %v4652_v33, %v3651_v27  ;;  %7231 = vst [vmem:[%s8249_s21 + $0x4f0] sm:$0xff] %v6719_v34  ;;  %v1380_v45 = vcombine.high %v1370_v32, %v1370_v32 }
  0xfb   : > { %v4660_v47 = vrot.slane %v1363_v36, %v8225_v8  ;;  %v1377_v48 = vrot.slane %v1349_v37, %v8221_v5  ;;  %v1379_v46 = vcombine.high %v1363_v36, %v1363_v36  ;;  %7230 = vst [vmem:[%s8249_s21 + $0x4e8] sm:$0xff] %v6718_v39  ;;  %v4676_v56 = vrot.slane %v1405_v38, %v8225_v8  ;;  %v3665_v36 = vld [vmem:[%s8207_s28 + $0x580] sm:$0xff]  ;;  %v3663_v39 = vld [vmem:[%s8207_s28 + $0x570] sm:$0xff] }
  0xfc   : > { %v6720_v50 = vadd.f32 %v4640_v40, %v3648_v35  ;;  %v6722_v51 = vadd.f32 %v4648_v41, %v3650_v23  ;;  %7235 = vst [vmem:[%s8249_s21 + $0x510] sm:$0xff] %v6723_v42  ;;  %v1397_v57 = vcombine.high %v1389_v29, %v1389_v29  ;;  %v4656_v52 = vrot.slane %v1380_v45, %v8225_v8 }
  0xfd   : > { %v6725_v59 = vadd.f32 %v4660_v47, %v3653_v43  ;;  %v4664_v61 = vrot.slane %v1377_v48, %v8225_v8  ;;  %v4668_v60 = vrot.slane %v1379_v46, %v8225_v8  ;;  %v1381_v62 = vcombine.high %v1377_v48, %v1377_v48 }
  0xfe   : > { %7232 = vst [vmem:[%s8249_s21 + $0x4f8] sm:$0xff] %v6720_v50  ;;  %7234 = vst [vmem:[%s8249_s21 + $0x508] sm:$0xff] %v6722_v51  ;;  %v6729_v44 = vadd.f32 %v4676_v56, %v3657_v49  ;;  %v1419_v58 = vrot.slane %v1397_v57, %v8221_v5  ;;  %v1427_v63 = vcombine.high %v1405_v38, %v1405_v38  ;;  %v3662_v38 = vld [vmem:[%s8207_s28 + $0x568] sm:$0xff]  ;;  %v3667_v50 = vld [vmem:[%s8207_s28 + $0x590] sm:$0xff] }
  0xff   : > { %v6724_v1 = vadd.f32 %v4656_v52, %v3652_v53  ;;  %7237 = vst [vmem:[%s8249_s21 + $0x520] sm:$0xff] %v6725_v59  ;;  %v6726_v2 = vadd.f32 %v4664_v61, %v3654_v54  ;;  %v6727_v3 = vadd.f32 %v4668_v60, %v3655_v55  ;;  %v1382_v9 = vcombine.high %v8917_v22, %v8917_v22  ;;  %v3666_v49 = vld [vmem:[%s8207_s28 + $0x588] sm:$0xff]  ;;  %v3664_v51 = vld [vmem:[%s8207_s28 + $0x578] sm:$0xff]  ;;  %v3669_v57 = vld [vmem:[%s8207_s28 + $0x5a0] sm:$0xff] }
 0x100   : > { %v4672_v10 = vrot.slane %v1381_v62, %v8225_v8  ;;  %7241 = vst [vmem:[%s8249_s21 + $0x540] sm:$0xff] %v6729_v44  ;;  %v4680_v11 = vrot.slane %v1419_v58, %v8225_v8  ;;  %v4684_v12 = vrot.slane %v1427_v63, %v8225_v8  ;;  %v1429_v13 = vcombine.high %v1419_v58, %v1419_v58  ;;  %v3668_v60 = vld [vmem:[%s8207_s28 + $0x598] sm:$0xff] }
 0x101   : > { %7236 = vst [vmem:[%s8249_s21 + $0x518] sm:$0xff] %v6724_v1  ;;  %7238 = vst [vmem:[%s8249_s21 + $0x528] sm:$0xff] %v6726_v2  ;;  %v1396_v16 = vrot.slane %v1382_v9, %v8221_v5  ;;  %v1438_v17 = vrot.slane %v247_v0, %v8221_v5  ;;  %v1431_v18 = vcombine.high %v247_v0, %v247_v0  ;;  %v3673_v1 = vld [vmem:[%s8207_s28 + $0x5c0] sm:$0xff] }
 0x102   : > { %7239 = vst [vmem:[%s8249_s21 + $0x530] sm:$0xff] %v6727_v3  ;;  %v8980_v19 = vrot.slane %v8970_v14, %v8221_v5  ;;  %v6728_v20 = vadd.f32 %v4672_v10, %v3656_v4  ;;  %v6730_v21 = vadd.f32 %v4680_v11, %v3658_v6  ;;  %v6731_v22 = vadd.f32 %v4684_v12, %v3659_v7  ;;  %v3670_v4 = vld [vmem:[%s8207_s28 + $0x5a8] sm:$0xff]  ;;  %v3671_v11 = vld [vmem:[%s8207_s28 + $0x5b0] sm:$0xff] }
 0x103   : > { %v4688_v24 = vrot.slane %v1429_v13, %v8225_v8  ;;  %v1412_v25 = vrot.slane %v1396_v16, %v8221_v5  ;;  %v1398_v26 = vcombine.high %v1396_v16, %v1396_v16  ;;  %v1454_v27 = vrot.slane %v1438_v17, %v8221_v5  ;;  %v3672_v16 = vld [vmem:[%s8207_s28 + $0x5b8] sm:$0xff] }
 0x104   : > { %v1446_v28 = vcombine.high %v1438_v17, %v1438_v17  ;;  %7240 = vst [vmem:[%s8249_s21 + $0x538] sm:$0xff] %v6728_v20  ;;  %7242 = vst [vmem:[%s8249_s21 + $0x548] sm:$0xff] %v6730_v21  ;;  %v1445_v31 = vrot.slane %v1431_v18, %v8221_v5  ;;  %v8992_v32 = vrot.slane %v8980_v19, %v8221_v5  ;;  %v3674_v18 = vld [vmem:[%s8207_s28 + $0x5c8] sm:$0xff]  ;;  %v249_v21 = vld [vmem:[%s8215_s3 + $0xc0] sm:$0xff] }
 0x105   : > { %7243 = vst [vmem:[%s8249_s21 + $0x550] sm:$0xff] %v6731_v22  ;;  %v6732_v29 = vadd.f32 %v4688_v24, %v3660_v15  ;;  %v1495_v33 = vcombine.high %v8980_v19, %v8980_v19  ;;  %v4692_v34 = vrot.slane %v1412_v25, %v8225_v8  ;;  %v1426_v35 = vrot.slane %v1398_v26, %v8221_v5  ;;  %v3675_v26 = vld [vmem:[%s8207_s28 + $0x5d0] sm:$0xff] }
 0x106   : > { %v1428_v23 = vcombine.high %v1412_v25, %v1412_v25  ;;  %v4708_v37 = vrot.slane %v1454_v27, %v8225_v8  ;;  %v1468_v40 = vrot.slane %v1446_v28, %v8221_v5  ;;  %v1476_v41 = vcombine.high %v1454_v27, %v1454_v27 }
 0x107   : > { %7244 = vst [vmem:[%s8249_s21 + $0x558] sm:$0xff] %v6732_v29  ;;  %v1461_v42 = vrot.slane %v1445_v31, %v8221_v5  ;;  %v1447_v43 = vcombine.high %v1445_v31, %v1445_v31  ;;  %v6733_v45 = vadd.f32 %v4692_v34, %v3661_v30  ;;  %v4696_v47 = vrot.slane %v1426_v35, %v8225_v8  ;;  %v3676_v30 = vld [vmem:[%s8207_s28 + $0x5d8] sm:$0xff] }
 0x108   : > { %v4700_v48 = vrot.slane %v1428_v23, %v8225_v8  ;;  %v1430_v46 = vcombine.high %v1426_v35, %v1426_v35  ;;  %v6737_v53 = vadd.f32 %v4708_v37, %v3665_v36  ;;  %v4712_v54 = vrot.slane %v1468_v40, %v8225_v8 }
 0x109   : > { %v4716_v55 = vrot.slane %v1476_v41, %v8225_v8  ;;  %v1478_v56 = vcombine.high %v1468_v40, %v1468_v40  ;;  %7245 = vst [vmem:[%s8249_s21 + $0x560] sm:$0xff] %v6733_v45  ;;  %v6734_v52 = vadd.f32 %v4696_v47, %v3662_v38  ;;  %v4724_v62 = vrot.slane %v1461_v42, %v8225_v8  ;;  %v3677_v41 = vld [vmem:[%s8207_s28 + $0x5e0] sm:$0xff] }
 0x10a   : > { %v6735_v59 = vadd.f32 %v4700_v48, %v3663_v39  ;;  %v4704_v61 = vrot.slane %v1430_v46, %v8225_v8  ;;  %7249 = vst [vmem:[%s8249_s21 + $0x580] sm:$0xff] %v6737_v53  ;;  %v6738_v44 = vadd.f32 %v4712_v54, %v3666_v49  ;;  %v1475_v0 = vrot.slane %v1447_v43, %v8221_v5  ;;  %v9056_v39 = vld [vmem:[%s8215_s3 + $0xc8] sm:$0xff]  ;;  %v3681_v49 = vld [vmem:[%s8207_s28 + $0x600] sm:$0xff]  ;;  %v3679_v53 = vld [vmem:[%s8207_s28 + $0x5f0] sm:$0xff] }
 0x10b   : > { %v6739_v58 = vadd.f32 %v4716_v55, %v3667_v50  ;;  %v4720_v63 = vrot.slane %v1478_v56, %v8225_v8  ;;  %7246 = vst [vmem:[%s8249_s21 + $0x568] sm:$0xff] %v6734_v52  ;;  %v6741_v3 = vadd.f32 %v4724_v62, %v3669_v57  ;;  %v1477_v6 = vcombine.high %v1461_v42, %v1461_v42  ;;  %v3682_v62 = vld [vmem:[%s8207_s28 + $0x608] sm:$0xff] }
 0x10c   : > { %7247 = vst [vmem:[%s8249_s21 + $0x570] sm:$0xff] %v6735_v59  ;;  %v6736_v2 = vadd.f32 %v4704_v61, %v3664_v51  ;;  %v4740_v7 = vrot.slane %v8992_v32, %v8225_v8  ;;  %7250 = vst [vmem:[%s8249_s21 + $0x588] sm:$0xff] %v6738_v44  ;;  %v4728_v10 = vrot.slane %v1475_v0, %v8225_v8  ;;  %v3678_v51 = vld [vmem:[%s8207_s28 + $0x5e8] sm:$0xff]  ;;  %v3683_v44 = vld [vmem:[%s8207_s28 + $0x610] sm:$0xff] }
 0x10d   : > { %7251 = vst [vmem:[%s8249_s21 + $0x590] sm:$0xff] %v6739_v58  ;;  %v6740_v9 = vadd.f32 %v4720_v63, %v3668_v60  ;;  %v1479_v12 = vcombine.high %v1475_v0, %v1475_v0  ;;  %v1517_v13 = vrot.slane %v1495_v33, %v8221_v5  ;;  %7253 = vst [vmem:[%s8249_s21 + $0x5a0] sm:$0xff] %v6741_v3  ;;  %v3680_v58 = vld [vmem:[%s8207_s28 + $0x5f8] sm:$0xff]  ;;  %v3685_v3 = vld [vmem:[%s8207_s28 + $0x620] sm:$0xff] }
 0x10e   : > { %7248 = vst [vmem:[%s8249_s21 + $0x578] sm:$0xff] %v6736_v2  ;;  %v4732_v15 = vrot.slane %v1477_v6, %v8225_v8  ;;  %v6745_v17 = vadd.f32 %v4740_v7, %v3673_v1  ;;  %v1525_v19 = vcombine.high %v8992_v32, %v8992_v32  ;;  %v1480_v20 = vcombine.high %v8970_v14, %v8970_v14 }
 0x10f   : > { %7252 = vst [vmem:[%s8249_s21 + $0x598] sm:$0xff] %v6740_v9  ;;  %v6742_v22 = vadd.f32 %v4728_v10, %v3670_v4  ;;  %v4736_v24 = vrot.slane %v1479_v12, %v8225_v8  ;;  %v4744_v25 = vrot.slane %v1517_v13, %v8225_v8  ;;  %v1527_v27 = vcombine.high %v1517_v13, %v1517_v13  ;;  %v3684_v9 = vld [vmem:[%s8207_s28 + $0x618] sm:$0xff] }
 0x110   : > { %v6743_v28 = vadd.f32 %v4732_v15, %v3671_v11  ;;  %7257 = vst [vmem:[%s8249_s21 + $0x5c0] sm:$0xff] %v6745_v17  ;;  %v4748_v29 = vrot.slane %v1525_v19, %v8225_v8  ;;  %v1494_v14 = vrot.slane %v1480_v20, %v8221_v5  ;;  %v1536_v31 = vrot.slane %v249_v21, %v8221_v5 }
 0x111   : > { %7254 = vst [vmem:[%s8249_s21 + $0x5a8] sm:$0xff] %v6742_v22  ;;  %v6744_v32 = vadd.f32 %v4736_v24, %v3672_v16  ;;  %v6746_v33 = vadd.f32 %v4744_v25, %v3674_v18  ;;  %v4752_v34 = vrot.slane %v1527_v27, %v8225_v8  ;;  %v1529_v35 = vcombine.high %v249_v21, %v249_v21  ;;  %v3686_v18 = vld [vmem:[%s8207_s28 + $0x628] sm:$0xff]  ;;  %v3687_v24 = vld [vmem:[%s8207_s28 + $0x630] sm:$0xff] }
 0x112   : > { %7255 = vst [vmem:[%s8249_s21 + $0x5b0] sm:$0xff] %v6743_v28  ;;  %v6747_v23 = vadd.f32 %v4748_v29, %v3675_v26  ;;  %v1510_v36 = vrot.slane %v1494_v14, %v8221_v5  ;;  %v1496_v37 = vcombine.high %v1494_v14, %v1494_v14  ;;  %v1552_v38 = vrot.slane %v1536_v31, %v8221_v5  ;;  %v3689_v26 = vld [vmem:[%s8207_s28 + $0x640] sm:$0xff]  ;;  %v3688_v29 = vld [vmem:[%s8207_s28 + $0x638] sm:$0xff] }
 0x113   : > { %7256 = vst [vmem:[%s8249_s21 + $0x5b8] sm:$0xff] %v6744_v32  ;;  %7258 = vst [vmem:[%s8249_s21 + $0x5c8] sm:$0xff] %v6746_v33  ;;  %v6748_v40 = vadd.f32 %v4752_v34, %v3676_v30  ;;  %v1544_v42 = vcombine.high %v1536_v31, %v1536_v31  ;;  %v1543_v43 = vrot.slane %v1529_v35, %v8221_v5  ;;  %v251_v32 = vld [vmem:[%s8215_s3 + $0xd0] sm:$0xff] }
 0x114   : > { %v9064_v45 = vrot.slane %v9056_v39, %v8221_v5  ;;  %7259 = vst [vmem:[%s8249_s21 + $0x5d0] sm:$0xff] %v6747_v23  ;;  %v4756_v47 = vrot.slane %v1510_v36, %v8225_v8  ;;  %v1524_v48 = vrot.slane %v1496_v37, %v8221_v5  ;;  %v1526_v46 = vcombine.high %v1510_v36, %v1510_v36  ;;  %v3691_v23 = vld [vmem:[%s8207_s28 + $0x650] sm:$0xff] }
 0x115   : > { %v4772_v50 = vrot.slane %v1552_v38, %v8225_v8  ;;  %7260 = vst [vmem:[%s8249_s21 + $0x5d8] sm:$0xff] %v6748_v40  ;;  %v1566_v54 = vrot.slane %v1544_v42, %v8221_v5  ;;  %v1574_v55 = vcombine.high %v1552_v38, %v1552_v38  ;;  %v1559_v56 = vrot.slane %v1543_v43, %v8221_v5  ;;  %v3690_v40 = vld [vmem:[%s8207_s28 + $0x648] sm:$0xff] }
 0x116   : > { %v1545_v57 = vcombine.high %v1543_v43, %v1543_v43  ;;  %v6749_v52 = vadd.f32 %v4756_v47, %v3677_v41  ;;  %v4760_v59 = vrot.slane %v1524_v48, %v8225_v8  ;;  %v4764_v61 = vrot.slane %v1526_v46, %v8225_v8  ;;  %v3692_v46 = vld [vmem:[%s8207_s28 + $0x658] sm:$0xff] }
 0x117   : > { %v1528_v60 = vcombine.high %v1524_v48, %v1524_v48  ;;  %v6753_v63 = vadd.f32 %v4772_v50, %v3681_v49  ;;  %v4776_v0 = vrot.slane %v1566_v54, %v8225_v8  ;;  %v4780_v1 = vrot.slane %v1574_v55, %v8225_v8 }
 0x118   : > { %v1576_v2 = vcombine.high %v1566_v54, %v1566_v54  ;;  %7261 = vst [vmem:[%s8249_s21 + $0x5e0] sm:$0xff] %v6749_v52  ;;  %v6750_v4 = vadd.f32 %v4760_v59, %v3678_v51  ;;  %v6751_v6 = vadd.f32 %v4764_v61, %v3679_v53  ;;  %v4788_v10 = vrot.slane %v1559_v56, %v8225_v8  ;;  %v3697_v51 = vld [vmem:[%s8207_s28 + $0x680] sm:$0xff] }
 0x119   : > { %v4768_v7 = vrot.slane %v1528_v60, %v8225_v8  ;;  %7265 = vst [vmem:[%s8249_s21 + $0x600] sm:$0xff] %v6753_v63  ;;  %v6754_v11 = vadd.f32 %v4776_v0, %v3682_v62  ;;  %v6755_v12 = vadd.f32 %v4780_v1, %v3683_v44  ;;  %v1573_v15 = vrot.slane %v1545_v57, %v8221_v5  ;;  %v3699_v44 = vld [vmem:[%s8207_s28 + $0x690] sm:$0xff]  ;;  %v3694_v63 = vld [vmem:[%s8207_s28 + $0x668] sm:$0xff] }
 0x11a   : > { %v4784_v13 = vrot.slane %v1576_v2, %v8225_v8  ;;  %7262 = vst [vmem:[%s8249_s21 + $0x5e8] sm:$0xff] %v6750_v4  ;;  %7263 = vst [vmem:[%s8249_s21 + $0x5f0] sm:$0xff] %v6751_v6  ;;  %v6757_v17 = vadd.f32 %v4788_v10, %v3685_v3  ;;  %v1575_v19 = vcombine.high %v1559_v56, %v1559_v56  ;;  %v3693_v56 = vld [vmem:[%s8207_s28 + $0x660] sm:$0xff]  ;;  %v3695_v0 = vld [vmem:[%s8207_s28 + $0x670] sm:$0xff] }
 0x11b   : > { %v6752_v16 = vadd.f32 %v4768_v7, %v3680_v58  ;;  %v1601_v20 = vrot.slane %v9064_v45, %v8221_v5  ;;  %7266 = vst [vmem:[%s8249_s21 + $0x608] sm:$0xff] %v6754_v11  ;;  %7267 = vst [vmem:[%s8249_s21 + $0x610] sm:$0xff] %v6755_v12  ;;  %v4792_v22 = vrot.slane %v1573_v15, %v8225_v8  ;;  %v3698_v10 = vld [vmem:[%s8207_s28 + $0x688] sm:$0xff]  ;;  %v3696_v11 = vld [vmem:[%s8207_s28 + $0x678] sm:$0xff] }
 0x11c   : > { %v6756_v21 = vadd.f32 %v4784_v13, %v3684_v9  ;;  %v1577_v25 = vcombine.high %v1573_v15, %v1573_v15  ;;  %v1593_v27 = vcombine.high %v9064_v45, %v9064_v45  ;;  %7269 = vst [vmem:[%s8249_s21 + $0x620] sm:$0xff] %v6757_v17  ;;  %v4796_v28 = vrot.slane %v1575_v19, %v8225_v8  ;;  %v252_v17 = vld [vmem:[%s8215_s3 + $0xd8] sm:$0xff] }
 0x11d   : > { %7264 = vst [vmem:[%s8249_s21 + $0x5f8] sm:$0xff] %v6752_v16  ;;  %v4804_v30 = vrot.slane %v1601_v20, %v8225_v8  ;;  %v1623_v14 = vcombine.high %v1601_v20, %v1601_v20  ;;  %v1578_v31 = vcombine.high %v9056_v39, %v9056_v39  ;;  %v6758_v33 = vadd.f32 %v4792_v22, %v3686_v18 }
 0x11e   : > { %7268 = vst [vmem:[%s8249_s21 + $0x618] sm:$0xff] %v6756_v21  ;;  %v4800_v34 = vrot.slane %v1577_v25, %v8225_v8  ;;  %v1615_v35 = vrot.slane %v1593_v27, %v8221_v5  ;;  %v1634_v36 = vrot.slane %v251_v32, %v8221_v5  ;;  %v6759_v37 = vadd.f32 %v4796_v28, %v3687_v24  ;;  %v3700_v21 = vld [vmem:[%s8207_s28 + $0x698] sm:$0xff] }
 0x11f   : > { %v6761_v38 = vadd.f32 %v4804_v30, %v3689_v26  ;;  %v4812_v39 = vrot.slane %v1623_v14, %v8225_v8  ;;  %v1592_v41 = vrot.slane %v1578_v31, %v8221_v5  ;;  %7270 = vst [vmem:[%s8249_s21 + $0x628] sm:$0xff] %v6758_v33  ;;  %v1627_v3 = vcombine.high %v251_v32, %v251_v32 }
 0x120   : > { %v6760_v42 = vadd.f32 %v4800_v34, %v3688_v29  ;;  %v4808_v43 = vrot.slane %v1615_v35, %v8225_v8  ;;  %v1625_v45 = vcombine.high %v1615_v35, %v1615_v35  ;;  %v1650_v47 = vrot.slane %v1634_v36, %v8221_v5  ;;  %7271 = vst [vmem:[%s8249_s21 + $0x630] sm:$0xff] %v6759_v37  ;;  %v3701_v29 = vld [vmem:[%s8207_s28 + $0x6a0] sm:$0xff]  ;;  %v3703_v37 = vld [vmem:[%s8207_s28 + $0x6b0] sm:$0xff] }
 0x121   : > { %7273 = vst [vmem:[%s8249_s21 + $0x640] sm:$0xff] %v6761_v38  ;;  %v6763_v48 = vadd.f32 %v4812_v39, %v3691_v23  ;;  %v1608_v49 = vrot.slane %v1592_v41, %v8221_v5  ;;  %v1594_v50 = vcombine.high %v1592_v41, %v1592_v41  ;;  %v1642_v53 = vcombine.high %v1634_v36, %v1634_v36  ;;  %v3705_v23 = vld [vmem:[%s8207_s28 + $0x6c0] sm:$0xff]  ;;  %v3702_v36 = vld [vmem:[%s8207_s28 + $0x6a8] sm:$0xff] }
 0x122   : > { %7272 = vst [vmem:[%s8249_s21 + $0x638] sm:$0xff] %v6760_v42  ;;  %v6762_v54 = vadd.f32 %v4808_v43, %v3690_v40  ;;  %v4816_v55 = vrot.slane %v1625_v45, %v8225_v8  ;;  %v4836_v57 = vrot.slane %v1650_v47, %v8225_v8  ;;  %v1672_v52 = vcombine.high %v1650_v47, %v1650_v47 }
 0x123   : > { %7275 = vst [vmem:[%s8249_s21 + $0x650] sm:$0xff] %v6763_v48  ;;  %v4820_v59 = vrot.slane %v1608_v49, %v8225_v8  ;;  %v1622_v61 = vrot.slane %v1594_v50, %v8221_v5  ;;  %v1624_v60 = vcombine.high %v1608_v49, %v1608_v49  ;;  %v1664_v62 = vrot.slane %v1642_v53, %v8221_v5  ;;  %v3706_v48 = vld [vmem:[%s8207_s28 + $0x6c8] sm:$0xff]  ;;  %v3704_v49 = vld [vmem:[%s8207_s28 + $0x6b8] sm:$0xff] }
 0x124   : > { %7274 = vst [vmem:[%s8249_s21 + $0x648] sm:$0xff] %v6762_v54  ;;  %v6764_v58 = vadd.f32 %v4816_v55, %v3692_v46  ;;  %v6769_v1 = vadd.f32 %v4836_v57, %v3697_v51  ;;  %v4844_v2 = vrot.slane %v1672_v52, %v8225_v8  ;;  %v1641_v16 = vrot.slane %v1627_v3, %v8221_v5  ;;  %v3707_v46 = vld [vmem:[%s8207_s28 + $0x6d0] sm:$0xff]  ;;  %v3708_v52 = vld [vmem:[%s8207_s28 + $0x6d8] sm:$0xff] }
 0x125   : > { %v6765_v4 = vadd.f32 %v4820_v59, %v3693_v56  ;;  %v4824_v6 = vrot.slane %v1622_v61, %v8225_v8  ;;  %v4828_v7 = vrot.slane %v1624_v60, %v8225_v8  ;;  %v1626_v9 = vcombine.high %v1622_v61, %v1622_v61  ;;  %v253_v61 = vld [vmem:[%s8215_s3 + $0xe0] sm:$0xff] }
 0x126   : > { %7276 = vst [vmem:[%s8249_s21 + $0x658] sm:$0xff] %v6764_v58  ;;  %7281 = vst [vmem:[%s8249_s21 + $0x680] sm:$0xff] %v6769_v1  ;;  %v4840_v12 = vrot.slane %v1664_v62, %v8225_v8  ;;  %v6771_v13 = vadd.f32 %v4844_v2, %v3699_v44  ;;  %v1674_v15 = vcombine.high %v1664_v62, %v1664_v62  ;;  %v3709_v58 = vld [vmem:[%s8207_s28 + $0x6e0] sm:$0xff] }
 0x127   : > { %7277 = vst [vmem:[%s8249_s21 + $0x660] sm:$0xff] %v6765_v4  ;;  %v6766_v18 = vadd.f32 %v4824_v6, %v3694_v63  ;;  %v6767_v19 = vadd.f32 %v4828_v7, %v3695_v0  ;;  %v4832_v20 = vrot.slane %v1626_v9, %v8225_v8  ;;  %v1683_v22 = vrot.slane %v252_v17, %v8221_v5  ;;  %v9191_v4 = vld [vmem:[%s8215_s3 + $0xe8] sm:$0xff]  ;;  %v3711_v9 = vld [vmem:[%s8207_s28 + $0x6f0] sm:$0xff] }
 0x128   : > { %v6770_v24 = vadd.f32 %v4840_v12, %v3698_v10  ;;  %7283 = vst [vmem:[%s8249_s21 + $0x690] sm:$0xff] %v6771_v13  ;;  %v4848_v25 = vrot.slane %v1674_v15, %v8225_v8  ;;  %v1657_v26 = vrot.slane %v1641_v16, %v8221_v5  ;;  %v1643_v27 = vcombine.high %v1641_v16, %v1641_v16  ;;  %v3710_v13 = vld [vmem:[%s8207_s28 + $0x6e8] sm:$0xff] }
 0x129   : > { %7278 = vst [vmem:[%s8249_s21 + $0x668] sm:$0xff] %v6766_v18  ;;  %7279 = vst [vmem:[%s8249_s21 + $0x670] sm:$0xff] %v6767_v19  ;;  %v6768_v28 = vadd.f32 %v4832_v20, %v3696_v11  ;;  %v1699_v30 = vrot.slane %v1683_v22, %v8221_v5  ;;  %v1691_v14 = vcombine.high %v1683_v22, %v1683_v22  ;;  %v3713_v20 = vld [vmem:[%s8207_s28 + $0x700] sm:$0xff] }
 0x12a   : > { %v1676_v31 = vcombine.high %v252_v17, %v252_v17  ;;  %7282 = vst [vmem:[%s8249_s21 + $0x688] sm:$0xff] %v6770_v24  ;;  %v6772_v32 = vadd.f32 %v4848_v25, %v3700_v21  ;;  %v4852_v33 = vrot.slane %v1657_v26, %v8225_v8  ;;  %v1671_v34 = vrot.slane %v1643_v27, %v8221_v5  ;;  %v3712_v25 = vld [vmem:[%s8207_s28 + $0x6f8] sm:$0xff] }
 0x12b   : > { %v1673_v35 = vcombine.high %v1657_v26, %v1657_v26  ;;  %7280 = vst [vmem:[%s8249_s21 + $0x678] sm:$0xff] %v6768_v28  ;;  %v4868_v38 = vrot.slane %v1699_v30, %v8225_v8  ;;  %v1713_v40 = vrot.slane %v1691_v14, %v8221_v5  ;;  %v1721_v39 = vcombine.high %v1699_v30, %v1699_v30  ;;  %v3714_v14 = vld [vmem:[%s8207_s28 + $0x708] sm:$0xff] }
 0x12c   : > { %v1690_v41 = vrot.slane %v1676_v31, %v8221_v5  ;;  %7284 = vst [vmem:[%s8249_s21 + $0x698] sm:$0xff] %v6772_v32  ;;  %v6773_v42 = vadd.f32 %v4852_v33, %v3701_v29  ;;  %v4856_v43 = vrot.slane %v1671_v34, %v8225_v8  ;;  %v1675_v47 = vcombine.high %v1671_v34, %v1671_v34  ;;  %v3715_v31 = vld [vmem:[%s8207_s28 + $0x710] sm:$0xff] }
 0x12d   : > { %v4860_v45 = vrot.slane %v1673_v35, %v8225_v8  ;;  %v6777_v50 = vadd.f32 %v4868_v38, %v3705_v23  ;;  %v4872_v51 = vrot.slane %v1713_v40, %v8225_v8  ;;  %v4876_v53 = vrot.slane %v1721_v39, %v8225_v8 }
 0x12e   : > { %v1723_v54 = vcombine.high %v1713_v40, %v1713_v40  ;;  %7285 = vst [vmem:[%s8249_s21 + $0x6a0] sm:$0xff] %v6773_v42  ;;  %v6774_v55 = vadd.f32 %v4856_v43, %v3702_v36  ;;  %v4864_v57 = vrot.slane %v1675_v47, %v8225_v8  ;;  %v1706_v59 = vrot.slane %v1690_v41, %v8221_v5  ;;  %v3716_v40 = vld [vmem:[%s8207_s28 + $0x718] sm:$0xff]  ;;  %v3721_v43 = vld [vmem:[%s8207_s28 + $0x740] sm:$0xff] }
 0x12f   : > { %v6775_v56 = vadd.f32 %v4860_v45, %v3703_v37  ;;  %7289 = vst [vmem:[%s8249_s21 + $0x6c0] sm:$0xff] %v6777_v50  ;;  %v6778_v60 = vadd.f32 %v4872_v51, %v3706_v48  ;;  %v6779_v62 = vadd.f32 %v4876_v53, %v3707_v46  ;;  %v1692_v63 = vcombine.high %v1690_v41, %v1690_v41  ;;  %v3717_v37 = vld [vmem:[%s8207_s28 + $0x720] sm:$0xff]  ;;  %v3718_v46 = vld [vmem:[%s8207_s28 + $0x728] sm:$0xff] }
 0x130   : > { %v4880_v44 = vrot.slane %v1723_v54, %v8225_v8  ;;  %7286 = vst [vmem:[%s8249_s21 + $0x6a8] sm:$0xff] %v6774_v55  ;;  %v6776_v0 = vadd.f32 %v4864_v57, %v3704_v49  ;;  %v4884_v1 = vrot.slane %v1706_v59, %v8225_v8  ;;  %v1722_v2 = vcombine.high %v1706_v59, %v1706_v59  ;;  %v3719_v49 = vld [vmem:[%s8207_s28 + $0x730] sm:$0xff] }
 0x131   : > { %7287 = vst [vmem:[%s8249_s21 + $0x6b0] sm:$0xff] %v6775_v56  ;;  %v1732_v3 = vrot.slane %v253_v61, %v8221_v5  ;;  %7290 = vst [vmem:[%s8249_s21 + $0x6c8] sm:$0xff] %v6778_v60  ;;  %v1720_v7 = vrot.slane %v1692_v63, %v8221_v5  ;;  %v1725_v10 = vcombine.high %v253_v61, %v253_v61  ;;  %v255_v56 = vld [vmem:[%s8215_s3 + $0xf0] sm:$0xff] }
 0x132   : > { %7291 = vst [vmem:[%s8249_s21 + $0x6d0] sm:$0xff] %v6779_v62  ;;  %v6780_v6 = vadd.f32 %v4880_v44, %v3708_v52  ;;  %v9199_v11 = vrot.slane %v9191_v4, %v8221_v5  ;;  %7288 = vst [vmem:[%s8249_s21 + $0x6b8] sm:$0xff] %v6776_v0  ;;  %v6781_v12 = vadd.f32 %v4884_v1, %v3709_v58  ;;  %v3720_v52 = vld [vmem:[%s8207_s28 + $0x738] sm:$0xff]  ;;  %v3723_v0 = vld [vmem:[%s8207_s28 + $0x750] sm:$0xff] }
 0x133   : > { %v4892_v15 = vrot.slane %v1722_v2, %v8225_v8  ;;  %v1748_v16 = vrot.slane %v1732_v3, %v8221_v5  ;;  %v1740_v17 = vcombine.high %v1732_v3, %v1732_v3  ;;  %v4888_v18 = vrot.slane %v1720_v7, %v8225_v8  ;;  %v9243_v62 = vld [vmem:[%s8215_s3 + $0xf8] sm:$0xff] }
 0x134   : > { %7292 = vst [vmem:[%s8249_s21 + $0x6d8] sm:$0xff] %v6780_v6  ;;  %v1724_v19 = vcombine.high %v1720_v7, %v1720_v7  ;;  %v1739_v21 = vrot.slane %v1725_v10, %v8221_v5  ;;  %v1797_v22 = vrot.slane %v9199_v11, %v8221_v5  ;;  %7293 = vst [vmem:[%s8249_s21 + $0x6e0] sm:$0xff] %v6781_v12  ;;  %v3722_v10 = vld [vmem:[%s8207_s28 + $0x748] sm:$0xff] }
 0x135   : > { %v6783_v24 = vadd.f32 %v4892_v15, %v3711_v9  ;;  %v4900_v26 = vrot.slane %v1748_v16, %v8225_v8  ;;  %v1762_v27 = vrot.slane %v1740_v17, %v8221_v5  ;;  %v1770_v28 = vcombine.high %v1748_v16, %v1748_v16 }
 0x136   : > { %v6782_v29 = vadd.f32 %v4888_v18, %v3710_v13  ;;  %v4896_v30 = vrot.slane %v1724_v19, %v8225_v8  ;;  %v1755_v32 = vrot.slane %v1739_v21, %v8221_v5  ;;  %v1741_v33 = vcombine.high %v1739_v21, %v1739_v21  ;;  %v3724_v18 = vld [vmem:[%s8207_s28 + $0x758] sm:$0xff]  ;;  %v3729_v21 = vld [vmem:[%s8207_s28 + $0x780] sm:$0xff] }
 0x137   : > { %7295 = vst [vmem:[%s8249_s21 + $0x6f0] sm:$0xff] %v6783_v24  ;;  %v6785_v34 = vadd.f32 %v4900_v26, %v3713_v20  ;;  %v4904_v35 = vrot.slane %v1762_v27, %v8225_v8  ;;  %v4908_v23 = vrot.slane %v1770_v28, %v8225_v8  ;;  %v1772_v36 = vcombine.high %v1762_v27, %v1762_v27  ;;  %v3725_v27 = vld [vmem:[%s8207_s28 + $0x760] sm:$0xff] }
 0x138   : > { %7294 = vst [vmem:[%s8249_s21 + $0x6e8] sm:$0xff] %v6782_v29  ;;  %v6784_v38 = vadd.f32 %v4896_v30, %v3712_v25  ;;  %v4916_v39 = vrot.slane %v1755_v32, %v8225_v8  ;;  %v1769_v41 = vrot.slane %v1741_v33, %v8221_v5  ;;  %v1771_v42 = vcombine.high %v1755_v32, %v1755_v32  ;;  %v3731_v33 = vld [vmem:[%s8207_s28 + $0x790] sm:$0xff] }
 0x139   : > { %7297 = vst [vmem:[%s8249_s21 + $0x700] sm:$0xff] %v6785_v34  ;;  %v6786_v45 = vadd.f32 %v4904_v35, %v3714_v14  ;;  %v6787_v47 = vadd.f32 %v4908_v23, %v3715_v31  ;;  %v4912_v48 = vrot.slane %v1772_v36, %v8225_v8  ;;  %v4932_v50 = vrot.slane %v1797_v22, %v8225_v8  ;;  %v3726_v35 = vld [vmem:[%s8207_s28 + $0x768] sm:$0xff]  ;;  %v3727_v23 = vld [vmem:[%s8207_s28 + $0x770] sm:$0xff] }
 0x13a   : > { %7296 = vst [vmem:[%s8249_s21 + $0x6f8] sm:$0xff] %v6784_v38  ;;  %v6789_v51 = vadd.f32 %v4916_v39, %v3717_v37  ;;  %v4920_v53 = vrot.slane %v1769_v41, %v8225_v8  ;;  %v4924_v54 = vrot.slane %v1771_v42, %v8225_v8  ;;  %v1773_v55 = vcombine.high %v1769_v41, %v1769_v41 }
 0x13b   : > { %7298 = vst [vmem:[%s8249_s21 + $0x708] sm:$0xff] %v6786_v45  ;;  %7299 = vst [vmem:[%s8249_s21 + $0x710] sm:$0xff] %v6787_v47  ;;  %v6788_v57 = vadd.f32 %v4912_v48, %v3716_v40  ;;  %v6793_v59 = vadd.f32 %v4932_v50, %v3721_v43  ;;  %v1789_v61 = vcombine.high %v9199_v11, %v9199_v11  ;;  %v3730_v43 = vld [vmem:[%s8207_s28 + $0x788] sm:$0xff]  ;;  %v3733_v45 = vld [vmem:[%s8207_s28 + $0x7a0] sm:$0xff] }
 0x13c   : > { %v1819_v60 = vcombine.high %v1797_v22, %v1797_v22  ;;  %7301 = vst [vmem:[%s8249_s21 + $0x720] sm:$0xff] %v6789_v51  ;;  %v6790_v44 = vadd.f32 %v4920_v53, %v3718_v46  ;;  %v6791_v58 = vadd.f32 %v4924_v54, %v3719_v49  ;;  %v4928_v63 = vrot.slane %v1773_v55, %v8225_v8  ;;  %v3728_v47 = vld [vmem:[%s8207_s28 + $0x778] sm:$0xff] }
 0x13d   : > { %v1774_v1 = vcombine.high %v9191_v4, %v9191_v4  ;;  %7300 = vst [vmem:[%s8249_s21 + $0x718] sm:$0xff] %v6788_v57  ;;  %7305 = vst [vmem:[%s8249_s21 + $0x740] sm:$0xff] %v6793_v59  ;;  %v1811_v2 = vrot.slane %v1789_v61, %v8221_v5  ;;  %v1830_v6 = vrot.slane %v255_v56, %v8221_v5  ;;  %v3732_v55 = vld [vmem:[%s8207_s28 + $0x798] sm:$0xff] }
 0x13e   : > { %v4940_v3 = vrot.slane %v1819_v60, %v8225_v8  ;;  %v1823_v7 = vcombine.high %v255_v56, %v255_v56  ;;  %7302 = vst [vmem:[%s8249_s21 + $0x728] sm:$0xff] %v6790_v44  ;;  %7303 = vst [vmem:[%s8249_s21 + $0x730] sm:$0xff] %v6791_v58  ;;  %v6792_v9 = vadd.f32 %v4928_v63, %v3720_v52  ;;  %v3735_v58 = vld [vmem:[%s8207_s28 + $0x7b0] sm:$0xff] }
 0x13f   : > { %v1788_v11 = vrot.slane %v1774_v1, %v8221_v5  ;;  %v9261_v4 = vrot.slane %v9243_v62, %v8221_v5  ;;  %v1872_v12 = vcombine.high %v9243_v62, %v9243_v62  ;;  %v4936_v13 = vrot.slane %v1811_v2, %v8225_v8  ;;  %v9308_v1 = vld [vmem:[%s8215_s3 + $0x100] sm:$0xff]  ;;  %v3738_v62 = vld [vmem:[%s8207_s28 + $0x7c8] sm:$0xff] }
 0x140   : > { %v6795_v15 = vadd.f32 %v4940_v3, %v3723_v0  ;;  %v1821_v16 = vcombine.high %v1811_v2, %v1811_v2  ;;  %v1846_v17 = vrot.slane %v1830_v6, %v8221_v5  ;;  %7304 = vst [vmem:[%s8249_s21 + $0x738] sm:$0xff] %v6792_v9  ;;  %v1838_v22 = vcombine.high %v1830_v6, %v1830_v6  ;;  %v3734_v3 = vld [vmem:[%s8207_s28 + $0x7a8] sm:$0xff] }
 0x141   : > { %v1804_v19 = vrot.slane %v1788_v11, %v8221_v5  ;;  %v1790_v20 = vcombine.high %v1788_v11, %v1788_v11  ;;  %v1837_v24 = vrot.slane %v1823_v7, %v8221_v5  ;;  %v6794_v25 = vadd.f32 %v4936_v13, %v3722_v10  ;;  %v3737_v7 = vld [vmem:[%s8207_s28 + $0x7c0] sm:$0xff] }
 0x142   : > { %7307 = vst [vmem:[%s8249_s21 + $0x750] sm:$0xff] %v6795_v15  ;;  %v4944_v26 = vrot.slane %v1821_v16, %v8225_v8  ;;  %v4964_v28 = vrot.slane %v1846_v17, %v8225_v8  ;;  %v1868_v29 = vcombine.high %v1846_v17, %v1846_v17  ;;  %v1860_v32 = vrot.slane %v1838_v22, %v8221_v5  ;;  %v3736_v17 = vld [vmem:[%s8207_s28 + $0x7b8] sm:$0xff] }
 0x143   : > { %v4948_v30 = vrot.slane %v1804_v19, %v8225_v8  ;;  %v1818_v14 = vrot.slane %v1790_v20, %v8221_v5  ;;  %v1820_v31 = vcombine.high %v1804_v19, %v1804_v19  ;;  %7306 = vst [vmem:[%s8249_s21 + $0x748] sm:$0xff] %v6794_v25  ;;  %v1853_v38 = vrot.slane %v1837_v24, %v8221_v5  ;;  %v3739_v25 = vld [vmem:[%s8207_s28 + $0x7d0] sm:$0xff] }
 0x144   : > { %v6796_v34 = vadd.f32 %v4944_v26, %v3724_v18  ;;  %v6801_v36 = vadd.f32 %v4964_v28, %v3729_v21  ;;  %v4972_v37 = vrot.slane %v1868_v29, %v8225_v8  ;;  %v4968_v48 = vrot.slane %v1860_v32, %v8225_v8  ;;  %v3741_v26 = vld [vmem:[%s8207_s28 + $0x7e0] sm:$0xff] }
 0x145   : > { %v6797_v40 = vadd.f32 %v4948_v30, %v3725_v27  ;;  %v4952_v39 = vrot.slane %v1818_v14, %v8225_v8  ;;  %v4956_v41 = vrot.slane %v1820_v31, %v8225_v8  ;;  %v1822_v42 = vcombine.high %v1818_v14, %v1818_v14 }
 0x146   : > { %7308 = vst [vmem:[%s8249_s21 + $0x758] sm:$0xff] %v6796_v34  ;;  %7313 = vst [vmem:[%s8249_s21 + $0x780] sm:$0xff] %v6801_v36  ;;  %v6803_v46 = vadd.f32 %v4972_v37, %v3731_v33  ;;  %v1870_v49 = vcombine.high %v1860_v32, %v1860_v32  ;;  %v4980_v50 = vrot.slane %v1853_v38, %v8225_v8  ;;  %v3740_v32 = vld [vmem:[%s8207_s28 + $0x7d8] sm:$0xff]  ;;  %v3742_v33 = vld [vmem:[%s8207_s28 + $0x7e8] sm:$0xff] }
 0x147   : > { %7309 = vst [vmem:[%s8249_s21 + $0x760] sm:$0xff] %v6797_v40  ;;  %v6798_v51 = vadd.f32 %v4952_v39, %v3726_v35  ;;  %v6799_v53 = vadd.f32 %v4956_v41, %v3727_v23  ;;  %v4960_v54 = vrot.slane %v1822_v42, %v8225_v8  ;;  %v1839_v56 = vcombine.high %v1837_v24, %v1837_v24  ;;  %v3743_v40 = vld [vmem:[%s8207_s28 + $0x7f0] sm:$0xff]  ;;  %v3745_v39 = vld [vmem:[%s8207_s28 + $0x800] sm:$0xff] }
 0x148   : > { %v6802_v57 = vadd.f32 %v4968_v48, %v3730_v43  ;;  %7315 = vst [vmem:[%s8249_s21 + $0x790] sm:$0xff] %v6803_v46  ;;  %v4976_v52 = vrot.slane %v1870_v49, %v8225_v8  ;;  %v6805_v59 = vadd.f32 %v4980_v50, %v3733_v45  ;;  %v1869_v61 = vcombine.high %v1853_v38, %v1853_v38  ;;  %v3744_v49 = vld [vmem:[%s8207_s28 + $0x7f8] sm:$0xff] }
 0x149   : > { %7310 = vst [vmem:[%s8249_s21 + $0x768] sm:$0xff] %v6798_v51  ;;  %7311 = vst [vmem:[%s8249_s21 + $0x770] sm:$0xff] %v6799_v53  ;;  %v6800_v60 = vadd.f32 %v4960_v54, %v3728_v47  ;;  %v1867_v44 = vrot.slane %v1839_v56, %v8221_v5  ;;  %v1895_v63 = vrot.slane %v9261_v4, %v8221_v5  ;;  %v258_v47 = vld [vmem:[%s8215_s3 + $0x108] sm:$0xff] }
 0x14a   : > { %v1887_v0 = vcombine.high %v9261_v4, %v9261_v4  ;;  %7314 = vst [vmem:[%s8249_s21 + $0x788] sm:$0xff] %v6802_v57  ;;  %v6804_v2 = vadd.f32 %v4976_v52, %v3732_v55  ;;  %7317 = vst [vmem:[%s8249_s21 + $0x7a0] sm:$0xff] %v6805_v59  ;;  %v4988_v6 = vrot.slane %v1869_v61, %v8225_v8  ;;  %v3747_v57 = vld [vmem:[%s8207_s28 + $0x810] sm:$0xff]  ;;  %v3746_v52 = vld [vmem:[%s8207_s28 + $0x808] sm:$0xff] }
 0x14b   : > { %v1886_v9 = vrot.slane %v1872_v12, %v8221_v5  ;;  %v1928_v10 = vrot.slane %v9308_v1, %v8221_v5  ;;  %7312 = vst [vmem:[%s8249_s21 + $0x778] sm:$0xff] %v6800_v60  ;;  %v4984_v11 = vrot.slane %v1867_v44, %v8225_v8  ;;  %v1871_v4 = vcombine.high %v1867_v44, %v1867_v44 }
 0x14c   : > { %v4996_v13 = vrot.slane %v1895_v63, %v8225_v8  ;;  %v1909_v15 = vrot.slane %v1887_v0, %v8221_v5  ;;  %7316 = vst [vmem:[%s8249_s21 + $0x798] sm:$0xff] %v6804_v2  ;;  %v6807_v16 = vadd.f32 %v4988_v6, %v3735_v58  ;;  %v1917_v12 = vcombine.high %v1895_v63, %v1895_v63  ;;  %v9366_v58 = vld [vmem:[%s8215_s3 + $0x110] sm:$0xff]  ;;  %v3748_v6 = vld [vmem:[%s8207_s28 + $0x818] sm:$0xff] }
 0x14d   : > { %v1902_v18 = vrot.slane %v1886_v9, %v8221_v5  ;;  %v1888_v19 = vcombine.high %v1886_v9, %v1886_v9  ;;  %v6806_v20 = vadd.f32 %v4984_v11, %v3734_v3  ;;  %v4992_v21 = vrot.slane %v1871_v4, %v8225_v8 }
 0x14e   : > { %v6809_v22 = vadd.f32 %v4996_v13, %v3737_v7  ;;  %v5000_v24 = vrot.slane %v1909_v15, %v8225_v8  ;;  %7319 = vst [vmem:[%s8249_s21 + $0x7b0] sm:$0xff] %v6807_v16  ;;  %v5004_v27 = vrot.slane %v1917_v12, %v8225_v8  ;;  %v1919_v28 = vcombine.high %v1909_v15, %v1909_v15  ;;  %v3749_v13 = vld [vmem:[%s8207_s28 + $0x820] sm:$0xff] }
 0x14f   : > { %v5012_v29 = vrot.slane %v1902_v18, %v8225_v8  ;;  %v1916_v30 = vrot.slane %v1888_v19, %v8221_v5  ;;  %7318 = vst [vmem:[%s8249_s21 + $0x7a8] sm:$0xff] %v6806_v20  ;;  %v6808_v14 = vadd.f32 %v4992_v21, %v3736_v17  ;;  %v1918_v34 = vcombine.high %v1902_v18, %v1902_v18  ;;  %v3753_v18 = vld [vmem:[%s8207_s28 + $0x840] sm:$0xff]  ;;  %v3750_v21 = vld [vmem:[%s8207_s28 + $0x828] sm:$0xff] }
 0x150   : > { %7321 = vst [vmem:[%s8249_s21 + $0x7c0] sm:$0xff] %v6809_v22  ;;  %v6810_v31 = vadd.f32 %v5000_v24, %v3738_v62  ;;  %v1944_v35 = vrot.slane %v1928_v10, %v8221_v5  ;;  %v6811_v23 = vadd.f32 %v5004_v27, %v3739_v25  ;;  %v5008_v36 = vrot.slane %v1919_v28, %v8225_v8  ;;  %v3751_v22 = vld [vmem:[%s8207_s28 + $0x830] sm:$0xff] }
 0x151   : > { %v6813_v37 = vadd.f32 %v5012_v29, %v3741_v26  ;;  %v5016_v38 = vrot.slane %v1916_v30, %v8225_v8  ;;  %7320 = vst [vmem:[%s8249_s21 + $0x7b8] sm:$0xff] %v6808_v14  ;;  %v5020_v41 = vrot.slane %v1918_v34, %v8225_v8  ;;  %v1920_v42 = vcombine.high %v1916_v30, %v1916_v30  ;;  %v3754_v14 = vld [vmem:[%s8207_s28 + $0x848] sm:$0xff] }
 0x152   : > { %7322 = vst [vmem:[%s8249_s21 + $0x7c8] sm:$0xff] %v6810_v31  ;;  %v5028_v43 = vrot.slane %v1944_v35, %v8225_v8  ;;  %v1936_v45 = vcombine.high %v1928_v10, %v1928_v10  ;;  %7323 = vst [vmem:[%s8249_s21 + $0x7d0] sm:$0xff] %v6811_v23  ;;  %v6812_v48 = vadd.f32 %v5008_v36, %v3740_v32  ;;  %v3755_v31 = vld [vmem:[%s8207_s28 + $0x850] sm:$0xff]  ;;  %v3752_v32 = vld [vmem:[%s8207_s28 + $0x838] sm:$0xff] }
 0x153   : > { %7325 = vst [vmem:[%s8249_s21 + $0x7e0] sm:$0xff] %v6813_v37  ;;  %v6814_v46 = vadd.f32 %v5016_v38, %v3742_v33  ;;  %v1966_v50 = vcombine.high %v1944_v35, %v1944_v35  ;;  %v1921_v51 = vcombine.high %v9308_v1, %v9308_v1  ;;  %v6815_v53 = vadd.f32 %v5020_v41, %v3743_v40  ;;  %v3757_v36 = vld [vmem:[%s8207_s28 + $0x860] sm:$0xff] }
 0x154   : > { %v5024_v54 = vrot.slane %v1920_v42, %v8225_v8  ;;  %v6817_v55 = vadd.f32 %v5028_v43, %v3745_v39  ;;  %v1958_v56 = vrot.slane %v1936_v45, %v8221_v5  ;;  %7324 = vst [vmem:[%s8249_s21 + $0x7d8] sm:$0xff] %v6812_v48  ;;  %v1977_v60 = vrot.slane %v258_v47, %v8221_v5  ;;  %v3756_v39 = vld [vmem:[%s8207_s28 + $0x858] sm:$0xff] }
 0x155   : > { %7326 = vst [vmem:[%s8249_s21 + $0x7e8] sm:$0xff] %v6814_v46  ;;  %v5036_v59 = vrot.slane %v1966_v50, %v8225_v8  ;;  %v1935_v61 = vrot.slane %v1921_v51, %v8221_v5  ;;  %v1970_v44 = vcombine.high %v258_v47, %v258_v47  ;;  %7327 = vst [vmem:[%s8249_s21 + $0x7f0] sm:$0xff] %v6815_v53 }
 0x156   : > { %v6816_v63 = vadd.f32 %v5024_v54, %v3744_v49  ;;  %7329 = vst [vmem:[%s8249_s21 + $0x800] sm:$0xff] %v6817_v55  ;;  %v5032_v0 = vrot.slane %v1958_v56, %v8225_v8  ;;  %v1968_v1 = vcombine.high %v1958_v56, %v1958_v56  ;;  %v9373_v2 = vrot.slane %v9366_v58, %v8221_v5  ;;  %v3759_v54 = vld [vmem:[%s8207_s28 + $0x870] sm:$0xff]  ;;  %v3761_v55 = vld [vmem:[%s8207_s28 + $0x880] sm:$0xff] }
 0x157   : > { %v6819_v3 = vadd.f32 %v5036_v59, %v3747_v57  ;;  %v1951_v7 = vrot.slane %v1935_v61, %v8221_v5  ;;  %v1937_v9 = vcombine.high %v1935_v61, %v1935_v61  ;;  %v1993_v10 = vrot.slane %v1977_v60, %v8221_v5  ;;  %v3758_v59 = vld [vmem:[%s8207_s28 + $0x868] sm:$0xff] }
 0x158   : > { %7328 = vst [vmem:[%s8249_s21 + $0x7f8] sm:$0xff] %v6816_v63  ;;  %v6818_v11 = vadd.f32 %v5032_v0, %v3746_v52  ;;  %v5040_v4 = vrot.slane %v1968_v1, %v8225_v8  ;;  %v1985_v15 = vcombine.high %v1977_v60, %v1977_v60  ;;  %v1984_v16 = vrot.slane %v1970_v44, %v8221_v5  ;;  %v9421_v52 = vld [vmem:[%s8215_s3 + $0x118] sm:$0xff] }
 0x159   : > { %7331 = vst [vmem:[%s8249_s21 + $0x810] sm:$0xff] %v6819_v3  ;;  %v5044_v17 = vrot.slane %v1951_v7, %v8225_v8  ;;  %v1965_v62 = vrot.slane %v1937_v9, %v8221_v5  ;;  %v1967_v12 = vcombine.high %v1951_v7, %v1951_v7  ;;  %v5060_v19 = vrot.slane %v1993_v10, %v8225_v8  ;;  %v3760_v7 = vld [vmem:[%s8207_s28 + $0x878] sm:$0xff] }
 0x15a   : > { %7330 = vst [vmem:[%s8249_s21 + $0x808] sm:$0xff] %v6818_v11  ;;  %v6820_v20 = vadd.f32 %v5040_v4, %v3748_v6  ;;  %v2007_v24 = vrot.slane %v1985_v15, %v8221_v5  ;;  %v2015_v25 = vcombine.high %v1993_v10, %v1993_v10  ;;  %v2000_v26 = vrot.slane %v1984_v16, %v8221_v5  ;;  %v3762_v10 = vld [vmem:[%s8207_s28 + $0x888] sm:$0xff] }
 0x15b   : > { %v6821_v27 = vadd.f32 %v5044_v17, %v3749_v13  ;;  %v5048_v28 = vrot.slane %v1965_v62, %v8225_v8  ;;  %v5052_v29 = vrot.slane %v1967_v12, %v8225_v8  ;;  %v1969_v30 = vcombine.high %v1965_v62, %v1965_v62  ;;  %v3769_v62 = vld [vmem:[%s8207_s28 + $0x8c0] sm:$0xff] }
 0x15c   : > { %7332 = vst [vmem:[%s8249_s21 + $0x818] sm:$0xff] %v6820_v20  ;;  %v6825_v33 = vadd.f32 %v5060_v19, %v3753_v18  ;;  %v5064_v34 = vrot.slane %v2007_v24, %v8225_v8  ;;  %v5068_v35 = vrot.slane %v2015_v25, %v8225_v8  ;;  %v2017_v23 = vcombine.high %v2007_v24, %v2007_v24  ;;  %v3764_v18 = vld [vmem:[%s8207_s28 + $0x898] sm:$0xff] }
 0x15d   : > { %7333 = vst [vmem:[%s8249_s21 + $0x820] sm:$0xff] %v6821_v27  ;;  %v6822_v37 = vadd.f32 %v5048_v28, %v3750_v21  ;;  %v6823_v38 = vadd.f32 %v5052_v29, %v3751_v22  ;;  %v5056_v40 = vrot.slane %v1969_v30, %v8225_v8  ;;  %v5076_v41 = vrot.slane %v2000_v26, %v8225_v8 }
 0x15e   : > { %7337 = vst [vmem:[%s8249_s21 + $0x840] sm:$0xff] %v6825_v33  ;;  %v6826_v42 = vadd.f32 %v5064_v34, %v3754_v14  ;;  %v6827_v43 = vadd.f32 %v5068_v35, %v3755_v31  ;;  %v5072_v45 = vrot.slane %v2017_v23, %v8225_v8  ;;  %v1986_v47 = vcombine.high %v1984_v16, %v1984_v16  ;;  %v3767_v33 = vld [vmem:[%s8207_s28 + $0x8b0] sm:$0xff] }
 0x15f   : > { %7334 = vst [vmem:[%s8249_s21 + $0x828] sm:$0xff] %v6822_v37  ;;  %7335 = vst [vmem:[%s8249_s21 + $0x830] sm:$0xff] %v6823_v38  ;;  %v6824_v48 = vadd.f32 %v5056_v40, %v3752_v32  ;;  %v6829_v46 = vadd.f32 %v5076_v41, %v3757_v36  ;;  %v2016_v49 = vcombine.high %v2000_v26, %v2000_v26  ;;  %v3765_v26 = vld [vmem:[%s8207_s28 + $0x8a0] sm:$0xff]  ;;  %v3766_v32 = vld [vmem:[%s8207_s28 + $0x8a8] sm:$0xff] }
 0x160   : > { %v2042_v50 = vrot.slane %v9373_v2, %v8221_v5  ;;  %7338 = vst [vmem:[%s8249_s21 + $0x848] sm:$0xff] %v6826_v42  ;;  %7339 = vst [vmem:[%s8249_s21 + $0x850] sm:$0xff] %v6827_v43  ;;  %v6828_v51 = vadd.f32 %v5072_v45, %v3756_v39  ;;  %v2014_v53 = vrot.slane %v1986_v47, %v8221_v5  ;;  %v3770_v39 = vld [vmem:[%s8207_s28 + $0x8c8] sm:$0xff]  ;;  %v3771_v41 = vld [vmem:[%s8207_s28 + $0x8d0] sm:$0xff] }
 0x161   : > { %v2034_v56 = vcombine.high %v9373_v2, %v9373_v2  ;;  %v2019_v57 = vcombine.high %v9366_v58, %v9366_v58  ;;  %7336 = vst [vmem:[%s8249_s21 + $0x838] sm:$0xff] %v6824_v48  ;;  %7341 = vst [vmem:[%s8249_s21 + $0x860] sm:$0xff] %v6829_v46  ;;  %v5084_v61 = vrot.slane %v2016_v49, %v8225_v8  ;;  %v3763_v2 = vld [vmem:[%s8207_s28 + $0x890] sm:$0xff]  ;;  %v3768_v42 = vld [vmem:[%s8207_s28 + $0x8b8] sm:$0xff] }
 0x162   : > { %v5092_v60 = vrot.slane %v2042_v50, %v8225_v8  ;;  %v2064_v44 = vcombine.high %v2042_v50, %v2042_v50  ;;  %v2075_v63 = vrot.slane %v9421_v52, %v8221_v5  ;;  %7340 = vst [vmem:[%s8249_s21 + $0x858] sm:$0xff] %v6828_v51  ;;  %v5080_v0 = vrot.slane %v2014_v53, %v8225_v8  ;;  %v261_v46 = vld [vmem:[%s8215_s3 + $0x120] sm:$0xff] }
 0x163   : > { %v2018_v58 = vcombine.high %v2014_v53, %v2014_v53  ;;  %v2056_v1 = vrot.slane %v2034_v56, %v8221_v5  ;;  %v2033_v3 = vrot.slane %v2019_v57, %v8221_v5  ;;  %v6831_v6 = vadd.f32 %v5084_v61, %v3759_v54  ;;  %v3772_v53 = vld [vmem:[%s8207_s28 + $0x8d8] sm:$0xff]  ;;  %v3773_v61 = vld [vmem:[%s8207_s28 + $0x8e0] sm:$0xff] }
 0x164   : > { %v6833_v9 = vadd.f32 %v5092_v60, %v3761_v55  ;;  %v5100_v11 = vrot.slane %v2064_v44, %v8225_v8  ;;  %v2091_v4 = vrot.slane %v2075_v63, %v8221_v5  ;;  %v6830_v13 = vadd.f32 %v5080_v0, %v3758_v59 }
 0x165   : > { %v5088_v15 = vrot.slane %v2018_v58, %v8225_v8  ;;  %v5096_v16 = vrot.slane %v2056_v1, %v8225_v8  ;;  %v2066_v17 = vcombine.high %v2056_v1, %v2056_v1  ;;  %7343 = vst [vmem:[%s8249_s21 + $0x870] sm:$0xff] %v6831_v6  ;;  %v2049_v19 = vrot.slane %v2033_v3, %v8221_v5 }
 0x166   : > { %7345 = vst [vmem:[%s8249_s21 + $0x880] sm:$0xff] %v6833_v9  ;;  %v6835_v12 = vadd.f32 %v5100_v11, %v3763_v2  ;;  %v2035_v20 = vcombine.high %v2033_v3, %v2033_v3  ;;  %v5124_v21 = vrot.slane %v2091_v4, %v8225_v8  ;;  %7342 = vst [vmem:[%s8249_s21 + $0x868] sm:$0xff] %v6830_v13  ;;  %v3777_v2 = vld [vmem:[%s8207_s28 + $0x900] sm:$0xff] }
 0x167   : > { %v6832_v22 = vadd.f32 %v5088_v15, %v3760_v7  ;;  %v6834_v24 = vadd.f32 %v5096_v16, %v3762_v10  ;;  %v5104_v25 = vrot.slane %v2066_v17, %v8225_v8  ;;  %v2083_v27 = vcombine.high %v2075_v63, %v2075_v63  ;;  %v3775_v7 = vld [vmem:[%s8207_s28 + $0x8f0] sm:$0xff]  ;;  %v3774_v15 = vld [vmem:[%s8207_s28 + $0x8e8] sm:$0xff] }
 0x168   : > { %7347 = vst [vmem:[%s8249_s21 + $0x890] sm:$0xff] %v6835_v12  ;;  %v5108_v28 = vrot.slane %v2049_v19, %v8225_v8  ;;  %v2063_v29 = vrot.slane %v2035_v20, %v8221_v5  ;;  %v2065_v30 = vcombine.high %v2049_v19, %v2049_v19  ;;  %v6841_v14 = vadd.f32 %v5124_v21, %v3769_v62  ;;  %v3778_v17 = vld [vmem:[%s8207_s28 + $0x908] sm:$0xff] }
 0x169   : > { %7344 = vst [vmem:[%s8249_s21 + $0x878] sm:$0xff] %v6832_v22  ;;  %7346 = vst [vmem:[%s8249_s21 + $0x888] sm:$0xff] %v6834_v24  ;;  %v6836_v31 = vadd.f32 %v5104_v25, %v3764_v18  ;;  %v2105_v34 = vrot.slane %v2083_v27, %v8221_v5  ;;  %v2113_v35 = vcombine.high %v2091_v4, %v2091_v4  ;;  %v262_v4 = vld [vmem:[%s8215_s3 + $0x128] sm:$0xff]  ;;  %v3779_v22 = vld [vmem:[%s8207_s28 + $0x910] sm:$0xff] }
 0x16a   : > { %v2068_v23 = vcombine.high %v9421_v52, %v9421_v52  ;;  %v6837_v36 = vadd.f32 %v5108_v28, %v3765_v26  ;;  %v5112_v37 = vrot.slane %v2063_v29, %v8225_v8  ;;  %v5116_v38 = vrot.slane %v2065_v30, %v8225_v8  ;;  %7353 = vst [vmem:[%s8249_s21 + $0x8c0] sm:$0xff] %v6841_v14  ;;  %v3776_v25 = vld [vmem:[%s8207_s28 + $0x8f8] sm:$0xff] }
 0x16b   : > { %v2067_v40 = vcombine.high %v2063_v29, %v2063_v29  ;;  %7348 = vst [vmem:[%s8249_s21 + $0x898] sm:$0xff] %v6836_v31  ;;  %v5128_v43 = vrot.slane %v2105_v34, %v8225_v8  ;;  %v5132_v45 = vrot.slane %v2113_v35, %v8225_v8  ;;  %v2115_v47 = vcombine.high %v2105_v34, %v2105_v34  ;;  %v3780_v31 = vld [vmem:[%s8207_s28 + $0x918] sm:$0xff] }
 0x16c   : > { %v2082_v48 = vrot.slane %v2068_v23, %v8221_v5  ;;  %7349 = vst [vmem:[%s8249_s21 + $0x8a0] sm:$0xff] %v6837_v36  ;;  %v6838_v49 = vadd.f32 %v5112_v37, %v3766_v32  ;;  %v6839_v50 = vadd.f32 %v5116_v38, %v3767_v33  ;;  %v2124_v54 = vrot.slane %v261_v46, %v8221_v5  ;;  %v3781_v32 = vld [vmem:[%s8207_s28 + $0x920] sm:$0xff] }
 0x16d   : > { %v5120_v51 = vrot.slane %v2067_v40, %v8225_v8  ;;  %v6842_v55 = vadd.f32 %v5128_v43, %v3770_v39  ;;  %v6843_v56 = vadd.f32 %v5132_v45, %v3771_v41  ;;  %v5136_v57 = vrot.slane %v2115_v47, %v8225_v8  ;;  %v3783_v40 = vld [vmem:[%s8207_s28 + $0x930] sm:$0xff]  ;;  %v3782_v45 = vld [vmem:[%s8207_s28 + $0x928] sm:$0xff] }
 0x16e   : > { %v2098_v52 = vrot.slane %v2082_v48, %v8221_v5  ;;  %7350 = vst [vmem:[%s8249_s21 + $0x8a8] sm:$0xff] %v6838_v49  ;;  %7351 = vst [vmem:[%s8249_s21 + $0x8b0] sm:$0xff] %v6839_v50  ;;  %v2084_v60 = vcombine.high %v2082_v48, %v2082_v48  ;;  %v2140_v44 = vrot.slane %v2124_v54, %v8221_v5  ;;  %v3785_v48 = vld [vmem:[%s8207_s28 + $0x940] sm:$0xff] }
 0x16f   : > { %v6840_v59 = vadd.f32 %v5120_v51, %v3768_v42  ;;  %v2132_v63 = vcombine.high %v2124_v54, %v2124_v54  ;;  %7354 = vst [vmem:[%s8249_s21 + $0x8c8] sm:$0xff] %v6842_v55  ;;  %7355 = vst [vmem:[%s8249_s21 + $0x8d0] sm:$0xff] %v6843_v56  ;;  %v6844_v0 = vadd.f32 %v5136_v57, %v3772_v53  ;;  %v9525_v54 = vld [vmem:[%s8215_s3 + $0x130] sm:$0xff]  ;;  %v3784_v56 = vld [vmem:[%s8207_s28 + $0x938] sm:$0xff] }
 0x170   : > { %v5140_v58 = vrot.slane %v2098_v52, %v8225_v8  ;;  %v2114_v1 = vcombine.high %v2098_v52, %v2098_v52  ;;  %v2117_v3 = vcombine.high %v261_v46, %v261_v46  ;;  %v2112_v6 = vrot.slane %v2084_v60, %v8221_v5  ;;  %v3786_v57 = vld [vmem:[%s8207_s28 + $0x948] sm:$0xff] }
 0x171   : > { %7352 = vst [vmem:[%s8249_s21 + $0x8b8] sm:$0xff] %v6840_v59  ;;  %v5156_v9 = vrot.slane %v2140_v44, %v8225_v8  ;;  %v2154_v10 = vrot.slane %v2132_v63, %v8221_v5  ;;  %v2162_v11 = vcombine.high %v2140_v44, %v2140_v44  ;;  %7356 = vst [vmem:[%s8249_s21 + $0x8d8] sm:$0xff] %v6844_v0 }
 0x172   : > { %v6845_v13 = vadd.f32 %v5140_v58, %v3773_v61  ;;  %v5148_v16 = vrot.slane %v2114_v1, %v8225_v8  ;;  %v2131_v62 = vrot.slane %v2117_v3, %v8221_v5  ;;  %v2173_v12 = vrot.slane %v262_v4, %v8221_v5  ;;  %v3787_v58 = vld [vmem:[%s8207_s28 + $0x950] sm:$0xff] }
 0x173   : > { %v5144_v18 = vrot.slane %v2112_v6, %v8225_v8  ;;  %v2116_v19 = vcombine.high %v2112_v6, %v2112_v6  ;;  %v6849_v20 = vadd.f32 %v5156_v9, %v3777_v2  ;;  %v5160_v21 = vrot.slane %v2154_v10, %v8225_v8 }
 0x174   : > { %7357 = vst [vmem:[%s8249_s21 + $0x8e0] sm:$0xff] %v6845_v13  ;;  %v6847_v24 = vadd.f32 %v5148_v16, %v3775_v7  ;;  %v5164_v26 = vrot.slane %v2162_v11, %v8225_v8  ;;  %v2164_v27 = vcombine.high %v2154_v10, %v2154_v10  ;;  %v2147_v28 = vrot.slane %v2131_v62, %v8221_v5  ;;  %v3788_v10 = vld [vmem:[%s8207_s28 + $0x958] sm:$0xff]  ;;  %v3789_v11 = vld [vmem:[%s8207_s28 + $0x960] sm:$0xff] }
 0x175   : > { %v6846_v29 = vadd.f32 %v5144_v18, %v3774_v15  ;;  %v5152_v30 = vrot.slane %v2116_v19, %v8225_v8  ;;  %7361 = vst [vmem:[%s8249_s21 + $0x900] sm:$0xff] %v6849_v20  ;;  %v6850_v14 = vadd.f32 %v5160_v21, %v3778_v17  ;;  %v2133_v33 = vcombine.high %v2131_v62, %v2131_v62  ;;  %v3790_v18 = vld [vmem:[%s8207_s28 + $0x968] sm:$0xff] }
 0x176   : > { %7359 = vst [vmem:[%s8249_s21 + $0x8f0] sm:$0xff] %v6847_v24  ;;  %v6851_v34 = vadd.f32 %v5164_v26, %v3779_v22  ;;  %v5168_v35 = vrot.slane %v2164_v27, %v8225_v8  ;;  %v5172_v23 = vrot.slane %v2147_v28, %v8225_v8  ;;  %v2163_v36 = vcombine.high %v2147_v28, %v2147_v28  ;;  %v3791_v27 = vld [vmem:[%s8207_s28 + $0x970] sm:$0xff] }
 0x177   : > { %7358 = vst [vmem:[%s8249_s21 + $0x8e8] sm:$0xff] %v6846_v29  ;;  %v6848_v37 = vadd.f32 %v5152_v30, %v3776_v25  ;;  %7362 = vst [vmem:[%s8249_s21 + $0x908] sm:$0xff] %v6850_v14  ;;  %v2161_v38 = vrot.slane %v2133_v33, %v8221_v5  ;;  %v2189_v39 = vrot.slane %v2173_v12, %v8221_v5  ;;  %v3794_v29 = vld [vmem:[%s8207_s28 + $0x988] sm:$0xff]  ;;  %v3795_v30 = vld [vmem:[%s8207_s28 + $0x990] sm:$0xff] }
 0x178   : > { %v2181_v41 = vcombine.high %v2173_v12, %v2173_v12  ;;  %7363 = vst [vmem:[%s8249_s21 + $0x910] sm:$0xff] %v6851_v34  ;;  %v6852_v42 = vadd.f32 %v5168_v35, %v3780_v31  ;;  %v6853_v43 = vadd.f32 %v5172_v23, %v3781_v32  ;;  %v5180_v47 = vrot.slane %v2163_v36, %v8225_v8  ;;  %v3793_v12 = vld [vmem:[%s8207_s28 + $0x980] sm:$0xff]  ;;  %v3792_v31 = vld [vmem:[%s8207_s28 + $0x978] sm:$0xff] }
 0x179   : > { %v2166_v46 = vcombine.high %v262_v4, %v262_v4  ;;  %7360 = vst [vmem:[%s8249_s21 + $0x8f8] sm:$0xff] %v6848_v37  ;;  %v5176_v49 = vrot.slane %v2161_v38, %v8225_v8  ;;  %v2165_v50 = vcombine.high %v2161_v38, %v2161_v38  ;;  %v5188_v51 = vrot.slane %v2189_v39, %v8225_v8  ;;  %v264_v35 = vld [vmem:[%s8215_s3 + $0x138] sm:$0xff] }
 0x17a   : > { %v2203_v53 = vrot.slane %v2181_v41, %v8221_v5  ;;  %7364 = vst [vmem:[%s8249_s21 + $0x918] sm:$0xff] %v6852_v42  ;;  %7365 = vst [vmem:[%s8249_s21 + $0x920] sm:$0xff] %v6853_v43  ;;  %v6855_v55 = vadd.f32 %v5180_v47, %v3783_v40  ;;  %v2211_v52 = vcombine.high %v2189_v39, %v2189_v39  ;;  %v9570_v40 = vld [vmem:[%s8215_s3 + $0x140] sm:$0xff]  ;;  %v3796_v43 = vld [vmem:[%s8207_s28 + $0x998] sm:$0xff] }
 0x17b   : > { %v2180_v59 = vrot.slane %v2166_v46, %v8221_v5  ;;  %v2222_v61 = vrot.slane %v9525_v54, %v8221_v5  ;;  %v6854_v60 = vadd.f32 %v5176_v49, %v3782_v45  ;;  %v5184_v44 = vrot.slane %v2165_v50, %v8225_v8 }
 0x17c   : > { %v6857_v63 = vadd.f32 %v5188_v51, %v3785_v48  ;;  %v5192_v0 = vrot.slane %v2203_v53, %v8225_v8  ;;  %7367 = vst [vmem:[%s8249_s21 + $0x930] sm:$0xff] %v6855_v55  ;;  %v5196_v1 = vrot.slane %v2211_v52, %v8225_v8  ;;  %v2213_v2 = vcombine.high %v2203_v53, %v2203_v53  ;;  %v3801_v52 = vld [vmem:[%s8207_s28 + $0x9c0] sm:$0xff] }
 0x17d   : > { %v2196_v3 = vrot.slane %v2180_v59, %v8221_v5  ;;  %v2182_v6 = vcombine.high %v2180_v59, %v2180_v59  ;;  %7366 = vst [vmem:[%s8249_s21 + $0x928] sm:$0xff] %v6854_v60  ;;  %v6856_v7 = vadd.f32 %v5184_v44, %v3784_v56  ;;  %v2238_v4 = vrot.slane %v2222_v61, %v8221_v5 }
 0x17e   : > { %7369 = vst [vmem:[%s8249_s21 + $0x940] sm:$0xff] %v6857_v63  ;;  %v6858_v9 = vadd.f32 %v5192_v0, %v3786_v57  ;;  %v2230_v13 = vcombine.high %v2222_v61, %v2222_v61  ;;  %v6859_v15 = vadd.f32 %v5196_v1, %v3787_v58  ;;  %v5200_v16 = vrot.slane %v2213_v2, %v8225_v8  ;;  %v3797_v61 = vld [vmem:[%s8207_s28 + $0x9a0] sm:$0xff] }
 0x17f   : > { %v5204_v17 = vrot.slane %v2196_v3, %v8225_v8  ;;  %v2210_v62 = vrot.slane %v2182_v6, %v8221_v5  ;;  %7368 = vst [vmem:[%s8249_s21 + $0x938] sm:$0xff] %v6856_v7  ;;  %v2212_v19 = vcombine.high %v2196_v3, %v2196_v3  ;;  %v5220_v20 = vrot.slane %v2238_v4, %v8225_v8  ;;  %v3802_v3 = vld [vmem:[%s8207_s28 + $0x9c8] sm:$0xff]  ;;  %v3803_v6 = vld [vmem:[%s8207_s28 + $0x9d0] sm:$0xff] }
 0x180   : > { %7370 = vst [vmem:[%s8249_s21 + $0x948] sm:$0xff] %v6858_v9  ;;  %v2252_v21 = vrot.slane %v2230_v13, %v8221_v5  ;;  %v2260_v22 = vcombine.high %v2238_v4, %v2238_v4  ;;  %7371 = vst [vmem:[%s8249_s21 + $0x950] sm:$0xff] %v6859_v15  ;;  %v6860_v24 = vadd.f32 %v5200_v16, %v3788_v10  ;;  %v3798_v9 = vld [vmem:[%s8207_s28 + $0x9a8] sm:$0xff]  ;;  %v3799_v10 = vld [vmem:[%s8207_s28 + $0x9b0] sm:$0xff] }
 0x181   : > { %v6861_v25 = vadd.f32 %v5204_v17, %v3789_v11  ;;  %v5208_v26 = vrot.slane %v2210_v62, %v8225_v8  ;;  %v2214_v28 = vcombine.high %v2210_v62, %v2210_v62  ;;  %v5212_v14 = vrot.slane %v2212_v19, %v8225_v8  ;;  %v3805_v19 = vld [vmem:[%s8207_s28 + $0x9e0] sm:$0xff] }
 0x182   : > { %v6865_v32 = vadd.f32 %v5220_v20, %v3793_v12  ;;  %v5224_v33 = vrot.slane %v2252_v21, %v8225_v8  ;;  %v5228_v34 = vrot.slane %v2260_v22, %v8225_v8  ;;  %7372 = vst [vmem:[%s8249_s21 + $0x958] sm:$0xff] %v6860_v24  ;;  %v2262_v37 = vcombine.high %v2252_v21, %v2252_v21  ;;  %v3800_v20 = vld [vmem:[%s8207_s28 + $0x9b8] sm:$0xff] }
 0x183   : > { %7373 = vst [vmem:[%s8249_s21 + $0x960] sm:$0xff] %v6861_v25  ;;  %v6862_v23 = vadd.f32 %v5208_v26, %v3790_v18  ;;  %v5216_v36 = vrot.slane %v2214_v28, %v8225_v8  ;;  %v2215_v38 = vcombine.high %v9525_v54, %v9525_v54  ;;  %v6863_v39 = vadd.f32 %v5212_v14, %v3791_v27  ;;  %v3804_v18 = vld [vmem:[%s8207_s28 + $0x9d8] sm:$0xff] }
 0x184   : > { %7377 = vst [vmem:[%s8249_s21 + $0x980] sm:$0xff] %v6865_v32  ;;  %v6866_v41 = vadd.f32 %v5224_v33, %v3794_v29  ;;  %v6867_v42 = vadd.f32 %v5228_v34, %v3795_v30  ;;  %v2271_v45 = vrot.slane %v264_v35, %v8221_v5  ;;  %v5232_v48 = vrot.slane %v2262_v37, %v8225_v8  ;;  %v3809_v30 = vld [vmem:[%s8207_s28 + $0xa00] sm:$0xff] }
 0x185   : > { %7374 = vst [vmem:[%s8249_s21 + $0x968] sm:$0xff] %v6862_v23  ;;  %v6864_v47 = vadd.f32 %v5216_v36, %v3792_v31  ;;  %v2229_v46 = vrot.slane %v2215_v38, %v8221_v5  ;;  %v2264_v49 = vcombine.high %v264_v35, %v264_v35  ;;  %7375 = vst [vmem:[%s8249_s21 + $0x970] sm:$0xff] %v6863_v39  ;;  %v3807_v23 = vld [vmem:[%s8207_s28 + $0x9f0] sm:$0xff]  ;;  %v9628_v38 = vld [vmem:[%s8215_s3 + $0x148] sm:$0xff] }
 0x186   : > { %7378 = vst [vmem:[%s8249_s21 + $0x988] sm:$0xff] %v6866_v41  ;;  %7379 = vst [vmem:[%s8249_s21 + $0x990] sm:$0xff] %v6867_v42  ;;  %v2287_v50 = vrot.slane %v2271_v45, %v8221_v5  ;;  %v2279_v51 = vcombine.high %v2271_v45, %v2271_v45  ;;  %v9584_v53 = vrot.slane %v9570_v40, %v8221_v5  ;;  %v3806_v39 = vld [vmem:[%s8207_s28 + $0x9e8] sm:$0xff] }
 0x187   : > { %v2313_v54 = vcombine.high %v9570_v40, %v9570_v40  ;;  %7376 = vst [vmem:[%s8249_s21 + $0x978] sm:$0xff] %v6864_v47  ;;  %v6868_v55 = vadd.f32 %v5232_v48, %v3796_v43  ;;  %v2245_v56 = vrot.slane %v2229_v46, %v8221_v5  ;;  %v2231_v57 = vcombine.high %v2229_v46, %v2229_v46  ;;  %v3811_v43 = vld [vmem:[%s8207_s28 + $0xa10] sm:$0xff]  ;;  %v3810_v40 = vld [vmem:[%s8207_s28 + $0xa08] sm:$0xff] }
 0x188   : > { %v2278_v59 = vrot.slane %v2264_v49, %v8221_v5  ;;  %v5252_v60 = vrot.slane %v2287_v50, %v8225_v8  ;;  %v2301_v44 = vrot.slane %v2279_v51, %v8221_v5  ;;  %v2309_v63 = vcombine.high %v2287_v50, %v2287_v50 }
 0x189   : > { %v2336_v0 = vrot.slane %v9584_v53, %v8221_v5  ;;  %7380 = vst [vmem:[%s8249_s21 + $0x998] sm:$0xff] %v6868_v55  ;;  %v5236_v58 = vrot.slane %v2245_v56, %v8225_v8  ;;  %v2259_v1 = vrot.slane %v2231_v57, %v8221_v5  ;;  %v2261_v2 = vcombine.high %v2245_v56, %v2245_v56 }
 0x18a   : > { %v2294_v7 = vrot.slane %v2278_v59, %v8221_v5  ;;  %v6873_v11 = vadd.f32 %v5252_v60, %v3801_v52  ;;  %v5256_v4 = vrot.slane %v2301_v44, %v8225_v8  ;;  %v5260_v13 = vrot.slane %v2309_v63, %v8225_v8  ;;  %v3813_v60 = vld [vmem:[%s8207_s28 + $0xa20] sm:$0xff] }
 0x18b   : > { %v2311_v15 = vcombine.high %v2301_v44, %v2301_v44  ;;  %v6869_v16 = vadd.f32 %v5236_v58, %v3797_v61  ;;  %v5240_v17 = vrot.slane %v2259_v1, %v8225_v8  ;;  %v5244_v62 = vrot.slane %v2261_v2, %v8225_v8 }
 0x18c   : > { %v2263_v12 = vcombine.high %v2259_v1, %v2259_v1  ;;  %7385 = vst [vmem:[%s8249_s21 + $0x9c0] sm:$0xff] %v6873_v11  ;;  %v6874_v21 = vadd.f32 %v5256_v4, %v3802_v3  ;;  %v6875_v22 = vadd.f32 %v5260_v13, %v3803_v6  ;;  %v5268_v25 = vrot.slane %v2294_v7, %v8225_v8  ;;  %v3817_v1 = vld [vmem:[%s8207_s28 + $0xa40] sm:$0xff]  ;;  %v3812_v6 = vld [vmem:[%s8207_s28 + $0xa18] sm:$0xff] }
 0x18d   : > { %v5264_v24 = vrot.slane %v2311_v15, %v8225_v8  ;;  %7381 = vst [vmem:[%s8249_s21 + $0x9a0] sm:$0xff] %v6869_v16  ;;  %v6870_v26 = vadd.f32 %v5240_v17, %v3798_v9  ;;  %v6871_v27 = vadd.f32 %v5244_v62, %v3799_v10  ;;  %v2280_v29 = vcombine.high %v2278_v59, %v2278_v59  ;;  %v3815_v9 = vld [vmem:[%s8207_s28 + $0xa30] sm:$0xff] }
 0x18e   : > { %v5248_v28 = vrot.slane %v2263_v12, %v8225_v8  ;;  %7386 = vst [vmem:[%s8249_s21 + $0x9c8] sm:$0xff] %v6874_v21  ;;  %7387 = vst [vmem:[%s8249_s21 + $0x9d0] sm:$0xff] %v6875_v22  ;;  %v6877_v31 = vadd.f32 %v5268_v25, %v3805_v19  ;;  %v2310_v32 = vcombine.high %v2294_v7, %v2294_v7  ;;  %v3814_v7 = vld [vmem:[%s8207_s28 + $0xa28] sm:$0xff]  ;;  %v267_v19 = vld [vmem:[%s8215_s3 + $0x150] sm:$0xff] }
 0x18f   : > { %v6876_v14 = vadd.f32 %v5264_v24, %v3804_v18  ;;  %v5284_v33 = vrot.slane %v2336_v0, %v8225_v8  ;;  %7382 = vst [vmem:[%s8249_s21 + $0x9a8] sm:$0xff] %v6870_v26  ;;  %7383 = vst [vmem:[%s8249_s21 + $0x9b0] sm:$0xff] %v6871_v27  ;;  %v2308_v35 = vrot.slane %v2280_v29, %v8221_v5  ;;  %v3816_v24 = vld [vmem:[%s8207_s28 + $0xa38] sm:$0xff]  ;;  %v3818_v25 = vld [vmem:[%s8207_s28 + $0xa48] sm:$0xff] }
 0x190   : > { %v6872_v34 = vadd.f32 %v5248_v28, %v3800_v20  ;;  %v2328_v36 = vcombine.high %v9584_v53, %v9584_v53  ;;  %v2358_v37 = vcombine.high %v2336_v0, %v2336_v0  ;;  %7389 = vst [vmem:[%s8249_s21 + $0x9e0] sm:$0xff] %v6877_v31  ;;  %v5276_v41 = vrot.slane %v2310_v32, %v8225_v8  ;;  %v3808_v53 = vld [vmem:[%s8207_s28 + $0x9f8] sm:$0xff]  ;;  %v3819_v26 = vld [vmem:[%s8207_s28 + $0xa50] sm:$0xff] }
 0x191   : > { %7388 = vst [vmem:[%s8249_s21 + $0x9d8] sm:$0xff] %v6876_v14  ;;  %v6881_v42 = vadd.f32 %v5284_v33, %v3809_v30  ;;  %v2327_v45 = vrot.slane %v2313_v54, %v8221_v5  ;;  %v2369_v47 = vrot.slane %v9628_v38, %v8221_v5  ;;  %v5272_v48 = vrot.slane %v2308_v35, %v8225_v8  ;;  %v9681_v31 = vld [vmem:[%s8215_s3 + $0x158] sm:$0xff] }
 0x192   : > { %7384 = vst [vmem:[%s8249_s21 + $0x9b8] sm:$0xff] %v6872_v34  ;;  %v2312_v46 = vcombine.high %v2308_v35, %v2308_v35  ;;  %v2350_v49 = vrot.slane %v2328_v36, %v8221_v5  ;;  %v5292_v50 = vrot.slane %v2358_v37, %v8225_v8  ;;  %v6879_v51 = vadd.f32 %v5276_v41, %v3807_v23  ;;  %v3820_v32 = vld [vmem:[%s8207_s28 + $0xa58] sm:$0xff] }
 0x193   : > { %7393 = vst [vmem:[%s8249_s21 + $0xa00] sm:$0xff] %v6881_v42  ;;  %v2343_v54 = vrot.slane %v2327_v45, %v8221_v5  ;;  %v2329_v55 = vcombine.high %v2327_v45, %v2327_v45  ;;  %v2385_v56 = vrot.slane %v2369_v47, %v8221_v5  ;;  %v6878_v57 = vadd.f32 %v5272_v48, %v3806_v39  ;;  %v3821_v48 = vld [vmem:[%s8207_s28 + $0xa60] sm:$0xff] }
 0x194   : > { %v5280_v52 = vrot.slane %v2312_v46, %v8225_v8  ;;  %v5288_v59 = vrot.slane %v2350_v49, %v8225_v8  ;;  %v6883_v61 = vadd.f32 %v5292_v50, %v3811_v43  ;;  %7391 = vst [vmem:[%s8249_s21 + $0x9f0] sm:$0xff] %v6879_v51  ;;  %v2360_v44 = vcombine.high %v2350_v49, %v2350_v49 }
 0x195   : > { %v5300_v63 = vrot.slane %v2343_v54, %v8225_v8  ;;  %v2357_v0 = vrot.slane %v2329_v55, %v8221_v5  ;;  %v2359_v58 = vcombine.high %v2343_v54, %v2343_v54  ;;  %7390 = vst [vmem:[%s8249_s21 + $0x9e8] sm:$0xff] %v6878_v57  ;;  %v5316_v10 = vrot.slane %v2385_v56, %v8225_v8  ;;  %v3825_v54 = vld [vmem:[%s8207_s28 + $0xa80] sm:$0xff]  ;;  %v3823_v57 = vld [vmem:[%s8207_s28 + $0xa70] sm:$0xff] }
 0x196   : > { %v6880_v2 = vadd.f32 %v5280_v52, %v3808_v53  ;;  %v6882_v3 = vadd.f32 %v5288_v59, %v3810_v40  ;;  %7395 = vst [vmem:[%s8249_s21 + $0xa10] sm:$0xff] %v6883_v61  ;;  %v2377_v11 = vcombine.high %v2369_v47, %v2369_v47  ;;  %v5296_v4 = vrot.slane %v2360_v44, %v8225_v8 }
 0x197   : > { %v6885_v13 = vadd.f32 %v5300_v63, %v3813_v60  ;;  %v5304_v15 = vrot.slane %v2357_v0, %v8225_v8  ;;  %v5308_v16 = vrot.slane %v2359_v58, %v8225_v8  ;;  %v2361_v17 = vcombine.high %v2357_v0, %v2357_v0 }
 0x198   : > { %7392 = vst [vmem:[%s8249_s21 + $0x9f8] sm:$0xff] %v6880_v2  ;;  %7394 = vst [vmem:[%s8249_s21 + $0xa08] sm:$0xff] %v6882_v3  ;;  %v6889_v62 = vadd.f32 %v5316_v10, %v3817_v1  ;;  %v2399_v12 = vrot.slane %v2377_v11, %v8221_v5  ;;  %v2407_v18 = vcombine.high %v2385_v56, %v2385_v56  ;;  %v3822_v56 = vld [vmem:[%s8207_s28 + $0xa68] sm:$0xff]  ;;  %v3827_v2 = vld [vmem:[%s8207_s28 + $0xa90] sm:$0xff] }
 0x199   : > { %v6884_v20 = vadd.f32 %v5296_v4, %v3812_v6  ;;  %7397 = vst [vmem:[%s8249_s21 + $0xa20] sm:$0xff] %v6885_v13  ;;  %v6886_v21 = vadd.f32 %v5304_v15, %v3814_v7  ;;  %v6887_v22 = vadd.f32 %v5308_v16, %v3815_v9  ;;  %v2362_v27 = vcombine.high %v9628_v38, %v9628_v38  ;;  %v3826_v1 = vld [vmem:[%s8207_s28 + $0xa88] sm:$0xff]  ;;  %v3824_v3 = vld [vmem:[%s8207_s28 + $0xa78] sm:$0xff]  ;;  %v3829_v11 = vld [vmem:[%s8207_s28 + $0xaa0] sm:$0xff] }
 0x19a   : > { %v5312_v28 = vrot.slane %v2361_v17, %v8225_v8  ;;  %7401 = vst [vmem:[%s8249_s21 + $0xa40] sm:$0xff] %v6889_v62  ;;  %v5320_v29 = vrot.slane %v2399_v12, %v8225_v8  ;;  %v5324_v30 = vrot.slane %v2407_v18, %v8225_v8  ;;  %v2409_v14 = vcombine.high %v2399_v12, %v2399_v12  ;;  %v3828_v16 = vld [vmem:[%s8207_s28 + $0xa98] sm:$0xff] }
 0x19b   : > { %7396 = vst [vmem:[%s8249_s21 + $0xa18] sm:$0xff] %v6884_v20  ;;  %7398 = vst [vmem:[%s8249_s21 + $0xa28] sm:$0xff] %v6886_v21  ;;  %v2376_v33 = vrot.slane %v2362_v27, %v8221_v5  ;;  %v2418_v34 = vrot.slane %v267_v19, %v8221_v5  ;;  %v2411_v35 = vcombine.high %v267_v19, %v267_v19  ;;  %v3833_v20 = vld [vmem:[%s8207_s28 + $0xac0] sm:$0xff] }
 0x19c   : > { %7399 = vst [vmem:[%s8249_s21 + $0xa30] sm:$0xff] %v6887_v22  ;;  %v9691_v23 = vrot.slane %v9681_v31, %v8221_v5  ;;  %v6888_v36 = vadd.f32 %v5312_v28, %v3816_v24  ;;  %v6890_v37 = vadd.f32 %v5320_v29, %v3818_v25  ;;  %v6891_v38 = vadd.f32 %v5324_v30, %v3819_v26  ;;  %v3830_v24 = vld [vmem:[%s8207_s28 + $0xaa8] sm:$0xff]  ;;  %v3831_v29 = vld [vmem:[%s8207_s28 + $0xab0] sm:$0xff] }
 0x19d   : > { %v5328_v39 = vrot.slane %v2409_v14, %v8225_v8  ;;  %v2392_v41 = vrot.slane %v2376_v33, %v8221_v5  ;;  %v2378_v42 = vcombine.high %v2376_v33, %v2376_v33  ;;  %v2434_v43 = vrot.slane %v2418_v34, %v8221_v5  ;;  %v3832_v33 = vld [vmem:[%s8207_s28 + $0xab8] sm:$0xff] }
 0x19e   : > { %v2426_v45 = vcombine.high %v2418_v34, %v2418_v34  ;;  %7400 = vst [vmem:[%s8249_s21 + $0xa38] sm:$0xff] %v6888_v36  ;;  %7402 = vst [vmem:[%s8249_s21 + $0xa48] sm:$0xff] %v6890_v37  ;;  %v2425_v46 = vrot.slane %v2411_v35, %v8221_v5  ;;  %v9703_v49 = vrot.slane %v9691_v23, %v8221_v5  ;;  %v3834_v35 = vld [vmem:[%s8207_s28 + $0xac8] sm:$0xff]  ;;  %v269_v37 = vld [vmem:[%s8215_s3 + $0x160] sm:$0xff] }
 0x19f   : > { %7403 = vst [vmem:[%s8249_s21 + $0xa50] sm:$0xff] %v6891_v38  ;;  %v6892_v47 = vadd.f32 %v5328_v39, %v3820_v32  ;;  %v2475_v50 = vcombine.high %v9691_v23, %v9691_v23  ;;  %v5332_v51 = vrot.slane %v2392_v41, %v8225_v8  ;;  %v2406_v53 = vrot.slane %v2378_v42, %v8221_v5  ;;  %v3835_v42 = vld [vmem:[%s8207_s28 + $0xad0] sm:$0xff] }
 0x1a0   : > { %v2408_v40 = vcombine.high %v2392_v41, %v2392_v41  ;;  %v5348_v55 = vrot.slane %v2434_v43, %v8225_v8  ;;  %v2448_v52 = vrot.slane %v2426_v45, %v8221_v5  ;;  %v2456_v59 = vcombine.high %v2434_v43, %v2434_v43 }
 0x1a1   : > { %7404 = vst [vmem:[%s8249_s21 + $0xa58] sm:$0xff] %v6892_v47  ;;  %v2441_v61 = vrot.slane %v2425_v46, %v8221_v5  ;;  %v2427_v60 = vcombine.high %v2425_v46, %v2425_v46  ;;  %v6893_v44 = vadd.f32 %v5332_v51, %v3821_v48  ;;  %v5336_v63 = vrot.slane %v2406_v53, %v8225_v8  ;;  %v3836_v48 = vld [vmem:[%s8207_s28 + $0xad8] sm:$0xff] }
 0x1a2   : > { %v5340_v0 = vrot.slane %v2408_v40, %v8225_v8  ;;  %v2410_v58 = vcombine.high %v2406_v53, %v2406_v53  ;;  %v6897_v6 = vadd.f32 %v5348_v55, %v3825_v54  ;;  %v5352_v7 = vrot.slane %v2448_v52, %v8225_v8 }
 0x1a3   : > { %v5356_v9 = vrot.slane %v2456_v59, %v8225_v8  ;;  %v2458_v10 = vcombine.high %v2448_v52, %v2448_v52  ;;  %7405 = vst [vmem:[%s8249_s21 + $0xa60] sm:$0xff] %v6893_v44  ;;  %v6894_v4 = vadd.f32 %v5336_v63, %v3822_v56  ;;  %v5364_v17 = vrot.slane %v2441_v61, %v8225_v8  ;;  %v3837_v59 = vld [vmem:[%s8207_s28 + $0xae0] sm:$0xff] }
 0x1a4   : > { %v6895_v13 = vadd.f32 %v5340_v0, %v3823_v57  ;;  %v5344_v15 = vrot.slane %v2410_v58, %v8225_v8  ;;  %7409 = vst [vmem:[%s8249_s21 + $0xa80] sm:$0xff] %v6897_v6  ;;  %v6898_v62 = vadd.f32 %v5352_v7, %v3826_v1  ;;  %v2455_v19 = vrot.slane %v2427_v60, %v8221_v5  ;;  %v9767_v57 = vld [vmem:[%s8215_s3 + $0x168] sm:$0xff]  ;;  %v3841_v1 = vld [vmem:[%s8207_s28 + $0xb00] sm:$0xff]  ;;  %v3839_v6 = vld [vmem:[%s8207_s28 + $0xaf0] sm:$0xff] }
 0x1a5   : > { %v6899_v12 = vadd.f32 %v5356_v9, %v3827_v2  ;;  %v5360_v18 = vrot.slane %v2458_v10, %v8225_v8  ;;  %7406 = vst [vmem:[%s8249_s21 + $0xa68] sm:$0xff] %v6894_v4  ;;  %v6901_v22 = vadd.f32 %v5364_v17, %v3829_v11  ;;  %v2457_v25 = vcombine.high %v2441_v61, %v2441_v61  ;;  %v3842_v17 = vld [vmem:[%s8207_s28 + $0xb08] sm:$0xff] }
 0x1a6   : > { %7407 = vst [vmem:[%s8249_s21 + $0xa70] sm:$0xff] %v6895_v13  ;;  %v6896_v21 = vadd.f32 %v5344_v15, %v3824_v3  ;;  %v5380_v26 = vrot.slane %v9703_v49, %v8225_v8  ;;  %7410 = vst [vmem:[%s8249_s21 + $0xa88] sm:$0xff] %v6898_v62  ;;  %v5368_v28 = vrot.slane %v2455_v19, %v8225_v8  ;;  %v3838_v3 = vld [vmem:[%s8207_s28 + $0xae8] sm:$0xff]  ;;  %v3843_v62 = vld [vmem:[%s8207_s28 + $0xb10] sm:$0xff] }
 0x1a7   : > { %7411 = vst [vmem:[%s8249_s21 + $0xa90] sm:$0xff] %v6899_v12  ;;  %v6900_v27 = vadd.f32 %v5360_v18, %v3828_v16  ;;  %v2459_v30 = vcombine.high %v2455_v19, %v2455_v19  ;;  %v2497_v14 = vrot.slane %v2475_v50, %v8221_v5  ;;  %7413 = vst [vmem:[%s8249_s21 + $0xaa0] sm:$0xff] %v6901_v22  ;;  %v3840_v12 = vld [vmem:[%s8207_s28 + $0xaf8] sm:$0xff]  ;;  %v3845_v22 = vld [vmem:[%s8207_s28 + $0xb20] sm:$0xff] }
 0x1a8   : > { %7408 = vst [vmem:[%s8249_s21 + $0xa78] sm:$0xff] %v6896_v21  ;;  %v5372_v32 = vrot.slane %v2457_v25, %v8225_v8  ;;  %v6905_v34 = vadd.f32 %v5380_v26, %v3833_v20  ;;  %v2505_v23 = vcombine.high %v9703_v49, %v9703_v49  ;;  %v2460_v36 = vcombine.high %v9681_v31, %v9681_v31 }
 0x1a9   : > { %7412 = vst [vmem:[%s8249_s21 + $0xa98] sm:$0xff] %v6900_v27  ;;  %v6902_v38 = vadd.f32 %v5368_v28, %v3830_v24  ;;  %v5376_v39 = vrot.slane %v2459_v30, %v8225_v8  ;;  %v5384_v41 = vrot.slane %v2497_v14, %v8225_v8  ;;  %v2507_v43 = vcombine.high %v2497_v14, %v2497_v14  ;;  %v3844_v27 = vld [vmem:[%s8207_s28 + $0xb18] sm:$0xff] }
 0x1aa   : > { %v6903_v45 = vadd.f32 %v5372_v32, %v3831_v29  ;;  %7417 = vst [vmem:[%s8249_s21 + $0xac0] sm:$0xff] %v6905_v34  ;;  %v5388_v47 = vrot.slane %v2505_v23, %v8225_v8  ;;  %v2474_v31 = vrot.slane %v2460_v36, %v8221_v5  ;;  %v2516_v46 = vrot.slane %v269_v37, %v8221_v5 }
 0x1ab   : > { %7414 = vst [vmem:[%s8249_s21 + $0xaa8] sm:$0xff] %v6902_v38  ;;  %v6904_v49 = vadd.f32 %v5376_v39, %v3832_v33  ;;  %v6906_v50 = vadd.f32 %v5384_v41, %v3834_v35  ;;  %v5392_v51 = vrot.slane %v2507_v43, %v8225_v8  ;;  %v2509_v53 = vcombine.high %v269_v37, %v269_v37  ;;  %v3846_v35 = vld [vmem:[%s8207_s28 + $0xb28] sm:$0xff]  ;;  %v3847_v39 = vld [vmem:[%s8207_s28 + $0xb30] sm:$0xff] }
 0x1ac   : > { %7415 = vst [vmem:[%s8249_s21 + $0xab0] sm:$0xff] %v6903_v45  ;;  %v6907_v40 = vadd.f32 %v5388_v47, %v3835_v42  ;;  %v2490_v54 = vrot.slane %v2474_v31, %v8221_v5  ;;  %v2476_v55 = vcombine.high %v2474_v31, %v2474_v31  ;;  %v2532_v56 = vrot.slane %v2516_v46, %v8221_v5  ;;  %v3849_v42 = vld [vmem:[%s8207_s28 + $0xb40] sm:$0xff]  ;;  %v3848_v47 = vld [vmem:[%s8207_s28 + $0xb38] sm:$0xff] }
 0x1ad   : > { %7416 = vst [vmem:[%s8249_s21 + $0xab8] sm:$0xff] %v6904_v49  ;;  %7418 = vst [vmem:[%s8249_s21 + $0xac8] sm:$0xff] %v6906_v50  ;;  %v6908_v52 = vadd.f32 %v5392_v51, %v3836_v48  ;;  %v2524_v61 = vcombine.high %v2516_v46, %v2516_v46  ;;  %v2523_v60 = vrot.slane %v2509_v53, %v8221_v5  ;;  %v271_v49 = vld [vmem:[%s8215_s3 + $0x170] sm:$0xff] }
 0x1ae   : > { %v9775_v44 = vrot.slane %v9767_v57, %v8221_v5  ;;  %7419 = vst [vmem:[%s8249_s21 + $0xad0] sm:$0xff] %v6907_v40  ;;  %v5396_v63 = vrot.slane %v2490_v54, %v8225_v8  ;;  %v2504_v0 = vrot.slane %v2476_v55, %v8221_v5  ;;  %v2506_v58 = vcombine.high %v2490_v54, %v2490_v54  ;;  %v3851_v40 = vld [vmem:[%s8207_s28 + $0xb50] sm:$0xff] }
 0x1af   : > { %v5412_v2 = vrot.slane %v2532_v56, %v8225_v8  ;;  %7420 = vst [vmem:[%s8249_s21 + $0xad8] sm:$0xff] %v6908_v52  ;;  %v2546_v7 = vrot.slane %v2524_v61, %v8221_v5  ;;  %v2554_v9 = vcombine.high %v2532_v56, %v2532_v56  ;;  %v2539_v10 = vrot.slane %v2523_v60, %v8221_v5  ;;  %v3850_v52 = vld [vmem:[%s8207_s28 + $0xb48] sm:$0xff] }
 0x1b0   : > { %v2525_v11 = vcombine.high %v2523_v60, %v2523_v60  ;;  %v6909_v4 = vadd.f32 %v5396_v63, %v3837_v59  ;;  %v5400_v13 = vrot.slane %v2504_v0, %v8225_v8  ;;  %v5404_v15 = vrot.slane %v2506_v58, %v8225_v8  ;;  %v3852_v58 = vld [vmem:[%s8207_s28 + $0xb58] sm:$0xff] }
 0x1b1   : > { %v2508_v16 = vcombine.high %v2504_v0, %v2504_v0  ;;  %v6913_v18 = vadd.f32 %v5412_v2, %v3841_v1  ;;  %v5416_v19 = vrot.slane %v2546_v7, %v8225_v8  ;;  %v5420_v20 = vrot.slane %v2554_v9, %v8225_v8 }
 0x1b2   : > { %v2556_v21 = vcombine.high %v2546_v7, %v2546_v7  ;;  %7421 = vst [vmem:[%s8249_s21 + $0xae0] sm:$0xff] %v6909_v4  ;;  %v6910_v24 = vadd.f32 %v5400_v13, %v3838_v3  ;;  %v6911_v25 = vadd.f32 %v5404_v15, %v3839_v6  ;;  %v5428_v28 = vrot.slane %v2539_v10, %v8225_v8  ;;  %v3857_v3 = vld [vmem:[%s8207_s28 + $0xb80] sm:$0xff] }
 0x1b3   : > { %v5408_v26 = vrot.slane %v2508_v16, %v8225_v8  ;;  %7425 = vst [vmem:[%s8249_s21 + $0xb00] sm:$0xff] %v6913_v18  ;;  %v6914_v29 = vadd.f32 %v5416_v19, %v3842_v17  ;;  %v6915_v30 = vadd.f32 %v5420_v20, %v3843_v62  ;;  %v2553_v32 = vrot.slane %v2525_v11, %v8221_v5  ;;  %v3859_v62 = vld [vmem:[%s8207_s28 + $0xb90] sm:$0xff]  ;;  %v3854_v18 = vld [vmem:[%s8207_s28 + $0xb68] sm:$0xff] }
 0x1b4   : > { %v5424_v14 = vrot.slane %v2556_v21, %v8225_v8  ;;  %7422 = vst [vmem:[%s8249_s21 + $0xae8] sm:$0xff] %v6910_v24  ;;  %7423 = vst [vmem:[%s8249_s21 + $0xaf0] sm:$0xff] %v6911_v25  ;;  %v6917_v34 = vadd.f32 %v5428_v28, %v3845_v22  ;;  %v2555_v23 = vcombine.high %v2539_v10, %v2539_v10  ;;  %v3853_v10 = vld [vmem:[%s8207_s28 + $0xb60] sm:$0xff]  ;;  %v3855_v19 = vld [vmem:[%s8207_s28 + $0xb70] sm:$0xff] }
 0x1b5   : > { %v6912_v33 = vadd.f32 %v5408_v26, %v3840_v12  ;;  %v2581_v36 = vrot.slane %v9775_v44, %v8221_v5  ;;  %7426 = vst [vmem:[%s8249_s21 + $0xb08] sm:$0xff] %v6914_v29  ;;  %7427 = vst [vmem:[%s8249_s21 + $0xb10] sm:$0xff] %v6915_v30  ;;  %v5432_v38 = vrot.slane %v2553_v32, %v8225_v8  ;;  %v3858_v28 = vld [vmem:[%s8207_s28 + $0xb88] sm:$0xff]  ;;  %v3856_v29 = vld [vmem:[%s8207_s28 + $0xb78] sm:$0xff] }
 0x1b6   : > { %v6916_v37 = vadd.f32 %v5424_v14, %v3844_v27  ;;  %v2557_v41 = vcombine.high %v2553_v32, %v2553_v32  ;;  %v2573_v43 = vcombine.high %v9775_v44, %v9775_v44  ;;  %7429 = vst [vmem:[%s8249_s21 + $0xb20] sm:$0xff] %v6917_v34  ;;  %v5436_v45 = vrot.slane %v2555_v23, %v8225_v8  ;;  %v272_v34 = vld [vmem:[%s8215_s3 + $0x178] sm:$0xff] }
 0x1b7   : > { %7424 = vst [vmem:[%s8249_s21 + $0xaf8] sm:$0xff] %v6912_v33  ;;  %v5444_v48 = vrot.slane %v2581_v36, %v8225_v8  ;;  %v2603_v31 = vcombine.high %v2581_v36, %v2581_v36  ;;  %v2558_v46 = vcombine.high %v9767_v57, %v9767_v57  ;;  %v6918_v50 = vadd.f32 %v5432_v38, %v3846_v35 }
 0x1b8   : > { %7428 = vst [vmem:[%s8249_s21 + $0xb18] sm:$0xff] %v6916_v37  ;;  %v5440_v51 = vrot.slane %v2557_v41, %v8225_v8  ;;  %v2595_v53 = vrot.slane %v2573_v43, %v8221_v5  ;;  %v2614_v54 = vrot.slane %v271_v49, %v8221_v5  ;;  %v6919_v55 = vadd.f32 %v5436_v45, %v3847_v39  ;;  %v3860_v37 = vld [vmem:[%s8207_s28 + $0xb98] sm:$0xff] }
 0x1b9   : > { %v6921_v56 = vadd.f32 %v5444_v48, %v3849_v42  ;;  %v5452_v57 = vrot.slane %v2603_v31, %v8225_v8  ;;  %v2572_v59 = vrot.slane %v2558_v46, %v8221_v5  ;;  %7430 = vst [vmem:[%s8249_s21 + $0xb28] sm:$0xff] %v6918_v50  ;;  %v2607_v22 = vcombine.high %v271_v49, %v271_v49 }
 0x1ba   : > { %v6920_v61 = vadd.f32 %v5440_v51, %v3848_v47  ;;  %v5448_v60 = vrot.slane %v2595_v53, %v8225_v8  ;;  %v2605_v44 = vcombine.high %v2595_v53, %v2595_v53  ;;  %v2630_v63 = vrot.slane %v2614_v54, %v8221_v5  ;;  %7431 = vst [vmem:[%s8249_s21 + $0xb30] sm:$0xff] %v6919_v55  ;;  %v3861_v47 = vld [vmem:[%s8207_s28 + $0xba0] sm:$0xff]  ;;  %v3863_v55 = vld [vmem:[%s8207_s28 + $0xbb0] sm:$0xff] }
 0x1bb   : > { %7433 = vst [vmem:[%s8249_s21 + $0xb40] sm:$0xff] %v6921_v56  ;;  %v6923_v0 = vadd.f32 %v5452_v57, %v3851_v40  ;;  %v2588_v1 = vrot.slane %v2572_v59, %v8221_v5  ;;  %v2574_v2 = vcombine.high %v2572_v59, %v2572_v59  ;;  %v2622_v6 = vcombine.high %v2614_v54, %v2614_v54  ;;  %v3865_v40 = vld [vmem:[%s8207_s28 + $0xbc0] sm:$0xff]  ;;  %v3862_v54 = vld [vmem:[%s8207_s28 + $0xba8] sm:$0xff] }
 0x1bc   : > { %7432 = vst [vmem:[%s8249_s21 + $0xb38] sm:$0xff] %v6920_v61  ;;  %v6922_v7 = vadd.f32 %v5448_v60, %v3850_v52  ;;  %v5456_v9 = vrot.slane %v2605_v44, %v8225_v8  ;;  %v5476_v11 = vrot.slane %v2630_v63, %v8225_v8  ;;  %v2652_v4 = vcombine.high %v2630_v63, %v2630_v63 }
 0x1bd   : > { %7435 = vst [vmem:[%s8249_s21 + $0xb50] sm:$0xff] %v6923_v0  ;;  %v5460_v13 = vrot.slane %v2588_v1, %v8225_v8  ;;  %v2602_v15 = vrot.slane %v2574_v2, %v8221_v5  ;;  %v2604_v16 = vcombine.high %v2588_v1, %v2588_v1  ;;  %v2644_v17 = vrot.slane %v2622_v6, %v8221_v5  ;;  %v3866_v0 = vld [vmem:[%s8207_s28 + $0xbc8] sm:$0xff]  ;;  %v3864_v1 = vld [vmem:[%s8207_s28 + $0xbb8] sm:$0xff] }
 0x1be   : > { %7434 = vst [vmem:[%s8249_s21 + $0xb48] sm:$0xff] %v6922_v7  ;;  %v6924_v12 = vadd.f32 %v5456_v9, %v3852_v58  ;;  %v6929_v20 = vadd.f32 %v5476_v11, %v3857_v3  ;;  %v5484_v21 = vrot.slane %v2652_v4, %v8225_v8  ;;  %v2621_v33 = vrot.slane %v2607_v22, %v8221_v5  ;;  %v3867_v58 = vld [vmem:[%s8207_s28 + $0xbd0] sm:$0xff]  ;;  %v3868_v4 = vld [vmem:[%s8207_s28 + $0xbd8] sm:$0xff] }
 0x1bf   : > { %v6925_v24 = vadd.f32 %v5460_v13, %v3853_v10  ;;  %v5464_v25 = vrot.slane %v2602_v15, %v8225_v8  ;;  %v5468_v26 = vrot.slane %v2604_v16, %v8225_v8  ;;  %v2606_v27 = vcombine.high %v2602_v15, %v2602_v15  ;;  %v273_v15 = vld [vmem:[%s8215_s3 + $0x180] sm:$0xff] }
 0x1c0   : > { %7436 = vst [vmem:[%s8249_s21 + $0xb58] sm:$0xff] %v6924_v12  ;;  %7441 = vst [vmem:[%s8249_s21 + $0xb80] sm:$0xff] %v6929_v20  ;;  %v5480_v30 = vrot.slane %v2644_v17, %v8225_v8  ;;  %v6931_v14 = vadd.f32 %v5484_v21, %v3859_v62  ;;  %v2654_v32 = vcombine.high %v2644_v17, %v2644_v17  ;;  %v3869_v12 = vld [vmem:[%s8207_s28 + $0xbe0] sm:$0xff] }
 0x1c1   : > { %7437 = vst [vmem:[%s8249_s21 + $0xb60] sm:$0xff] %v6925_v24  ;;  %v6926_v35 = vadd.f32 %v5464_v25, %v3854_v18  ;;  %v6927_v23 = vadd.f32 %v5468_v26, %v3855_v19  ;;  %v5472_v36 = vrot.slane %v2606_v27, %v8225_v8  ;;  %v2663_v38 = vrot.slane %v272_v34, %v8221_v5  ;;  %v9902_v24 = vld [vmem:[%s8215_s3 + $0x188] sm:$0xff]  ;;  %v3871_v27 = vld [vmem:[%s8207_s28 + $0xbf0] sm:$0xff] }
 0x1c2   : > { %v6930_v39 = vadd.f32 %v5480_v30, %v3858_v28  ;;  %7443 = vst [vmem:[%s8249_s21 + $0xb90] sm:$0xff] %v6931_v14  ;;  %v5488_v41 = vrot.slane %v2654_v32, %v8225_v8  ;;  %v2637_v42 = vrot.slane %v2621_v33, %v8221_v5  ;;  %v2623_v43 = vcombine.high %v2621_v33, %v2621_v33  ;;  %v3870_v14 = vld [vmem:[%s8207_s28 + $0xbe8] sm:$0xff] }
 0x1c3   : > { %7438 = vst [vmem:[%s8249_s21 + $0xb68] sm:$0xff] %v6926_v35  ;;  %7439 = vst [vmem:[%s8249_s21 + $0xb70] sm:$0xff] %v6927_v23  ;;  %v6928_v45 = vadd.f32 %v5472_v36, %v3856_v29  ;;  %v2679_v48 = vrot.slane %v2663_v38, %v8221_v5  ;;  %v2671_v31 = vcombine.high %v2663_v38, %v2663_v38  ;;  %v3873_v36 = vld [vmem:[%s8207_s28 + $0xc00] sm:$0xff] }
 0x1c4   : > { %v2656_v46 = vcombine.high %v272_v34, %v272_v34  ;;  %7442 = vst [vmem:[%s8249_s21 + $0xb88] sm:$0xff] %v6930_v39  ;;  %v6932_v49 = vadd.f32 %v5488_v41, %v3860_v37  ;;  %v5492_v50 = vrot.slane %v2637_v42, %v8225_v8  ;;  %v2651_v51 = vrot.slane %v2623_v43, %v8221_v5  ;;  %v3872_v41 = vld [vmem:[%s8207_s28 + $0xbf8] sm:$0xff] }
 0x1c5   : > { %v2653_v53 = vcombine.high %v2637_v42, %v2637_v42  ;;  %7440 = vst [vmem:[%s8249_s21 + $0xb78] sm:$0xff] %v6928_v45  ;;  %v5508_v56 = vrot.slane %v2679_v48, %v8225_v8  ;;  %v2693_v52 = vrot.slane %v2671_v31, %v8221_v5  ;;  %v2701_v57 = vcombine.high %v2679_v48, %v2679_v48  ;;  %v3874_v31 = vld [vmem:[%s8207_s28 + $0xc08] sm:$0xff] }
 0x1c6   : > { %v2670_v59 = vrot.slane %v2656_v46, %v8221_v5  ;;  %7444 = vst [vmem:[%s8249_s21 + $0xb98] sm:$0xff] %v6932_v49  ;;  %v6933_v61 = vadd.f32 %v5492_v50, %v3861_v47  ;;  %v5496_v60 = vrot.slane %v2651_v51, %v8225_v8  ;;  %v2655_v63 = vcombine.high %v2651_v51, %v2651_v51  ;;  %v3875_v46 = vld [vmem:[%s8207_s28 + $0xc10] sm:$0xff] }
 0x1c7   : > { %v5500_v44 = vrot.slane %v2653_v53, %v8225_v8  ;;  %v6937_v2 = vadd.f32 %v5508_v56, %v3865_v40  ;;  %v5512_v3 = vrot.slane %v2693_v52, %v8225_v8  ;;  %v5516_v6 = vrot.slane %v2701_v57, %v8225_v8 }
 0x1c8   : > { %v2703_v7 = vcombine.high %v2693_v52, %v2693_v52  ;;  %7445 = vst [vmem:[%s8249_s21 + $0xba0] sm:$0xff] %v6933_v61  ;;  %v6934_v9 = vadd.f32 %v5496_v60, %v3862_v54  ;;  %v5504_v11 = vrot.slane %v2655_v63, %v8225_v8  ;;  %v2686_v13 = vrot.slane %v2670_v59, %v8221_v5  ;;  %v3876_v52 = vld [vmem:[%s8207_s28 + $0xc18] sm:$0xff]  ;;  %v3881_v60 = vld [vmem:[%s8207_s28 + $0xc40] sm:$0xff] }
 0x1c9   : > { %v6935_v10 = vadd.f32 %v5500_v44, %v3863_v55  ;;  %7449 = vst [vmem:[%s8249_s21 + $0xbc0] sm:$0xff] %v6937_v2  ;;  %v6938_v16 = vadd.f32 %v5512_v3, %v3866_v0  ;;  %v6939_v17 = vadd.f32 %v5516_v6, %v3867_v58  ;;  %v2672_v18 = vcombine.high %v2670_v59, %v2670_v59  ;;  %v3877_v55 = vld [vmem:[%s8207_s28 + $0xc20] sm:$0xff]  ;;  %v3878_v58 = vld [vmem:[%s8207_s28 + $0xc28] sm:$0xff] }
 0x1ca   : > { %v5520_v62 = vrot.slane %v2703_v7, %v8225_v8  ;;  %7446 = vst [vmem:[%s8249_s21 + $0xba8] sm:$0xff] %v6934_v9  ;;  %v6936_v19 = vadd.f32 %v5504_v11, %v3864_v1  ;;  %v5524_v20 = vrot.slane %v2686_v13, %v8225_v8  ;;  %v2702_v21 = vcombine.high %v2686_v13, %v2686_v13  ;;  %v3879_v1 = vld [vmem:[%s8207_s28 + $0xc30] sm:$0xff] }
 0x1cb   : > { %7447 = vst [vmem:[%s8249_s21 + $0xbb0] sm:$0xff] %v6935_v10  ;;  %v2712_v22 = vrot.slane %v273_v15, %v8221_v5  ;;  %7450 = vst [vmem:[%s8249_s21 + $0xbc8] sm:$0xff] %v6938_v16  ;;  %v2700_v26 = vrot.slane %v2672_v18, %v8221_v5  ;;  %v2705_v28 = vcombine.high %v273_v15, %v273_v15  ;;  %v275_v10 = vld [vmem:[%s8215_s3 + $0x190] sm:$0xff] }
 0x1cc   : > { %7451 = vst [vmem:[%s8249_s21 + $0xbd0] sm:$0xff] %v6939_v17  ;;  %v6940_v25 = vadd.f32 %v5520_v62, %v3868_v4  ;;  %v9910_v29 = vrot.slane %v9902_v24, %v8221_v5  ;;  %7448 = vst [vmem:[%s8249_s21 + $0xbb8] sm:$0xff] %v6936_v19  ;;  %v6941_v30 = vadd.f32 %v5524_v20, %v3869_v12  ;;  %v3880_v4 = vld [vmem:[%s8207_s28 + $0xc38] sm:$0xff]  ;;  %v3883_v19 = vld [vmem:[%s8207_s28 + $0xc50] sm:$0xff] }
 0x1cd   : > { %v5532_v32 = vrot.slane %v2702_v21, %v8225_v8  ;;  %v2728_v33 = vrot.slane %v2712_v22, %v8221_v5  ;;  %v2720_v34 = vcombine.high %v2712_v22, %v2712_v22  ;;  %v5528_v35 = vrot.slane %v2700_v26, %v8225_v8  ;;  %v9954_v17 = vld [vmem:[%s8215_s3 + $0x198] sm:$0xff] }
 0x1ce   : > { %7452 = vst [vmem:[%s8249_s21 + $0xbd8] sm:$0xff] %v6940_v25  ;;  %v2704_v23 = vcombine.high %v2700_v26, %v2700_v26  ;;  %v2719_v37 = vrot.slane %v2705_v28, %v8221_v5  ;;  %v2777_v38 = vrot.slane %v9910_v29, %v8221_v5  ;;  %7453 = vst [vmem:[%s8249_s21 + $0xbe0] sm:$0xff] %v6941_v30  ;;  %v3882_v28 = vld [vmem:[%s8207_s28 + $0xc48] sm:$0xff] }
 0x1cf   : > { %v6943_v39 = vadd.f32 %v5532_v32, %v3871_v27  ;;  %v5540_v42 = vrot.slane %v2728_v33, %v8225_v8  ;;  %v2742_v43 = vrot.slane %v2720_v34, %v8221_v5  ;;  %v2750_v45 = vcombine.high %v2728_v33, %v2728_v33 }
 0x1d0   : > { %v6942_v47 = vadd.f32 %v5528_v35, %v3870_v14  ;;  %v5536_v48 = vrot.slane %v2704_v23, %v8225_v8  ;;  %v2735_v49 = vrot.slane %v2719_v37, %v8221_v5  ;;  %v2721_v50 = vcombine.high %v2719_v37, %v2719_v37  ;;  %v3884_v35 = vld [vmem:[%s8207_s28 + $0xc58] sm:$0xff]  ;;  %v3889_v37 = vld [vmem:[%s8207_s28 + $0xc80] sm:$0xff] }
 0x1d1   : > { %7455 = vst [vmem:[%s8249_s21 + $0xbf0] sm:$0xff] %v6943_v39  ;;  %v6945_v51 = vadd.f32 %v5540_v42, %v3873_v36  ;;  %v5544_v53 = vrot.slane %v2742_v43, %v8225_v8  ;;  %v5548_v40 = vrot.slane %v2750_v45, %v8225_v8  ;;  %v2752_v54 = vcombine.high %v2742_v43, %v2742_v43  ;;  %v3885_v43 = vld [vmem:[%s8207_s28 + $0xc60] sm:$0xff] }
 0x1d2   : > { %7454 = vst [vmem:[%s8249_s21 + $0xbe8] sm:$0xff] %v6942_v47  ;;  %v6944_v56 = vadd.f32 %v5536_v48, %v3872_v41  ;;  %v5556_v57 = vrot.slane %v2735_v49, %v8225_v8  ;;  %v2749_v59 = vrot.slane %v2721_v50, %v8221_v5  ;;  %v2751_v61 = vcombine.high %v2735_v49, %v2735_v49  ;;  %v3891_v50 = vld [vmem:[%s8207_s28 + $0xc90] sm:$0xff] }
 0x1d3   : > { %7457 = vst [vmem:[%s8249_s21 + $0xc00] sm:$0xff] %v6945_v51  ;;  %v6946_v44 = vadd.f32 %v5544_v53, %v3874_v31  ;;  %v6947_v63 = vadd.f32 %v5548_v40, %v3875_v46  ;;  %v5552_v0 = vrot.slane %v2752_v54, %v8225_v8  ;;  %v5572_v2 = vrot.slane %v2777_v38, %v8225_v8  ;;  %v3886_v53 = vld [vmem:[%s8207_s28 + $0xc68] sm:$0xff]  ;;  %v3887_v40 = vld [vmem:[%s8207_s28 + $0xc70] sm:$0xff] }
 0x1d4   : > { %7456 = vst [vmem:[%s8249_s21 + $0xbf8] sm:$0xff] %v6944_v56  ;;  %v6949_v3 = vadd.f32 %v5556_v57, %v3877_v55  ;;  %v5560_v6 = vrot.slane %v2749_v59, %v8225_v8  ;;  %v5564_v7 = vrot.slane %v2751_v61, %v8225_v8  ;;  %v2753_v9 = vcombine.high %v2749_v59, %v2749_v59 }
 0x1d5   : > { %7458 = vst [vmem:[%s8249_s21 + $0xc08] sm:$0xff] %v6946_v44  ;;  %7459 = vst [vmem:[%s8249_s21 + $0xc10] sm:$0xff] %v6947_v63  ;;  %v6948_v11 = vadd.f32 %v5552_v0, %v3876_v52  ;;  %v6953_v13 = vadd.f32 %v5572_v2, %v3881_v60  ;;  %v2769_v15 = vcombine.high %v9910_v29, %v9910_v29  ;;  %v3890_v60 = vld [vmem:[%s8207_s28 + $0xc88] sm:$0xff]  ;;  %v3893_v44 = vld [vmem:[%s8207_s28 + $0xca0] sm:$0xff] }
 0x1d6   : > { %v2799_v16 = vcombine.high %v2777_v38, %v2777_v38  ;;  %7461 = vst [vmem:[%s8249_s21 + $0xc20] sm:$0xff] %v6949_v3  ;;  %v6950_v62 = vadd.f32 %v5560_v6, %v3878_v58  ;;  %v6951_v12 = vadd.f32 %v5564_v7, %v3879_v1  ;;  %v5568_v18 = vrot.slane %v2753_v9, %v8225_v8  ;;  %v3888_v63 = vld [vmem:[%s8207_s28 + $0xc78] sm:$0xff] }
 0x1d7   : > { %v2754_v20 = vcombine.high %v9902_v24, %v9902_v24  ;;  %7460 = vst [vmem:[%s8249_s21 + $0xc18] sm:$0xff] %v6948_v11  ;;  %7465 = vst [vmem:[%s8249_s21 + $0xc40] sm:$0xff] %v6953_v13  ;;  %v2791_v21 = vrot.slane %v2769_v15, %v8221_v5  ;;  %v2810_v25 = vrot.slane %v275_v10, %v8221_v5  ;;  %v3892_v9 = vld [vmem:[%s8207_s28 + $0xc98] sm:$0xff] }
 0x1d8   : > { %v5580_v22 = vrot.slane %v2799_v16, %v8225_v8  ;;  %v2803_v26 = vcombine.high %v275_v10, %v275_v10  ;;  %7462 = vst [vmem:[%s8249_s21 + $0xc28] sm:$0xff] %v6950_v62  ;;  %7463 = vst [vmem:[%s8249_s21 + $0xc30] sm:$0xff] %v6951_v12  ;;  %v6952_v27 = vadd.f32 %v5568_v18, %v3880_v4  ;;  %v3895_v12 = vld [vmem:[%s8207_s28 + $0xcb0] sm:$0xff] }
 0x1d9   : > { %v2768_v29 = vrot.slane %v2754_v20, %v8221_v5  ;;  %v9972_v24 = vrot.slane %v9954_v17, %v8221_v5  ;;  %v2852_v30 = vcombine.high %v9954_v17, %v9954_v17  ;;  %v5576_v14 = vrot.slane %v2791_v21, %v8225_v8  ;;  %v10019_v20 = vld [vmem:[%s8215_s3 + $0x1a0] sm:$0xff]  ;;  %v3898_v17 = vld [vmem:[%s8207_s28 + $0xcc8] sm:$0xff] }
 0x1da   : > { %v6955_v32 = vadd.f32 %v5580_v22, %v3883_v19  ;;  %v2801_v33 = vcombine.high %v2791_v21, %v2791_v21  ;;  %v2826_v34 = vrot.slane %v2810_v25, %v8221_v5  ;;  %7464 = vst [vmem:[%s8249_s21 + $0xc38] sm:$0xff] %v6952_v27  ;;  %v2818_v38 = vcombine.high %v2810_v25, %v2810_v25  ;;  %v3894_v22 = vld [vmem:[%s8207_s28 + $0xca8] sm:$0xff] }
 0x1db   : > { %v2784_v23 = vrot.slane %v2768_v29, %v8221_v5  ;;  %v2770_v36 = vcombine.high %v2768_v29, %v2768_v29  ;;  %v2817_v39 = vrot.slane %v2803_v26, %v8221_v5  ;;  %v6954_v41 = vadd.f32 %v5576_v14, %v3882_v28  ;;  %v3897_v26 = vld [vmem:[%s8207_s28 + $0xcc0] sm:$0xff] }
 0x1dc   : > { %7467 = vst [vmem:[%s8249_s21 + $0xc50] sm:$0xff] %v6955_v32  ;;  %v5584_v42 = vrot.slane %v2801_v33, %v8225_v8  ;;  %v5604_v45 = vrot.slane %v2826_v34, %v8225_v8  ;;  %v2848_v47 = vcombine.high %v2826_v34, %v2826_v34  ;;  %v2840_v49 = vrot.slane %v2818_v38, %v8221_v5  ;;  %v3896_v34 = vld [vmem:[%s8207_s28 + $0xcb8] sm:$0xff] }
 0x1dd   : > { %v5588_v48 = vrot.slane %v2784_v23, %v8225_v8  ;;  %v2798_v31 = vrot.slane %v2770_v36, %v8221_v5  ;;  %v2800_v46 = vcombine.high %v2784_v23, %v2784_v23  ;;  %7466 = vst [vmem:[%s8249_s21 + $0xc48] sm:$0xff] %v6954_v41  ;;  %v2833_v56 = vrot.slane %v2817_v39, %v8221_v5  ;;  %v3899_v41 = vld [vmem:[%s8207_s28 + $0xcd0] sm:$0xff] }
 0x1de   : > { %v6956_v51 = vadd.f32 %v5584_v42, %v3884_v35  ;;  %v6961_v54 = vadd.f32 %v5604_v45, %v3889_v37  ;;  %v5612_v55 = vrot.slane %v2848_v47, %v8225_v8  ;;  %v5608_v0 = vrot.slane %v2840_v49, %v8225_v8  ;;  %v3901_v42 = vld [vmem:[%s8207_s28 + $0xce0] sm:$0xff] }
 0x1df   : > { %v6957_v52 = vadd.f32 %v5588_v48, %v3885_v43  ;;  %v5592_v57 = vrot.slane %v2798_v31, %v8225_v8  ;;  %v5596_v59 = vrot.slane %v2800_v46, %v8225_v8  ;;  %v2802_v61 = vcombine.high %v2798_v31, %v2798_v31 }
 0x1e0   : > { %7468 = vst [vmem:[%s8249_s21 + $0xc58] sm:$0xff] %v6956_v51  ;;  %7473 = vst [vmem:[%s8249_s21 + $0xc80] sm:$0xff] %v6961_v54  ;;  %v6963_v58 = vadd.f32 %v5612_v55, %v3891_v50  ;;  %v2850_v1 = vcombine.high %v2840_v49, %v2840_v49  ;;  %v5620_v2 = vrot.slane %v2833_v56, %v8225_v8  ;;  %v3900_v49 = vld [vmem:[%s8207_s28 + $0xcd8] sm:$0xff]  ;;  %v3902_v50 = vld [vmem:[%s8207_s28 + $0xce8] sm:$0xff] }
 0x1e1   : > { %7469 = vst [vmem:[%s8249_s21 + $0xc60] sm:$0xff] %v6957_v52  ;;  %v6958_v3 = vadd.f32 %v5592_v57, %v3886_v53  ;;  %v6959_v6 = vadd.f32 %v5596_v59, %v3887_v40  ;;  %v5600_v7 = vrot.slane %v2802_v61, %v8225_v8  ;;  %v2819_v10 = vcombine.high %v2817_v39, %v2817_v39  ;;  %v3903_v52 = vld [vmem:[%s8207_s28 + $0xcf0] sm:$0xff]  ;;  %v3905_v57 = vld [vmem:[%s8207_s28 + $0xd00] sm:$0xff] }
 0x1e2   : > { %v6962_v11 = vadd.f32 %v5608_v0, %v3890_v60  ;;  %7475 = vst [vmem:[%s8249_s21 + $0xc90] sm:$0xff] %v6963_v58  ;;  %v5616_v4 = vrot.slane %v2850_v1, %v8225_v8  ;;  %v6965_v13 = vadd.f32 %v5620_v2, %v3893_v44  ;;  %v2849_v15 = vcombine.high %v2833_v56, %v2833_v56  ;;  %v3904_v1 = vld [vmem:[%s8207_s28 + $0xcf8] sm:$0xff] }
 0x1e3   : > { %7470 = vst [vmem:[%s8249_s21 + $0xc68] sm:$0xff] %v6958_v3  ;;  %7471 = vst [vmem:[%s8249_s21 + $0xc70] sm:$0xff] %v6959_v6  ;;  %v6960_v16 = vadd.f32 %v5600_v7, %v3888_v63  ;;  %v2847_v62 = vrot.slane %v2819_v10, %v8221_v5  ;;  %v2875_v18 = vrot.slane %v9972_v24, %v8221_v5  ;;  %v278_v63 = vld [vmem:[%s8215_s3 + $0x1a8] sm:$0xff] }
 0x1e4   : > { %v2867_v19 = vcombine.high %v9972_v24, %v9972_v24  ;;  %7474 = vst [vmem:[%s8249_s21 + $0xc88] sm:$0xff] %v6962_v11  ;;  %v6964_v21 = vadd.f32 %v5616_v4, %v3892_v9  ;;  %7477 = vst [vmem:[%s8249_s21 + $0xca0] sm:$0xff] %v6965_v13  ;;  %v5628_v25 = vrot.slane %v2849_v15, %v8225_v8  ;;  %v3907_v11 = vld [vmem:[%s8207_s28 + $0xd10] sm:$0xff]  ;;  %v3906_v4 = vld [vmem:[%s8207_s28 + $0xd08] sm:$0xff] }
 0x1e5   : > { %v2866_v27 = vrot.slane %v2852_v30, %v8221_v5  ;;  %v2908_v28 = vrot.slane %v10019_v20, %v8221_v5  ;;  %7472 = vst [vmem:[%s8249_s21 + $0xc78] sm:$0xff] %v6960_v16  ;;  %v5624_v29 = vrot.slane %v2847_v62, %v8225_v8  ;;  %v2851_v24 = vcombine.high %v2847_v62, %v2847_v62 }
 0x1e6   : > { %v5636_v14 = vrot.slane %v2875_v18, %v8225_v8  ;;  %v2889_v32 = vrot.slane %v2867_v19, %v8221_v5  ;;  %7476 = vst [vmem:[%s8249_s21 + $0xc98] sm:$0xff] %v6964_v21  ;;  %v6967_v33 = vadd.f32 %v5628_v25, %v3895_v12  ;;  %v2897_v30 = vcombine.high %v2875_v18, %v2875_v18  ;;  %v10077_v12 = vld [vmem:[%s8215_s3 + $0x1b0] sm:$0xff]  ;;  %v3908_v25 = vld [vmem:[%s8207_s28 + $0xd18] sm:$0xff] }
 0x1e7   : > { %v2882_v35 = vrot.slane %v2866_v27, %v8221_v5  ;;  %v2868_v23 = vcombine.high %v2866_v27, %v2866_v27  ;;  %v6966_v36 = vadd.f32 %v5624_v29, %v3894_v22  ;;  %v5632_v37 = vrot.slane %v2851_v24, %v8225_v8 }
 0x1e8   : > { %v6969_v38 = vadd.f32 %v5636_v14, %v3897_v26  ;;  %v5640_v39 = vrot.slane %v2889_v32, %v8225_v8  ;;  %7479 = vst [vmem:[%s8249_s21 + $0xcb0] sm:$0xff] %v6967_v33  ;;  %v5644_v43 = vrot.slane %v2897_v30, %v8225_v8  ;;  %v2899_v45 = vcombine.high %v2889_v32, %v2889_v32  ;;  %v3909_v14 = vld [vmem:[%s8207_s28 + $0xd20] sm:$0xff] }
 0x1e9   : > { %v5652_v47 = vrot.slane %v2882_v35, %v8225_v8  ;;  %v2896_v48 = vrot.slane %v2868_v23, %v8221_v5  ;;  %7478 = vst [vmem:[%s8249_s21 + $0xca8] sm:$0xff] %v6966_v36  ;;  %v6968_v31 = vadd.f32 %v5632_v37, %v3896_v34  ;;  %v2898_v51 = vcombine.high %v2882_v35, %v2882_v35  ;;  %v3913_v35 = vld [vmem:[%s8207_s28 + $0xd40] sm:$0xff]  ;;  %v3910_v37 = vld [vmem:[%s8207_s28 + $0xd28] sm:$0xff] }
 0x1ea   : > { %7481 = vst [vmem:[%s8249_s21 + $0xcc0] sm:$0xff] %v6969_v38  ;;  %v6970_v46 = vadd.f32 %v5640_v39, %v3898_v17  ;;  %v2924_v53 = vrot.slane %v2908_v28, %v8221_v5  ;;  %v6971_v40 = vadd.f32 %v5644_v43, %v3899_v41  ;;  %v5648_v54 = vrot.slane %v2899_v45, %v8225_v8  ;;  %v3911_v38 = vld [vmem:[%s8207_s28 + $0xd30] sm:$0xff] }
 0x1eb   : > { %v6973_v55 = vadd.f32 %v5652_v47, %v3901_v42  ;;  %v5656_v56 = vrot.slane %v2896_v48, %v8225_v8  ;;  %7480 = vst [vmem:[%s8249_s21 + $0xcb8] sm:$0xff] %v6968_v31  ;;  %v5660_v59 = vrot.slane %v2898_v51, %v8225_v8  ;;  %v2900_v61 = vcombine.high %v2896_v48, %v2896_v48  ;;  %v3914_v31 = vld [vmem:[%s8207_s28 + $0xd48] sm:$0xff] }
 0x1ec   : > { %7482 = vst [vmem:[%s8249_s21 + $0xcc8] sm:$0xff] %v6970_v46  ;;  %v5668_v60 = vrot.slane %v2924_v53, %v8225_v8  ;;  %v2916_v44 = vcombine.high %v2908_v28, %v2908_v28  ;;  %7483 = vst [vmem:[%s8249_s21 + $0xcd0] sm:$0xff] %v6971_v40  ;;  %v6972_v0 = vadd.f32 %v5648_v54, %v3900_v49  ;;  %v3915_v46 = vld [vmem:[%s8207_s28 + $0xd50] sm:$0xff]  ;;  %v3912_v49 = vld [vmem:[%s8207_s28 + $0xd38] sm:$0xff] }
 0x1ed   : > { %7485 = vst [vmem:[%s8249_s21 + $0xce0] sm:$0xff] %v6973_v55  ;;  %v6974_v58 = vadd.f32 %v5656_v56, %v3902_v50  ;;  %v2946_v2 = vcombine.high %v2924_v53, %v2924_v53  ;;  %v2901_v3 = vcombine.high %v10019_v20, %v10019_v20  ;;  %v6975_v6 = vadd.f32 %v5660_v59, %v3903_v52  ;;  %v3917_v54 = vld [vmem:[%s8207_s28 + $0xd60] sm:$0xff] }
 0x1ee   : > { %v5664_v7 = vrot.slane %v2900_v61, %v8225_v8  ;;  %v6977_v9 = vadd.f32 %v5668_v60, %v3905_v57  ;;  %v2938_v10 = vrot.slane %v2916_v44, %v8221_v5  ;;  %7484 = vst [vmem:[%s8249_s21 + $0xcd8] sm:$0xff] %v6972_v0  ;;  %v2957_v16 = vrot.slane %v278_v63, %v8221_v5  ;;  %v3916_v57 = vld [vmem:[%s8207_s28 + $0xd58] sm:$0xff] }
 0x1ef   : > { %7486 = vst [vmem:[%s8249_s21 + $0xce8] sm:$0xff] %v6974_v58  ;;  %v5676_v13 = vrot.slane %v2946_v2, %v8225_v8  ;;  %v2915_v15 = vrot.slane %v2901_v3, %v8221_v5  ;;  %v2950_v62 = vcombine.high %v278_v63, %v278_v63  ;;  %7487 = vst [vmem:[%s8249_s21 + $0xcf0] sm:$0xff] %v6975_v6 }
 0x1f0   : > { %v6976_v18 = vadd.f32 %v5664_v7, %v3904_v1  ;;  %7489 = vst [vmem:[%s8249_s21 + $0xd00] sm:$0xff] %v6977_v9  ;;  %v5672_v19 = vrot.slane %v2938_v10, %v8225_v8  ;;  %v2948_v20 = vcombine.high %v2938_v10, %v2938_v10  ;;  %v10084_v21 = vrot.slane %v10077_v12, %v8221_v5  ;;  %v3919_v7 = vld [vmem:[%s8207_s28 + $0xd70] sm:$0xff]  ;;  %v3921_v9 = vld [vmem:[%s8207_s28 + $0xd80] sm:$0xff] }
 0x1f1   : > { %v6979_v22 = vadd.f32 %v5676_v13, %v3907_v11  ;;  %v2931_v26 = vrot.slane %v2915_v15, %v8221_v5  ;;  %v2917_v27 = vcombine.high %v2915_v15, %v2915_v15  ;;  %v2973_v28 = vrot.slane %v2957_v16, %v8221_v5  ;;  %v3918_v13 = vld [vmem:[%s8207_s28 + $0xd68] sm:$0xff] }
 0x1f2   : > { %7488 = vst [vmem:[%s8249_s21 + $0xcf8] sm:$0xff] %v6976_v18  ;;  %v6978_v29 = vadd.f32 %v5672_v19, %v3906_v4  ;;  %v5680_v24 = vrot.slane %v2948_v20, %v8225_v8  ;;  %v2965_v32 = vcombine.high %v2957_v16, %v2957_v16  ;;  %v2964_v33 = vrot.slane %v2950_v62, %v8221_v5  ;;  %v10132_v4 = vld [vmem:[%s8215_s3 + $0x1b8] sm:$0xff] }
 0x1f3   : > { %7491 = vst [vmem:[%s8249_s21 + $0xd10] sm:$0xff] %v6979_v22  ;;  %v5684_v34 = vrot.slane %v2931_v26, %v8225_v8  ;;  %v2945_v17 = vrot.slane %v2917_v27, %v8221_v5  ;;  %v2947_v30 = vcombine.high %v2931_v26, %v2931_v26  ;;  %v5700_v23 = vrot.slane %v2973_v28, %v8225_v8  ;;  %v3920_v26 = vld [vmem:[%s8207_s28 + $0xd78] sm:$0xff] }
 0x1f4   : > { %7490 = vst [vmem:[%s8249_s21 + $0xd08] sm:$0xff] %v6978_v29  ;;  %v6980_v36 = vadd.f32 %v5680_v24, %v3908_v25  ;;  %v2987_v39 = vrot.slane %v2965_v32, %v8221_v5  ;;  %v2995_v41 = vcombine.high %v2973_v28, %v2973_v28  ;;  %v2980_v42 = vrot.slane %v2964_v33, %v8221_v5  ;;  %v3922_v28 = vld [vmem:[%s8207_s28 + $0xd88] sm:$0xff] }
 0x1f5   : > { %v6981_v43 = vadd.f32 %v5684_v34, %v3909_v14  ;;  %v5688_v45 = vrot.slane %v2945_v17, %v8225_v8  ;;  %v5692_v47 = vrot.slane %v2947_v30, %v8225_v8  ;;  %v2949_v48 = vcombine.high %v2945_v17, %v2945_v17  ;;  %v3929_v17 = vld [vmem:[%s8207_s28 + $0xdc0] sm:$0xff] }
 0x1f6   : > { %7492 = vst [vmem:[%s8249_s21 + $0xd18] sm:$0xff] %v6980_v36  ;;  %v6985_v50 = vadd.f32 %v5700_v23, %v3913_v35  ;;  %v5704_v51 = vrot.slane %v2987_v39, %v8225_v8  ;;  %v5708_v53 = vrot.slane %v2995_v41, %v8225_v8  ;;  %v2997_v40 = vcombine.high %v2987_v39, %v2987_v39  ;;  %v3924_v35 = vld [vmem:[%s8207_s28 + $0xd98] sm:$0xff] }
 0x1f7   : > { %7493 = vst [vmem:[%s8249_s21 + $0xd20] sm:$0xff] %v6981_v43  ;;  %v6982_v55 = vadd.f32 %v5688_v45, %v3910_v37  ;;  %v6983_v56 = vadd.f32 %v5692_v47, %v3911_v38  ;;  %v5696_v52 = vrot.slane %v2949_v48, %v8225_v8  ;;  %v5716_v59 = vrot.slane %v2980_v42, %v8225_v8 }
 0x1f8   : > { %7497 = vst [vmem:[%s8249_s21 + $0xd40] sm:$0xff] %v6985_v50  ;;  %v6986_v61 = vadd.f32 %v5704_v51, %v3914_v31  ;;  %v6987_v60 = vadd.f32 %v5708_v53, %v3915_v46  ;;  %v5712_v44 = vrot.slane %v2997_v40, %v8225_v8  ;;  %v2966_v63 = vcombine.high %v2964_v33, %v2964_v33  ;;  %v3927_v50 = vld [vmem:[%s8207_s28 + $0xdb0] sm:$0xff] }
 0x1f9   : > { %7494 = vst [vmem:[%s8249_s21 + $0xd28] sm:$0xff] %v6982_v55  ;;  %7495 = vst [vmem:[%s8249_s21 + $0xd30] sm:$0xff] %v6983_v56  ;;  %v6984_v0 = vadd.f32 %v5696_v52, %v3912_v49  ;;  %v6989_v58 = vadd.f32 %v5716_v59, %v3917_v54  ;;  %v2996_v1 = vcombine.high %v2980_v42, %v2980_v42  ;;  %v3925_v42 = vld [vmem:[%s8207_s28 + $0xda0] sm:$0xff]  ;;  %v3926_v49 = vld [vmem:[%s8207_s28 + $0xda8] sm:$0xff] }
 0x1fa   : > { %v3022_v2 = vrot.slane %v10084_v21, %v8221_v5  ;;  %7498 = vst [vmem:[%s8249_s21 + $0xd48] sm:$0xff] %v6986_v61  ;;  %7499 = vst [vmem:[%s8249_s21 + $0xd50] sm:$0xff] %v6987_v60  ;;  %v6988_v3 = vadd.f32 %v5712_v44, %v3916_v57  ;;  %v2994_v6 = vrot.slane %v2966_v63, %v8221_v5  ;;  %v3930_v57 = vld [vmem:[%s8207_s28 + $0xdc8] sm:$0xff]  ;;  %v3931_v59 = vld [vmem:[%s8207_s28 + $0xdd0] sm:$0xff] }
 0x1fb   : > { %v3014_v10 = vcombine.high %v10084_v21, %v10084_v21  ;;  %v2999_v11 = vcombine.high %v10077_v12, %v10077_v12  ;;  %7496 = vst [vmem:[%s8249_s21 + $0xd38] sm:$0xff] %v6984_v0  ;;  %7501 = vst [vmem:[%s8249_s21 + $0xd60] sm:$0xff] %v6989_v58  ;;  %v5724_v15 = vrot.slane %v2996_v1, %v8225_v8  ;;  %v3923_v21 = vld [vmem:[%s8207_s28 + $0xd90] sm:$0xff]  ;;  %v3928_v61 = vld [vmem:[%s8207_s28 + $0xdb8] sm:$0xff] }
 0x1fc   : > { %v5732_v16 = vrot.slane %v3022_v2, %v8225_v8  ;;  %v3044_v62 = vcombine.high %v3022_v2, %v3022_v2  ;;  %v3055_v18 = vrot.slane %v10132_v4, %v8221_v5  ;;  %7500 = vst [vmem:[%s8249_s21 + $0xd58] sm:$0xff] %v6988_v3  ;;  %v5720_v19 = vrot.slane %v2994_v6, %v8225_v8  ;;  %v281_v58 = vld [vmem:[%s8215_s3 + $0x1c0] sm:$0xff] }
 0x1fd   : > { %v2998_v12 = vcombine.high %v2994_v6, %v2994_v6  ;;  %v3036_v20 = vrot.slane %v3014_v10, %v8221_v5  ;;  %v3013_v22 = vrot.slane %v2999_v11, %v8221_v5  ;;  %v6991_v25 = vadd.f32 %v5724_v15, %v3919_v7  ;;  %v3932_v6 = vld [vmem:[%s8207_s28 + $0xdd8] sm:$0xff]  ;;  %v3933_v15 = vld [vmem:[%s8207_s28 + $0xde0] sm:$0xff] }
 0x1fe   : > { %v6993_v27 = vadd.f32 %v5732_v16, %v3921_v9  ;;  %v5740_v29 = vrot.slane %v3044_v62, %v8225_v8  ;;  %v3071_v24 = vrot.slane %v3055_v18, %v8221_v5  ;;  %v6990_v14 = vadd.f32 %v5720_v19, %v3918_v13 }
 0x1ff   : > { %v5728_v32 = vrot.slane %v2998_v12, %v8225_v8  ;;  %v5736_v33 = vrot.slane %v3036_v20, %v8225_v8  ;;  %v3046_v34 = vcombine.high %v3036_v20, %v3036_v20  ;;  %7503 = vst [vmem:[%s8249_s21 + $0xd70] sm:$0xff] %v6991_v25  ;;  %v3029_v23 = vrot.slane %v3013_v22, %v8221_v5 }
 0x200   : > { %7505 = vst [vmem:[%s8249_s21 + $0xd80] sm:$0xff] %v6993_v27  ;;  %v6995_v30 = vadd.f32 %v5740_v29, %v3923_v21  ;;  %v3015_v36 = vcombine.high %v3013_v22, %v3013_v22  ;;  %v5764_v37 = vrot.slane %v3071_v24, %v8225_v8  ;;  %7502 = vst [vmem:[%s8249_s21 + $0xd68] sm:$0xff] %v6990_v14  ;;  %v3937_v21 = vld [vmem:[%s8207_s28 + $0xe00] sm:$0xff] }
 0x201   : > { %v6992_v38 = vadd.f32 %v5728_v32, %v3920_v26  ;;  %v6994_v39 = vadd.f32 %v5736_v33, %v3922_v28  ;;  %v5744_v41 = vrot.slane %v3046_v34, %v8225_v8  ;;  %v3063_v43 = vcombine.high %v3055_v18, %v3055_v18  ;;  %v3935_v26 = vld [vmem:[%s8207_s28 + $0xdf0] sm:$0xff]  ;;  %v3934_v32 = vld [vmem:[%s8207_s28 + $0xde8] sm:$0xff] }
 0x202   : > { %7507 = vst [vmem:[%s8249_s21 + $0xd90] sm:$0xff] %v6995_v30  ;;  %v5748_v45 = vrot.slane %v3029_v23, %v8225_v8  ;;  %v3043_v47 = vrot.slane %v3015_v36, %v8221_v5  ;;  %v3045_v48 = vcombine.high %v3029_v23, %v3029_v23  ;;  %v7001_v31 = vadd.f32 %v5764_v37, %v3929_v17  ;;  %v3938_v34 = vld [vmem:[%s8207_s28 + $0xe08] sm:$0xff] }
 0x203   : > { %7504 = vst [vmem:[%s8249_s21 + $0xd78] sm:$0xff] %v6992_v38  ;;  %7506 = vst [vmem:[%s8249_s21 + $0xd88] sm:$0xff] %v6994_v39  ;;  %v6996_v46 = vadd.f32 %v5744_v41, %v3924_v35  ;;  %v3085_v51 = vrot.slane %v3063_v43, %v8221_v5  ;;  %v3093_v53 = vcombine.high %v3071_v24, %v3071_v24  ;;  %v282_v24 = vld [vmem:[%s8215_s3 + $0x1c8] sm:$0xff]  ;;  %v3939_v38 = vld [vmem:[%s8207_s28 + $0xe10] sm:$0xff] }
 0x204   : > { %v3048_v40 = vcombine.high %v10132_v4, %v10132_v4  ;;  %v6997_v54 = vadd.f32 %v5748_v45, %v3925_v42  ;;  %v5752_v55 = vrot.slane %v3043_v47, %v8225_v8  ;;  %v5756_v56 = vrot.slane %v3045_v48, %v8225_v8  ;;  %7513 = vst [vmem:[%s8249_s21 + $0xdc0] sm:$0xff] %v7001_v31  ;;  %v3936_v41 = vld [vmem:[%s8207_s28 + $0xdf8] sm:$0xff] }
 0x205   : > { %v3047_v52 = vcombine.high %v3043_v47, %v3043_v47  ;;  %7508 = vst [vmem:[%s8249_s21 + $0xd98] sm:$0xff] %v6996_v46  ;;  %v5768_v60 = vrot.slane %v3085_v51, %v8225_v8  ;;  %v5772_v44 = vrot.slane %v3093_v53, %v8225_v8  ;;  %v3095_v63 = vcombine.high %v3085_v51, %v3085_v51  ;;  %v3940_v46 = vld [vmem:[%s8207_s28 + $0xe18] sm:$0xff] }
 0x206   : > { %v3062_v0 = vrot.slane %v3048_v40, %v8221_v5  ;;  %7509 = vst [vmem:[%s8249_s21 + $0xda0] sm:$0xff] %v6997_v54  ;;  %v6998_v1 = vadd.f32 %v5752_v55, %v3926_v49  ;;  %v6999_v2 = vadd.f32 %v5756_v56, %v3927_v50  ;;  %v3104_v7 = vrot.slane %v281_v58, %v8221_v5  ;;  %v3941_v49 = vld [vmem:[%s8207_s28 + $0xe20] sm:$0xff] }
 0x207   : > { %v5760_v3 = vrot.slane %v3047_v52, %v8225_v8  ;;  %v7002_v9 = vadd.f32 %v5768_v60, %v3930_v57  ;;  %v7003_v10 = vadd.f32 %v5772_v44, %v3931_v59  ;;  %v5776_v11 = vrot.slane %v3095_v63, %v8225_v8  ;;  %v3943_v52 = vld [vmem:[%s8207_s28 + $0xe30] sm:$0xff]  ;;  %v3942_v44 = vld [vmem:[%s8207_s28 + $0xe28] sm:$0xff] }
 0x208   : > { %v3078_v4 = vrot.slane %v3062_v0, %v8221_v5  ;;  %7510 = vst [vmem:[%s8249_s21 + $0xda8] sm:$0xff] %v6998_v1  ;;  %7511 = vst [vmem:[%s8249_s21 + $0xdb0] sm:$0xff] %v6999_v2  ;;  %v3064_v16 = vcombine.high %v3062_v0, %v3062_v0  ;;  %v3120_v62 = vrot.slane %v3104_v7, %v8221_v5  ;;  %v3945_v0 = vld [vmem:[%s8207_s28 + $0xe40] sm:$0xff] }
 0x209   : > { %v7000_v13 = vadd.f32 %v5760_v3, %v3928_v61  ;;  %v3112_v18 = vcombine.high %v3104_v7, %v3104_v7  ;;  %7514 = vst [vmem:[%s8249_s21 + $0xdc8] sm:$0xff] %v7002_v9  ;;  %7515 = vst [vmem:[%s8249_s21 + $0xdd0] sm:$0xff] %v7003_v10  ;;  %v7004_v19 = vadd.f32 %v5776_v11, %v3932_v6  ;;  %v10236_v7 = vld [vmem:[%s8215_s3 + $0x1d0] sm:$0xff]  ;;  %v3944_v10 = vld [vmem:[%s8207_s28 + $0xe38] sm:$0xff] }
 0x20a   : > { %v5780_v12 = vrot.slane %v3078_v4, %v8225_v8  ;;  %v3094_v20 = vcombine.high %v3078_v4, %v3078_v4  ;;  %v3097_v22 = vcombine.high %v281_v58, %v281_v58  ;;  %v3092_v25 = vrot.slane %v3064_v16, %v8221_v5  ;;  %v3946_v11 = vld [vmem:[%s8207_s28 + $0xe48] sm:$0xff] }
 0x20b   : > { %7512 = vst [vmem:[%s8249_s21 + $0xdb8] sm:$0xff] %v7000_v13  ;;  %v5796_v27 = vrot.slane %v3120_v62, %v8225_v8  ;;  %v3134_v28 = vrot.slane %v3112_v18, %v8221_v5  ;;  %v3142_v29 = vcombine.high %v3120_v62, %v3120_v62  ;;  %7516 = vst [vmem:[%s8249_s21 + $0xdd8] sm:$0xff] %v7004_v19 }
 0x20c   : > { %v7005_v14 = vadd.f32 %v5780_v12, %v3933_v15  ;;  %v5788_v33 = vrot.slane %v3094_v20, %v8225_v8  ;;  %v3111_v17 = vrot.slane %v3097_v22, %v8221_v5  ;;  %v3153_v30 = vrot.slane %v282_v24, %v8221_v5  ;;  %v3947_v12 = vld [vmem:[%s8207_s28 + $0xe50] sm:$0xff] }
 0x20d   : > { %v5784_v35 = vrot.slane %v3092_v25, %v8225_v8  ;;  %v3096_v23 = vcombine.high %v3092_v25, %v3092_v25  ;;  %v7009_v36 = vadd.f32 %v5796_v27, %v3937_v21  ;;  %v5800_v37 = vrot.slane %v3134_v28, %v8225_v8 }
 0x20e   : > { %7517 = vst [vmem:[%s8249_s21 + $0xde0] sm:$0xff] %v7005_v14  ;;  %v7007_v39 = vadd.f32 %v5788_v33, %v3935_v26  ;;  %v5804_v42 = vrot.slane %v3142_v29, %v8225_v8  ;;  %v3144_v43 = vcombine.high %v3134_v28, %v3134_v28  ;;  %v3127_v45 = vrot.slane %v3111_v17, %v8221_v5  ;;  %v3948_v28 = vld [vmem:[%s8207_s28 + $0xe58] sm:$0xff]  ;;  %v3949_v29 = vld [vmem:[%s8207_s28 + $0xe60] sm:$0xff] }
 0x20f   : > { %v7006_v47 = vadd.f32 %v5784_v35, %v3934_v32  ;;  %v5792_v48 = vrot.slane %v3096_v23, %v8225_v8  ;;  %7521 = vst [vmem:[%s8249_s21 + $0xe00] sm:$0xff] %v7009_v36  ;;  %v7010_v31 = vadd.f32 %v5800_v37, %v3938_v34  ;;  %v3113_v50 = vcombine.high %v3111_v17, %v3111_v17  ;;  %v3950_v35 = vld [vmem:[%s8207_s28 + $0xe68] sm:$0xff] }
 0x210   : > { %7519 = vst [vmem:[%s8249_s21 + $0xdf0] sm:$0xff] %v7007_v39  ;;  %v7011_v51 = vadd.f32 %v5804_v42, %v3939_v38  ;;  %v5808_v53 = vrot.slane %v3144_v43, %v8225_v8  ;;  %v5812_v40 = vrot.slane %v3127_v45, %v8225_v8  ;;  %v3143_v54 = vcombine.high %v3127_v45, %v3127_v45  ;;  %v3951_v43 = vld [vmem:[%s8207_s28 + $0xe70] sm:$0xff] }
 0x211   : > { %7518 = vst [vmem:[%s8249_s21 + $0xde8] sm:$0xff] %v7006_v47  ;;  %v7008_v55 = vadd.f32 %v5792_v48, %v3936_v41  ;;  %7522 = vst [vmem:[%s8249_s21 + $0xe08] sm:$0xff] %v7010_v31  ;;  %v3141_v56 = vrot.slane %v3113_v50, %v8221_v5  ;;  %v3169_v57 = vrot.slane %v3153_v30, %v8221_v5  ;;  %v3954_v47 = vld [vmem:[%s8207_s28 + $0xe88] sm:$0xff]  ;;  %v3955_v48 = vld [vmem:[%s8207_s28 + $0xe90] sm:$0xff] }
 0x212   : > { %v3161_v59 = vcombine.high %v3153_v30, %v3153_v30  ;;  %7523 = vst [vmem:[%s8249_s21 + $0xe10] sm:$0xff] %v7011_v51  ;;  %v7012_v61 = vadd.f32 %v5808_v53, %v3940_v46  ;;  %v7013_v60 = vadd.f32 %v5812_v40, %v3941_v49  ;;  %v5820_v63 = vrot.slane %v3143_v54, %v8225_v8  ;;  %v3953_v30 = vld [vmem:[%s8207_s28 + $0xe80] sm:$0xff]  ;;  %v3952_v46 = vld [vmem:[%s8207_s28 + $0xe78] sm:$0xff] }
 0x213   : > { %v3146_v58 = vcombine.high %v282_v24, %v282_v24  ;;  %7520 = vst [vmem:[%s8249_s21 + $0xdf8] sm:$0xff] %v7008_v55  ;;  %v5816_v1 = vrot.slane %v3141_v56, %v8225_v8  ;;  %v3145_v2 = vcombine.high %v3141_v56, %v3141_v56  ;;  %v5828_v3 = vrot.slane %v3169_v57, %v8225_v8  ;;  %v284_v53 = vld [vmem:[%s8215_s3 + $0x1d8] sm:$0xff] }
 0x214   : > { %v3183_v6 = vrot.slane %v3161_v59, %v8221_v5  ;;  %7524 = vst [vmem:[%s8249_s21 + $0xe18] sm:$0xff] %v7012_v61  ;;  %7525 = vst [vmem:[%s8249_s21 + $0xe20] sm:$0xff] %v7013_v60  ;;  %v7015_v9 = vadd.f32 %v5820_v63, %v3943_v52  ;;  %v3191_v4 = vcombine.high %v3169_v57, %v3169_v57  ;;  %v10281_v52 = vld [vmem:[%s8215_s3 + $0x1e0] sm:$0xff]  ;;  %v3956_v60 = vld [vmem:[%s8207_s28 + $0xe98] sm:$0xff] }
 0x215   : > { %v3160_v13 = vrot.slane %v3146_v58, %v8221_v5  ;;  %v3202_v15 = vrot.slane %v10236_v7, %v8221_v5  ;;  %v7014_v16 = vadd.f32 %v5816_v1, %v3942_v44  ;;  %v5824_v62 = vrot.slane %v3145_v2, %v8225_v8 }
 0x216   : > { %v7017_v18 = vadd.f32 %v5828_v3, %v3945_v0  ;;  %v5832_v19 = vrot.slane %v3183_v6, %v8225_v8  ;;  %7527 = vst [vmem:[%s8249_s21 + $0xe30] sm:$0xff] %v7015_v9  ;;  %v5836_v20 = vrot.slane %v3191_v4, %v8225_v8  ;;  %v3193_v21 = vcombine.high %v3183_v6, %v3183_v6  ;;  %v3961_v4 = vld [vmem:[%s8207_s28 + $0xec0] sm:$0xff] }
 0x217   : > { %v3176_v22 = vrot.slane %v3160_v13, %v8221_v5  ;;  %v3162_v25 = vcombine.high %v3160_v13, %v3160_v13  ;;  %7526 = vst [vmem:[%s8249_s21 + $0xe28] sm:$0xff] %v7014_v16  ;;  %v7016_v26 = vadd.f32 %v5824_v62, %v3944_v10  ;;  %v3218_v24 = vrot.slane %v3202_v15, %v8221_v5 }
 0x218   : > { %7529 = vst [vmem:[%s8249_s21 + $0xe40] sm:$0xff] %v7017_v18  ;;  %v7018_v27 = vadd.f32 %v5832_v19, %v3946_v11  ;;  %v3210_v14 = vcombine.high %v3202_v15, %v3202_v15  ;;  %v7019_v32 = vadd.f32 %v5836_v20, %v3947_v12  ;;  %v5840_v33 = vrot.slane %v3193_v21, %v8225_v8  ;;  %v3957_v15 = vld [vmem:[%s8207_s28 + $0xea0] sm:$0xff] }
 0x219   : > { %v5844_v34 = vrot.slane %v3176_v22, %v8225_v8  ;;  %v3190_v17 = vrot.slane %v3162_v25, %v8221_v5  ;;  %7528 = vst [vmem:[%s8249_s21 + $0xe38] sm:$0xff] %v7016_v26  ;;  %v3192_v23 = vcombine.high %v3176_v22, %v3176_v22  ;;  %v5860_v36 = vrot.slane %v3218_v24, %v8225_v8  ;;  %v3962_v22 = vld [vmem:[%s8207_s28 + $0xec8] sm:$0xff]  ;;  %v3963_v25 = vld [vmem:[%s8207_s28 + $0xed0] sm:$0xff] }
 0x21a   : > { %7530 = vst [vmem:[%s8249_s21 + $0xe48] sm:$0xff] %v7018_v27  ;;  %v3232_v37 = vrot.slane %v3210_v14, %v8221_v5  ;;  %v3240_v38 = vcombine.high %v3218_v24, %v3218_v24  ;;  %7531 = vst [vmem:[%s8249_s21 + $0xe50] sm:$0xff] %v7019_v32  ;;  %v7020_v39 = vadd.f32 %v5840_v33, %v3948_v28  ;;  %v3958_v27 = vld [vmem:[%s8207_s28 + $0xea8] sm:$0xff]  ;;  %v3959_v28 = vld [vmem:[%s8207_s28 + $0xeb0] sm:$0xff] }
 0x21b   : > { %v7021_v41 = vadd.f32 %v5844_v34, %v3949_v29  ;;  %v5848_v42 = vrot.slane %v3190_v17, %v8225_v8  ;;  %v3194_v45 = vcombine.high %v3190_v17, %v3190_v17  ;;  %v5852_v31 = vrot.slane %v3192_v23, %v8225_v8  ;;  %v3965_v23 = vld [vmem:[%s8207_s28 + $0xee0] sm:$0xff] }
 0x21c   : > { %v7025_v49 = vadd.f32 %v5860_v36, %v3953_v30  ;;  %v5864_v50 = vrot.slane %v3232_v37, %v8225_v8  ;;  %v5868_v51 = vrot.slane %v3240_v38, %v8225_v8  ;;  %7532 = vst [vmem:[%s8249_s21 + $0xe58] sm:$0xff] %v7020_v39  ;;  %v3242_v55 = vcombine.high %v3232_v37, %v3232_v37  ;;  %v3960_v36 = vld [vmem:[%s8207_s28 + $0xeb8] sm:$0xff] }
 0x21d   : > { %7533 = vst [vmem:[%s8249_s21 + $0xe60] sm:$0xff] %v7021_v41  ;;  %v7022_v40 = vadd.f32 %v5848_v42, %v3950_v35  ;;  %v5856_v54 = vrot.slane %v3194_v45, %v8225_v8  ;;  %v3195_v56 = vcombine.high %v10236_v7, %v10236_v7  ;;  %v7023_v57 = vadd.f32 %v5852_v31, %v3951_v43  ;;  %v3964_v35 = vld [vmem:[%s8207_s28 + $0xed8] sm:$0xff] }
 0x21e   : > { %7537 = vst [vmem:[%s8249_s21 + $0xe80] sm:$0xff] %v7025_v49  ;;  %v7026_v59 = vadd.f32 %v5864_v50, %v3954_v47  ;;  %v7027_v61 = vadd.f32 %v5868_v51, %v3955_v48  ;;  %v3251_v44 = vrot.slane %v284_v53, %v8221_v5  ;;  %v5872_v0 = vrot.slane %v3242_v55, %v8225_v8  ;;  %v3969_v48 = vld [vmem:[%s8207_s28 + $0xf00] sm:$0xff] }
 0x21f   : > { %7534 = vst [vmem:[%s8249_s21 + $0xe68] sm:$0xff] %v7022_v40  ;;  %v7024_v63 = vadd.f32 %v5856_v54, %v3952_v46  ;;  %v3209_v58 = vrot.slane %v3195_v56, %v8221_v5  ;;  %v3244_v1 = vcombine.high %v284_v53, %v284_v53  ;;  %7535 = vst [vmem:[%s8249_s21 + $0xe70] sm:$0xff] %v7023_v57  ;;  %v3967_v40 = vld [vmem:[%s8207_s28 + $0xef0] sm:$0xff]  ;;  %v10339_v56 = vld [vmem:[%s8215_s3 + $0x1e8] sm:$0xff] }
 0x220   : > { %7538 = vst [vmem:[%s8249_s21 + $0xe88] sm:$0xff] %v7026_v59  ;;  %7539 = vst [vmem:[%s8249_s21 + $0xe90] sm:$0xff] %v7027_v61  ;;  %v3267_v2 = vrot.slane %v3251_v44, %v8221_v5  ;;  %v3259_v3 = vcombine.high %v3251_v44, %v3251_v44  ;;  %v10295_v6 = vrot.slane %v10281_v52, %v8221_v5  ;;  %v3966_v57 = vld [vmem:[%s8207_s28 + $0xee8] sm:$0xff] }
 0x221   : > { %v3293_v7 = vcombine.high %v10281_v52, %v10281_v52  ;;  %7536 = vst [vmem:[%s8249_s21 + $0xe78] sm:$0xff] %v7024_v63  ;;  %v7028_v9 = vadd.f32 %v5872_v0, %v3956_v60  ;;  %v3225_v10 = vrot.slane %v3209_v58, %v8221_v5  ;;  %v3211_v11 = vcombine.high %v3209_v58, %v3209_v58  ;;  %v3971_v60 = vld [vmem:[%s8207_s28 + $0xf10] sm:$0xff]  ;;  %v3970_v52 = vld [vmem:[%s8207_s28 + $0xf08] sm:$0xff] }
 0x222   : > { %v3258_v13 = vrot.slane %v3244_v1, %v8221_v5  ;;  %v5892_v16 = vrot.slane %v3267_v2, %v8225_v8  ;;  %v3281_v62 = vrot.slane %v3259_v3, %v8221_v5  ;;  %v3289_v18 = vcombine.high %v3267_v2, %v3267_v2 }
 0x223   : > { %v3316_v19 = vrot.slane %v10295_v6, %v8221_v5  ;;  %7540 = vst [vmem:[%s8249_s21 + $0xe98] sm:$0xff] %v7028_v9  ;;  %v5876_v12 = vrot.slane %v3225_v10, %v8225_v8  ;;  %v3239_v20 = vrot.slane %v3211_v11, %v8221_v5  ;;  %v3241_v21 = vcombine.high %v3225_v10, %v3225_v10 }
 0x224   : > { %v3274_v26 = vrot.slane %v3258_v13, %v8221_v5  ;;  %v7033_v29 = vadd.f32 %v5892_v16, %v3961_v4  ;;  %v5896_v24 = vrot.slane %v3281_v62, %v8225_v8  ;;  %v5900_v14 = vrot.slane %v3289_v18, %v8225_v8  ;;  %v3973_v16 = vld [vmem:[%s8207_s28 + $0xf20] sm:$0xff] }
 0x225   : > { %v3291_v32 = vcombine.high %v3281_v62, %v3281_v62  ;;  %v7029_v33 = vadd.f32 %v5876_v12, %v3957_v15  ;;  %v5880_v34 = vrot.slane %v3239_v20, %v8225_v8  ;;  %v5884_v17 = vrot.slane %v3241_v21, %v8225_v8 }
 0x226   : > { %v3243_v30 = vcombine.high %v3239_v20, %v3239_v20  ;;  %7545 = vst [vmem:[%s8249_s21 + $0xec0] sm:$0xff] %v7033_v29  ;;  %v7034_v37 = vadd.f32 %v5896_v24, %v3962_v22  ;;  %v7035_v38 = vadd.f32 %v5900_v14, %v3963_v25  ;;  %v5908_v41 = vrot.slane %v3274_v26, %v8225_v8  ;;  %v3977_v20 = vld [vmem:[%s8207_s28 + $0xf40] sm:$0xff]  ;;  %v3972_v25 = vld [vmem:[%s8207_s28 + $0xf18] sm:$0xff] }
 0x227   : > { %v5904_v39 = vrot.slane %v3291_v32, %v8225_v8  ;;  %7541 = vst [vmem:[%s8249_s21 + $0xea0] sm:$0xff] %v7029_v33  ;;  %v7030_v42 = vadd.f32 %v5880_v34, %v3958_v27  ;;  %v7031_v43 = vadd.f32 %v5884_v17, %v3959_v28  ;;  %v3260_v47 = vcombine.high %v3258_v13, %v3258_v13  ;;  %v3975_v27 = vld [vmem:[%s8207_s28 + $0xf30] sm:$0xff] }
 0x228   : > { %v5888_v45 = vrot.slane %v3243_v30, %v8225_v8  ;;  %7546 = vst [vmem:[%s8249_s21 + $0xec8] sm:$0xff] %v7034_v37  ;;  %7547 = vst [vmem:[%s8249_s21 + $0xed0] sm:$0xff] %v7035_v38  ;;  %v7037_v46 = vadd.f32 %v5908_v41, %v3965_v23  ;;  %v3290_v49 = vcombine.high %v3274_v26, %v3274_v26  ;;  %v3974_v26 = vld [vmem:[%s8207_s28 + $0xf28] sm:$0xff]  ;;  %v287_v23 = vld [vmem:[%s8215_s3 + $0x1f0] sm:$0xff] }
 0x229   : > { %v7036_v31 = vadd.f32 %v5904_v39, %v3964_v35  ;;  %v5924_v50 = vrot.slane %v3316_v19, %v8225_v8  ;;  %7542 = vst [vmem:[%s8249_s21 + $0xea8] sm:$0xff] %v7030_v42  ;;  %7543 = vst [vmem:[%s8249_s21 + $0xeb0] sm:$0xff] %v7031_v43  ;;  %v3288_v53 = vrot.slane %v3260_v47, %v8221_v5  ;;  %v3976_v39 = vld [vmem:[%s8207_s28 + $0xf38] sm:$0xff]  ;;  %v3978_v41 = vld [vmem:[%s8207_s28 + $0xf48] sm:$0xff] }
 0x22a   : > { %v7032_v51 = vadd.f32 %v5888_v45, %v3960_v36  ;;  %v3308_v54 = vcombine.high %v10295_v6, %v10295_v6  ;;  %v3338_v55 = vcombine.high %v3316_v19, %v3316_v19  ;;  %7549 = vst [vmem:[%s8249_s21 + $0xee0] sm:$0xff] %v7037_v46  ;;  %v5916_v59 = vrot.slane %v3290_v49, %v8225_v8  ;;  %v3968_v6 = vld [vmem:[%s8207_s28 + $0xef8] sm:$0xff]  ;;  %v3979_v42 = vld [vmem:[%s8207_s28 + $0xf50] sm:$0xff] }
 0x22b   : > { %7548 = vst [vmem:[%s8249_s21 + $0xed8] sm:$0xff] %v7036_v31  ;;  %v7041_v61 = vadd.f32 %v5924_v50, %v3969_v48  ;;  %v3307_v44 = vrot.slane %v3293_v7, %v8221_v5  ;;  %v3349_v63 = vrot.slane %v10339_v56, %v8221_v5  ;;  %v5912_v0 = vrot.slane %v3288_v53, %v8225_v8  ;;  %v10392_v46 = vld [vmem:[%s8215_s3 + $0x1f8] sm:$0xff] }
 0x22c   : > { %7544 = vst [vmem:[%s8249_s21 + $0xeb8] sm:$0xff] %v7032_v51  ;;  %v3292_v58 = vcombine.high %v3288_v53, %v3288_v53  ;;  %v3330_v1 = vrot.slane %v3308_v54, %v8221_v5  ;;  %v5932_v2 = vrot.slane %v3338_v55, %v8225_v8  ;;  %v7039_v3 = vadd.f32 %v5916_v59, %v3967_v40  ;;  %v3980_v49 = vld [vmem:[%s8207_s28 + $0xf58] sm:$0xff] }
 0x22d   : > { %7553 = vst [vmem:[%s8249_s21 + $0xf00] sm:$0xff] %v7041_v61  ;;  %v3323_v7 = vrot.slane %v3307_v44, %v8221_v5  ;;  %v3309_v9 = vcombine.high %v3307_v44, %v3307_v44  ;;  %v3365_v10 = vrot.slane %v3349_v63, %v8221_v5  ;;  %v7038_v11 = vadd.f32 %v5912_v0, %v3966_v57  ;;  %v3981_v0 = vld [vmem:[%s8207_s28 + $0xf60] sm:$0xff] }
 0x22e   : > { %v5920_v4 = vrot.slane %v3292_v58, %v8225_v8  ;;  %v5928_v13 = vrot.slane %v3330_v1, %v8225_v8  ;;  %v7043_v15 = vadd.f32 %v5932_v2, %v3971_v60  ;;  %7551 = vst [vmem:[%s8249_s21 + $0xef0] sm:$0xff] %v7039_v3  ;;  %v3340_v62 = vcombine.high %v3330_v1, %v3330_v1 }
 0x22f   : > { %v5940_v18 = vrot.slane %v3323_v7, %v8225_v8  ;;  %v3337_v19 = vrot.slane %v3309_v9, %v8221_v5  ;;  %v3339_v12 = vcombine.high %v3323_v7, %v3323_v7  ;;  %7550 = vst [vmem:[%s8249_s21 + $0xee8] sm:$0xff] %v7038_v11  ;;  %v5956_v28 = vrot.slane %v3365_v10, %v8225_v8  ;;  %v3985_v7 = vld [vmem:[%s8207_s28 + $0xf80] sm:$0xff]  ;;  %v3983_v11 = vld [vmem:[%s8207_s28 + $0xf70] sm:$0xff] }
 0x230   : > { %v7040_v21 = vadd.f32 %v5920_v4, %v3968_v6  ;;  %v7042_v22 = vadd.f32 %v5928_v13, %v3970_v52  ;;  %7555 = vst [vmem:[%s8249_s21 + $0xf10] sm:$0xff] %v7043_v15  ;;  %v3357_v29 = vcombine.high %v3349_v63, %v3349_v63  ;;  %v5936_v24 = vrot.slane %v3340_v62, %v8225_v8 }
 0x231   : > { %v7045_v14 = vadd.f32 %v5940_v18, %v3973_v16  ;;  %v5944_v32 = vrot.slane %v3337_v19, %v8225_v8  ;;  %v5948_v33 = vrot.slane %v3339_v12, %v8225_v8  ;;  %v3341_v34 = vcombine.high %v3337_v19, %v3337_v19 }
 0x232   : > { %7552 = vst [vmem:[%s8249_s21 + $0xef8] sm:$0xff] %v7040_v21  ;;  %7554 = vst [vmem:[%s8249_s21 + $0xf08] sm:$0xff] %v7042_v22  ;;  %v7049_v17 = vadd.f32 %v5956_v28, %v3977_v20  ;;  %v3379_v30 = vrot.slane %v3357_v29, %v8221_v5  ;;  %v3387_v35 = vcombine.high %v3365_v10, %v3365_v10  ;;  %v3982_v10 = vld [vmem:[%s8207_s28 + $0xf68] sm:$0xff]  ;;  %v3987_v21 = vld [vmem:[%s8207_s28 + $0xf90] sm:$0xff] }
 0x233   : > { %v7044_v36 = vadd.f32 %v5936_v24, %v3972_v25  ;;  %7557 = vst [vmem:[%s8249_s21 + $0xf20] sm:$0xff] %v7045_v14  ;;  %v7046_v37 = vadd.f32 %v5944_v32, %v3974_v26  ;;  %v7047_v38 = vadd.f32 %v5948_v33, %v3975_v27  ;;  %v3342_v43 = vcombine.high %v10339_v56, %v10339_v56  ;;  %v3986_v20 = vld [vmem:[%s8207_s28 + $0xf88] sm:$0xff]  ;;  %v3984_v22 = vld [vmem:[%s8207_s28 + $0xf78] sm:$0xff]  ;;  %v3989_v29 = vld [vmem:[%s8207_s28 + $0xfa0] sm:$0xff] }
 0x234   : > { %v5952_v45 = vrot.slane %v3341_v34, %v8225_v8  ;;  %7561 = vst [vmem:[%s8249_s21 + $0xf40] sm:$0xff] %v7049_v17  ;;  %v5960_v47 = vrot.slane %v3379_v30, %v8225_v8  ;;  %v5964_v48 = vrot.slane %v3387_v35, %v8225_v8  ;;  %v3389_v31 = vcombine.high %v3379_v30, %v3379_v30  ;;  %v3988_v33 = vld [vmem:[%s8207_s28 + $0xf98] sm:$0xff] }
 0x235   : > { %7556 = vst [vmem:[%s8249_s21 + $0xf18] sm:$0xff] %v7044_v36  ;;  %7558 = vst [vmem:[%s8249_s21 + $0xf28] sm:$0xff] %v7046_v37  ;;  %v3356_v50 = vrot.slane %v3342_v43, %v8221_v5  ;;  %v3398_v51 = vrot.slane %v287_v23, %v8221_v5  ;;  %v3391_v53 = vcombine.high %v287_v23, %v287_v23  ;;  %v3993_v36 = vld [vmem:[%s8207_s28 + $0xfc0] sm:$0xff] }
 0x236   : > { %7559 = vst [vmem:[%s8249_s21 + $0xf30] sm:$0xff] %v7047_v38  ;;  %v10402_v40 = vrot.slane %v10392_v46, %v8221_v5  ;;  %v7048_v54 = vadd.f32 %v5952_v45, %v3976_v39  ;;  %v7050_v55 = vadd.f32 %v5960_v47, %v3978_v41  ;;  %v7051_v56 = vadd.f32 %v5964_v48, %v3979_v42  ;;  %v3990_v39 = vld [vmem:[%s8207_s28 + $0xfa8] sm:$0xff]  ;;  %v3991_v47 = vld [vmem:[%s8207_s28 + $0xfb0] sm:$0xff] }
 0x237   : > { %v5968_v57 = vrot.slane %v3389_v31, %v8225_v8  ;;  %v3372_v59 = vrot.slane %v3356_v50, %v8221_v5  ;;  %v3358_v61 = vcombine.high %v3356_v50, %v3356_v50  ;;  %v3414_v60 = vrot.slane %v3398_v51, %v8221_v5  ;;  %v3992_v50 = vld [vmem:[%s8207_s28 + $0xfb8] sm:$0xff] }
 0x238   : > { %v3406_v44 = vcombine.high %v3398_v51, %v3398_v51  ;;  %7560 = vst [vmem:[%s8249_s21 + $0xf38] sm:$0xff] %v7048_v54  ;;  %7562 = vst [vmem:[%s8249_s21 + $0xf48] sm:$0xff] %v7050_v55  ;;  %v3405_v58 = vrot.slane %v3391_v53, %v8221_v5  ;;  %v10414_v1 = vrot.slane %v10402_v40, %v8221_v5  ;;  %v3994_v53 = vld [vmem:[%s8207_s28 + $0xfc8] sm:$0xff] }
 0x239   : > { %7563 = vst [vmem:[%s8249_s21 + $0xf50] sm:$0xff] %v7051_v56  ;;  %v7052_v63 = vadd.f32 %v5968_v57, %v3980_v49  ;;  %v3455_v2 = vcombine.high %v10402_v40, %v10402_v40  ;;  %v5972_v3 = vrot.slane %v3372_v59, %v8225_v8  ;;  %v3386_v6 = vrot.slane %v3358_v61, %v8221_v5 }
 0x23a   : > { %v3388_v52 = vcombine.high %v3372_v59, %v3372_v59  ;;  %v5988_v9 = vrot.slane %v3414_v60, %v8225_v8  ;;  %v3428_v4 = vrot.slane %v3406_v44, %v8221_v5  ;;  %v3436_v13 = vcombine.high %v3414_v60, %v3414_v60  ;;  %v3995_v59 = vld [vmem:[%s8207_s28 + $0xfd0] sm:$0xff] }
 0x23b   : > { %7564 = vst [vmem:[%s8249_s21 + $0xf58] sm:$0xff] %v7052_v63  ;;  %v3421_v15 = vrot.slane %v3405_v58, %v8221_v5  ;;  %v3407_v16 = vcombine.high %v3405_v58, %v3405_v58  ;;  %v7053_v62 = vadd.f32 %v5972_v3, %v3981_v0  ;;  %v5976_v18 = vrot.slane %v3386_v6, %v8225_v8  ;;  %v3996_v63 = vld [vmem:[%s8207_s28 + $0xfd8] sm:$0xff] }
 0x23c   : > { %v5980_v19 = vrot.slane %v3388_v52, %v8225_v8  ;;  %v3390_v12 = vcombine.high %v3386_v6, %v3386_v6  ;;  %v7057_v25 = vadd.f32 %v5988_v9, %v3985_v7  ;;  %v5992_v26 = vrot.slane %v3428_v4, %v8225_v8  ;;  %v3997_v7 = vld [vmem:[%s8207_s28 + $0xfe0] sm:$0xff] }
 0x23d   : > { %v5996_v27 = vrot.slane %v3436_v13, %v8225_v8  ;;  %v3438_v28 = vcombine.high %v3428_v4, %v3428_v4  ;;  %7565 = vst [vmem:[%s8249_s21 + $0xf60] sm:$0xff] %v7053_v62  ;;  %v7054_v24 = vadd.f32 %v5976_v18, %v3982_v10  ;;  %v6004_v34 = vrot.slane %v3421_v15, %v8225_v8  ;;  %v3998_v4 = vld [vmem:[%s8207_s28 + $0xfe8] sm:$0xff]  ;;  %v3999_v13 = vld [vmem:[%s8207_s28 + $0xff0] sm:$0xff] }
 0x23e   : > { %v7055_v14 = vadd.f32 %v5980_v19, %v3983_v11  ;;  %v5984_v32 = vrot.slane %v3390_v12, %v8225_v8  ;;  %7569 = vst [vmem:[%s8249_s21 + $0xf80] sm:$0xff] %v7057_v25  ;;  %v7058_v17 = vadd.f32 %v5992_v26, %v3986_v20  ;;  %v3435_v23 = vrot.slane %v3407_v16, %v8221_v5  ;;  %v4000_v19 = vld [vmem:[%s8207_s28 + $0xff8] sm:$0xff] }
 0x23f   : > { %v7059_v30 = vadd.f32 %v5996_v27, %v3987_v21  ;;  %v6000_v35 = vrot.slane %v3438_v28, %v8225_v8  ;;  %7566 = vst [vmem:[%s8249_s21 + $0xf68] sm:$0xff] %v7054_v24  ;;  %v7061_v38 = vadd.f32 %v6004_v34, %v3989_v29  ;;  %v3437_v41 = vcombine.high %v3421_v15, %v3421_v15 }
 0x240   : > { %7567 = vst [vmem:[%s8249_s21 + $0xf70] sm:$0xff] %v7055_v14  ;;  %v7056_v37 = vadd.f32 %v5984_v32, %v3984_v22  ;;  %v6020_v42 = vrot.slane %v10414_v1, %v8225_v8  ;;  %7570 = vst [vmem:[%s8249_s21 + $0xf88] sm:$0xff] %v7058_v17  ;;  %v6008_v45 = vrot.slane %v3435_v23, %v8225_v8 }
 0x241   : > { %7571 = vst [vmem:[%s8249_s21 + $0xf90] sm:$0xff] %v7059_v30  ;;  %v7060_v43 = vadd.f32 %v6000_v35, %v3988_v33  ;;  %v3439_v48 = vcombine.high %v3435_v23, %v3435_v23  ;;  %v3477_v31 = vrot.slane %v3455_v2, %v8221_v5  ;;  %7573 = vst [vmem:[%s8249_s21 + $0xfa0] sm:$0xff] %v7061_v38 }
 0x242   : > { %7568 = vst [vmem:[%s8249_s21 + $0xf78] sm:$0xff] %v7056_v37  ;;  %v6012_v49 = vrot.slane %v3437_v41, %v8225_v8  ;;  %v7065_v51 = vadd.f32 %v6020_v42, %v3993_v36  ;;  %v3485_v40 = vcombine.high %v10414_v1, %v10414_v1  ;;  %v3440_v54 = vcombine.high %v10392_v46, %v10392_v46 }
 0x243   : > { %7572 = vst [vmem:[%s8249_s21 + $0xf98] sm:$0xff] %v7060_v43  ;;  %v7062_v55 = vadd.f32 %v6008_v45, %v3990_v39  ;;  %v6016_v56 = vrot.slane %v3439_v48, %v8225_v8  ;;  %v6024_v57 = vrot.slane %v3477_v31, %v8225_v8  ;;  %v3487_v61 = vcombine.high %v3477_v31, %v3477_v31 }
 0x244   : > { %v7063_v60 = vadd.f32 %v6012_v49, %v3991_v47  ;;  %7577 = vst [vmem:[%s8249_s21 + $0xfc0] sm:$0xff] %v7065_v51  ;;  %v6028_v44 = vrot.slane %v3485_v40, %v8225_v8  ;;  %v3454_v46 = vrot.slane %v3440_v54, %v8221_v5 }
 0x245   : > { %7574 = vst [vmem:[%s8249_s21 + $0xfa8] sm:$0xff] %v7062_v55  ;;  %v7064_v0 = vadd.f32 %v6016_v56, %v3992_v50  ;;  %v7066_v58 = vadd.f32 %v6024_v57, %v3994_v53  ;;  %v6032_v1 = vrot.slane %v3487_v61, %v8225_v8 }
 0x246   : > { %7575 = vst [vmem:[%s8249_s21 + $0xfb0] sm:$0xff] %v7063_v60  ;;  %v7067_v2 = vadd.f32 %v6028_v44, %v3995_v59  ;;  %v3470_v3 = vrot.slane %v3454_v46, %v8221_v5  ;;  %v3456_v6 = vcombine.high %v3454_v46, %v3454_v46 }
 0x247   : > { %7576 = vst [vmem:[%s8249_s21 + $0xfb8] sm:$0xff] %v7064_v0  ;;  %7578 = vst [vmem:[%s8249_s21 + $0xfc8] sm:$0xff] %v7066_v58  ;;  %v7068_v52 = vadd.f32 %v6032_v1, %v3996_v63 }
 0x248   : > { %7579 = vst [vmem:[%s8249_s21 + $0xfd0] sm:$0xff] %v7067_v2  ;;  %v6036_v9 = vrot.slane %v3470_v3, %v8225_v8  ;;  %v3484_v10 = vrot.slane %v3456_v6, %v8221_v5  ;;  %v3486_v11 = vcombine.high %v3470_v3, %v3470_v3 }
 0x249   : > { %7580 = vst [vmem:[%s8249_s21 + $0xfd8] sm:$0xff] %v7068_v52 }
 0x24a   : > { %v7069_v15 = vadd.f32 %v6036_v9, %v3997_v7  ;;  %v6040_v16 = vrot.slane %v3484_v10, %v8225_v8  ;;  %v6044_v62 = vrot.slane %v3486_v11, %v8225_v8  ;;  %v3488_v18 = vcombine.high %v3484_v10, %v3484_v10 }
 0x24c   : > { %7581 = vst [vmem:[%s8249_s21 + $0xfe0] sm:$0xff] %v7069_v15  ;;  %v7070_v5 = vadd.f32 %v6040_v16, %v3998_v4  ;;  %v7071_v12 = vadd.f32 %v6044_v62, %v3999_v13  ;;  %v6048_v20 = vrot.slane %v3488_v18, %v8225_v8 }
 0x24e   : > { %7582 = vst [vmem:[%s8249_s21 + $0xfe8] sm:$0xff] %v7070_v5  ;;  %7583 = vst [vmem:[%s8249_s21 + $0xff0] sm:$0xff] %v7071_v12  ;;  %v7072_v21 = vadd.f32 %v6048_v20, %v4000_v19 }
 0x250   : > { %7584 = vst [vmem:[%s8249_s21 + $0xff8] sm:$0xff] %v7072_v21 }
 0x251   : > { %7941 = shalt.err (!%p7938_p11)
}
 0x252   : > { %s7942_s6 = scalar_lea.hbm %s10493_s8, 65536  ;;  %s7946_s28 = scalar_lea.hbm %s10549_s2, 131072 }
 0x253   : > { %p7943_p1 = scmp.ne.s32.totalorder %s10493_s8, %s7942_s6  ;;  %p7947_p5 = scmp.lt.u32.totalorder %s10493_s8, %s10549_s2 }
 0x254   : > { %p7948_p4 = scmp.lt.u32.totalorder %s7946_s28, %s7942_s6  ;;  %p7950_p0 = scmp.lt.u32.totalorder %s7942_s6, %s10493_s8 }
 0x255   : > { %p7944_p6 = pnand %p7943_p1, %p10560_p3 }
 0x256   : > { %p7949_p8 = por %p7948_p4, %p7947_p5 }
 0x257   : > { %p7945_p2 = pneg %p7944_p6 }
 0x258   : > { %p7951_p12 = por %p7950_p0, %p7949_p8 }
 0x25a   : > { %p7952_p13 = pnand %p7951_p12, %p7945_p2 }
 0x25c   : > { %7955 = shalt.err (!%p7952_p13)
}
 0x25d   : > { %s8022_s3 = smov 128   ;;  %s8023_s21 = smov 8  }
 0x25e   : > { %7736 = dma.vmem_to_hbm [thread:$0]  (%p10560_p3), %s10495_s19, 65536, %s10493_s8, %s7586_s12, %s8022_s3, %s8022_s3, %s8023_s21  }
 0x25f PF: > { %s7615_s15 = sand.u32 1, %s7994_s9   ;;  %p10561_p7 = scmp.ne.s32.totalorder %s10555_s24, 0 }
 0x260   : > { %p10562_p10 = scmp.ge.s32.totalorder %s8014_s14, 2  ;;  %s7616_s26 = scalar_lea.sflag [#allocation4], %s7615_s15 }
 0x262   : > { %p7746_p9 = pnand %p10562_p10, %p10561_p7 }
 0x264   : > { %7989 = dma.done.wait (!%p7746_p9), %s7616_s26, 65536  }
 0x265   : > { %7991 = vsyncadd (!%p7746_p9), %s7616_s26, 4294901760  ;;  %s21_s14 = sadd.s32 1, %s8014_s14   ;;  %s10563_s9 = smov %s7998_s10 }
 0x266   : > { %p18_p11 = scmp.ge.s32.totalorder %s21_s14, 4   ;;  %s10564_s10 = smov %s8002_s11 }
 0x267   : > { %s10565_s11 = smov %s8095_s23  ;;  %s10566_s12 = smov %s8010_s13 }
 0x268   : > { %s10567_s13 = smov %s10569_s17  ;;  %20 = sbr.rel (!%p18_p11) target bundleno = 8 (0x8), region = 86 }
 0x26f   :  { %7621 = vsyncpa [#allocation3], 1 }
 0x270   :  { %7623 = vsyncpa [#allocation3 + $0x1], 1 }
 0x271   :  { %7624 = vsyncpa [#allocation6], 1 }
 0x272   :  { %7626 = vsyncpa [#allocation6 + $0x1], 1 }
 0x273   :  { %7627 = vsyncpa [#allocation4], 1 }
 0x274   :  { %7629 = vsyncpa [#allocation4 + $0x1], 1 }

</bundles_post_ra>
